<compile_context>
chip_gen: v6e
topology: v6e:2x2x1
jax: 0.10.0
libtpu: 0.0.40
codegen_flags: <defaults>
</compile_context>

<pallas_src>
import numpy as np
import jax
import jax.numpy as jnp
from jax import lax
from jax.experimental import pallas as pl
from jax.experimental.pallas import tpu as pltpu


# ---------------------------------------------------------------------------
# The single fused kernel: conv1 -> pool -> conv2 -> pool -> 4-layer MLP head.
def _dqn_kernel(x_ref, wb1_ref, b1t_ref, wb2_ref, b2t_ref,
                wf1_ref, bf1_ref, wf2_ref, bf2_ref,
                wf3_ref, bf3_ref, wo_ref, bo_ref, o_ref):
    f32 = jnp.float32
    B = x_ref.shape[0]
    K = wb1_ref.shape[0]                       # 5
    H = x_ref.shape[1] * x_ref.shape[2]        # input height (32)
    r1 = (H - K + 1) // 4                      # rows per conv1 residue class (7)
    n1 = wb1_ref.shape[2]                      # conv1 cols = C1*OW1        (120)
    h1 = n1 // 2
    r2 = ((H - K + 1) // 2 - K + 1) // 2       # rows per conv2 parity class  (5)
    n2 = wb2_ref.shape[2]                      # conv2 cols = C2*OW2        (108)
    h2 = n2 // 2

    wb1 = [wb1_ref[k] for k in range(K)]
    wb2 = [wb2_ref[k] for k in range(K)]
    b1t = b1t_ref[...]
    b2t = b2t_ref[...]

    rows = []
    for b in range(B):                         # B is tiny & static -> unrolled
        # Four row-residue classes of this image, each (H//4, Cin*W).
        xs = [x_ref[b, s] for s in range(4)]

        # conv1 + bias (PReLU(alpha=1) is the identity -> omitted).
        # y1[r][i, :] = conv1 output row 4*i + r, columns (parity, cout, ow//2).
        y1 = []
        for r in range(4):
            acc = b1t
            for kh in range(K):
                s, q = (r + kh) % 4, (r + kh) // 4
                acc = acc + jnp.dot(xs[s][q:q + r1, :], wb1[kh],
                                    preferred_element_type=f32)
            y1.append(acc)

        # 2x2 max-pool: rows via residue classes, cols via contiguous halves.
        rp_e = jnp.maximum(y1[0], y1[1])                   # pooled rows 0,2,4,...
        rp_o = jnp.maximum(y1[2], y1[3])                   # pooled rows 1,3,5,...
        p1 = [jnp.maximum(rp_e[:, :h1], rp_e[:, h1:]),
              jnp.maximum(rp_o[:, :h1], rp_o[:, h1:])]     # 2 x (r1, h1)

        # conv2 + bias, output split into row-parity classes for the next pool.
        y2 = []
        for r in range(2):
            acc = b2t
            for kh in range(K):
                s, q = (r + kh) % 2, (r + kh) // 2
                acc = acc + jnp.dot(p1[s][q:q + r2, :], wb2[kh],
                                    preferred_element_type=f32)
            y2.append(acc)

        # 2x2 max-pool -> (r2, h2) with columns (cout, ow).
        rp = jnp.maximum(y2[0], y2[1])
        p2 = jnp.maximum(rp[:, :h2], rp[:, h2:])

        # Flatten in (h, c, w) order; fc1 weight rows were permuted to match.
        rows.append(jnp.concatenate([p2[h:h + 1, :] for h in range(r2)], axis=1))

    feat = jnp.concatenate(rows, axis=0)       # (B, 270)

    # MLP head (PReLU(alpha=1) omitted).
    h = jnp.dot(feat, wf1_ref[...], preferred_element_type=f32) + bf1_ref[...]
    h = jnp.dot(h, wf2_ref[...], preferred_element_type=f32) + bf2_ref[...]
    h = jnp.dot(h, wf3_ref[...], preferred_element_type=f32) + bf3_ref[...]
    o_ref[...] = jnp.dot(h, wo_ref[...], preferred_element_type=f32) + bo_ref[...]


# ---------------------------------------------------------------------------
# One-time parameter re-layout (outside the per-call path).
def _banded_conv_weight(w_oihw, in_width):
    """(Cout,Cin,K,K) conv weight -> (K, Cin*in_width, Cout*OW) banded GEMM weight.

    Output column index = p*(Cout*OW//2) + cout*(OW//2) + ow//2 with p = ow % 2,
    so the 2x2 width-pool is the max of the two contiguous column halves.
    Also returns the per-column cout index (used to tile the bias).
    """
    co_n, ci_n, K, _ = w_oihw.shape
    ow_n = in_width - K + 1
    owh = ow_n // 2
    r = np.arange(ci_n * in_width)
    ci_r, w_r = r // in_width, r % in_width
    c = np.arange(co_n * ow_n)
    p_c, rem = c // (co_n * owh), c % (co_n * owh)
    co_c, owp_c = rem // owh, rem % owh
    ow_c = 2 * owp_c + p_c
    kw = w_r[:, None] - ow_c[None, :]
    valid = (kw >= 0) & (kw < K)
    kwc = np.clip(kw, 0, K - 1)
    kh = np.arange(K)[:, None, None]
    band = w_oihw[co_c[None, None, :], ci_r[None, :, None], kh, kwc[None, :, :]]
    band = jnp.where(jnp.asarray(valid)[None, :, :], band, 0.0).astype(jnp.float32)
    return band, co_c


def prepare_params(p, img_height, img_width):
    K = p["w1"].shape[2]
    H, W = img_height, img_width
    ow1, oh1 = W - K + 1, H - K + 1
    w2_in = ow1 // 2
    oh_f = (oh1 // 2 - K + 1) // 2
    ow_f = (w2_in - K + 1) // 2
    c_f = p["w2"].shape[0]
    assert H % 4 == 0 and ow1 % 2 == 0 and (oh1 // 2 - K + 1) % 2 == 0 \
        and (w2_in - K + 1) % 2 == 0, "unsupported input geometry"
    assert c_f * oh_f * ow_f == p["wfc1"].shape[0], "fc1 size mismatch"

    wb1, co1 = _banded_conv_weight(p["w1"], W)       # (5, 96, 120)
    wb2, co2 = _banded_conv_weight(p["w2"], w2_in)   # (5, 60, 108)
    # fc1 rows reordered from PyTorch's (c, h, w) flatten to our (h, c, w) order.
    wfc1 = p["wfc1"].reshape(c_f, oh_f, ow_f, -1).transpose(1, 0, 2, 3)
    wfc1 = wfc1.reshape(c_f * oh_f * ow_f, -1)
    return dict(
        wb1=wb1, b1t=p["b1"][co1].reshape(1, -1),
        wb2=wb2, b2t=p["b2"][co2].reshape(1, -1),
        wfc1=wfc1, bfc1=p["bfc1"].reshape(1, -1),
        wfc2=p["wfc2"], bfc2=p["bfc2"].reshape(1, -1),
        wfc3=p["wfc3"], bfc3=p["bfc3"].reshape(1, -1),
        wout=p["wout"], bout=p["bout"].reshape(1, -1),
    )


def dqn_forward(x_nchw, prep):
    B, Cin, H, W = x_nchw.shape
    # Rows = spatial h, columns = (cin, w); rows pre-split into residue classes
    # mod 4 so the in-kernel pools need no strided row selection.
    x_rows = jnp.transpose(x_nchw, (0, 2, 1, 3)).reshape(B, H, Cin * W)
    x_split = x_rows.reshape(B, H // 4, 4, Cin * W).transpose(0, 2, 1, 3)

    n_out = prep["wout"].shape[1]
    # NOTE: whole net (<1 MB) fits in VMEM; no grid needed.  For large replay
    # batches, add a grid over B with dimension_semantics=("parallel",) to use
    # both v7x TensorCores.
    return pl.pallas_call(
        _dqn_kernel,
        out_shape=jax.ShapeDtypeStruct((B, n_out), jnp.float32),
        in_specs=[pl.BlockSpec(memory_space=pltpu.MemorySpace.VMEM)] * 13,
        out_specs=pl.BlockSpec(memory_space=pltpu.MemorySpace.VMEM),
    )(x_split, prep["wb1"], prep["b1t"], prep["wb2"], prep["b2t"],
      prep["wfc1"], prep["bfc1"], prep["wfc2"], prep["bfc2"],
      prep["wfc3"], prep["bfc3"], prep["wout"], prep["bout"])


# ---------------------------------------------------------------------------
# Deterministic synthetic parameters (shapes from DQN.__init__; conv OIHW,
# fc weights stored as (in, out)).
def init_params(key):
    ks = jax.random.split(key, 12)

    def u(k, shape, fan_in):
        b = 1.0 / (fan_in ** 0.5)
        return jax.random.uniform(k, shape, jnp.float32, -b, b)

    return {
        "w1": u(ks[0], (6, 4, 5, 5), 4 * 25), "b1": u(ks[1], (6,), 4 * 25),
        "w2": u(ks[2], (18, 6, 5, 5), 6 * 25), "b2": u(ks[3], (18,), 6 * 25),
        "wfc1": u(ks[4], (270, 200), 270), "bfc1": u(ks[5], (200,), 270),
        "wfc2": u(ks[6], (200, 100), 200), "bfc2": u(ks[7], (100,), 200),
        "wfc3": u(ks[8], (100, 40), 100), "bfc3": u(ks[9], (40,), 100),
        "wout": u(ks[10], (40, 8), 40), "bout": u(ks[11], (8,), 40),
    }


# Pure-JAX reference (mirrors the PyTorch forward; PReLU(alpha=1) == identity).
def dqn_reference(x, p):
    dn = ("NCHW", "OIHW", "NCHW")
    hp = lax.Precision.HIGHEST
    t = lax.conv_general_dilated(x, p["w1"], (1, 1), "VALID",
                                 dimension_numbers=dn, precision=hp)
    t = t + p["b1"][None, :, None, None]
    t = lax.reduce_window(t, -jnp.inf, lax.max, (1, 1, 2, 2), (1, 1, 2, 2), "VALID")
    t = lax.conv_general_dilated(t, p["w2"], (1, 1), "VALID",
                                 dimension_numbers=dn, precision=hp)
    t = t + p["b2"][None, :, None, None]
    t = lax.reduce_window(t, -jnp.inf, lax.max, (1, 1, 2, 2), (1, 1, 2, 2), "VALID")
    t = t.reshape(t.shape[0], -1)
    t = jnp.dot(t, p["wfc1"], precision=hp) + p["bfc1"]
    t = jnp.dot(t, p["wfc2"], precision=hp) + p["bfc2"]
    t = jnp.dot(t, p["wfc3"], precision=hp) + p["bfc3"]
    return jnp.dot(t, p["wout"], precision=hp) + p["bout"]


if __name__ == "__main__":
    key = jax.random.PRNGKey(0)
    k_x, k_p = jax.random.split(key)

    # Smallest input consistent with the module's 18*5*3 flatten: 32x24 images.
    B, C, H, W = 2, 4, 32, 24
    x = jax.random.normal(k_x, (B, C, H, W), dtype=jnp.float32)
    params = init_params(k_p)

    prep = prepare_params(params, H, W)          # one-time weight re-layout
    out = jax.jit(dqn_forward)(x, prep)
    out = jax.block_until_ready(out)

    ref = dqn_reference(x, params)
    assert out.shape == (B, 8), out.shape
    if not jnp.allclose(out, ref, atol=2e-2, rtol=2e-2):
        raise AssertionError(
            f"mismatch vs reference, max abs diff = {float(jnp.max(jnp.abs(out - ref)))}")
    print("KERNEL_OK")
</pallas_src>

<mosaic_0001>
module attributes {stable_mosaic.version = 11 : i64} {
  func.func @_dqn_kernel(%arg0: memref<2x4x8x96xf32, #tpu.memory_space<vmem>>, %arg1: memref<5x96x120xf32, #tpu.memory_space<vmem>>, %arg2: memref<1x120xf32, #tpu.memory_space<vmem>>, %arg3: memref<5x60x108xf32, #tpu.memory_space<vmem>>, %arg4: memref<1x108xf32, #tpu.memory_space<vmem>>, %arg5: memref<270x200xf32, #tpu.memory_space<vmem>>, %arg6: memref<1x200xf32, #tpu.memory_space<vmem>>, %arg7: memref<200x100xf32, #tpu.memory_space<vmem>>, %arg8: memref<1x100xf32, #tpu.memory_space<vmem>>, %arg9: memref<100x40xf32, #tpu.memory_space<vmem>>, %arg10: memref<1x40xf32, #tpu.memory_space<vmem>>, %arg11: memref<40x8xf32, #tpu.memory_space<vmem>>, %arg12: memref<1x8xf32, #tpu.memory_space<vmem>>, %arg13: memref<2x8xf32, #tpu.memory_space<vmem>>) attributes {dimension_semantics = [], scalar_prefetch = 0 : i64, scratch_operands = 0 : i64, tpu.core_type = #tpu.core_type<tc>} {
    %c0 = arith.constant 0 : index
    %c0_0 = arith.constant 0 : index
    %c0_1 = arith.constant 0 : index
    %0 = vector.load %arg1[%c0, %c0_0, %c0_1] : memref<5x96x120xf32, #tpu.memory_space<vmem>>, vector<1x96x120xf32>
    %1 = vector.shape_cast %0 : vector<1x96x120xf32> to vector<96x120xf32>
    %c1 = arith.constant 1 : index
    %c0_2 = arith.constant 0 : index
    %c0_3 = arith.constant 0 : index
    %2 = vector.load %arg1[%c1, %c0_2, %c0_3] : memref<5x96x120xf32, #tpu.memory_space<vmem>>, vector<1x96x120xf32>
    %3 = vector.shape_cast %2 : vector<1x96x120xf32> to vector<96x120xf32>
    %c2 = arith.constant 2 : index
    %c0_4 = arith.constant 0 : index
    %c0_5 = arith.constant 0 : index
    %4 = vector.load %arg1[%c2, %c0_4, %c0_5] : memref<5x96x120xf32, #tpu.memory_space<vmem>>, vector<1x96x120xf32>
    %5 = vector.shape_cast %4 : vector<1x96x120xf32> to vector<96x120xf32>
    %c3 = arith.constant 3 : index
    %c0_6 = arith.constant 0 : index
    %c0_7 = arith.constant 0 : index
    %6 = vector.load %arg1[%c3, %c0_6, %c0_7] : memref<5x96x120xf32, #tpu.memory_space<vmem>>, vector<1x96x120xf32>
    %7 = vector.shape_cast %6 : vector<1x96x120xf32> to vector<96x120xf32>
    %c4 = arith.constant 4 : index
    %c0_8 = arith.constant 0 : index
    %c0_9 = arith.constant 0 : index
    %8 = vector.load %arg1[%c4, %c0_8, %c0_9] : memref<5x96x120xf32, #tpu.memory_space<vmem>>, vector<1x96x120xf32>
    %9 = vector.shape_cast %8 : vector<1x96x120xf32> to vector<96x120xf32>
    %c0_10 = arith.constant 0 : index
    %c0_11 = arith.constant 0 : index
    %c0_12 = arith.constant 0 : index
    %10 = vector.load %arg3[%c0_10, %c0_11, %c0_12] : memref<5x60x108xf32, #tpu.memory_space<vmem>>, vector<1x60x108xf32>
    %11 = vector.shape_cast %10 : vector<1x60x108xf32> to vector<60x108xf32>
    %c1_13 = arith.constant 1 : index
    %c0_14 = arith.constant 0 : index
    %c0_15 = arith.constant 0 : index
    %12 = vector.load %arg3[%c1_13, %c0_14, %c0_15] : memref<5x60x108xf32, #tpu.memory_space<vmem>>, vector<1x60x108xf32>
    %13 = vector.shape_cast %12 : vector<1x60x108xf32> to vector<60x108xf32>
    %c2_16 = arith.constant 2 : index
    %c0_17 = arith.constant 0 : index
    %c0_18 = arith.constant 0 : index
    %14 = vector.load %arg3[%c2_16, %c0_17, %c0_18] : memref<5x60x108xf32, #tpu.memory_space<vmem>>, vector<1x60x108xf32>
    %15 = vector.shape_cast %14 : vector<1x60x108xf32> to vector<60x108xf32>
    %c3_19 = arith.constant 3 : index
    %c0_20 = arith.constant 0 : index
    %c0_21 = arith.constant 0 : index
    %16 = vector.load %arg3[%c3_19, %c0_20, %c0_21] : memref<5x60x108xf32, #tpu.memory_space<vmem>>, vector<1x60x108xf32>
    %17 = vector.shape_cast %16 : vector<1x60x108xf32> to vector<60x108xf32>
    %c4_22 = arith.constant 4 : index
    %c0_23 = arith.constant 0 : index
    %c0_24 = arith.constant 0 : index
    %18 = vector.load %arg3[%c4_22, %c0_23, %c0_24] : memref<5x60x108xf32, #tpu.memory_space<vmem>>, vector<1x60x108xf32>
    %19 = vector.shape_cast %18 : vector<1x60x108xf32> to vector<60x108xf32>
    %c0_25 = arith.constant 0 : index
    %c0_26 = arith.constant 0 : index
    %20 = vector.load %arg2[%c0_25, %c0_26] : memref<1x120xf32, #tpu.memory_space<vmem>>, vector<1x120xf32>
    %c0_27 = arith.constant 0 : index
    %c0_28 = arith.constant 0 : index
    %21 = vector.load %arg4[%c0_27, %c0_28] : memref<1x108xf32, #tpu.memory_space<vmem>>, vector<1x108xf32>
    %c0_29 = arith.constant 0 : index
    %c0_30 = arith.constant 0 : index
    %c0_31 = arith.constant 0 : index
    %c0_32 = arith.constant 0 : index
    %22 = vector.load %arg0[%c0_29, %c0_30, %c0_31, %c0_32] : memref<2x4x8x96xf32, #tpu.memory_space<vmem>>, vector<1x1x8x96xf32>
    %23 = vector.shape_cast %22 : vector<1x1x8x96xf32> to vector<8x96xf32>
    %c0_33 = arith.constant 0 : index
    %c1_34 = arith.constant 1 : index
    %c0_35 = arith.constant 0 : index
    %c0_36 = arith.constant 0 : index
    %24 = vector.load %arg0[%c0_33, %c1_34, %c0_35, %c0_36] : memref<2x4x8x96xf32, #tpu.memory_space<vmem>>, vector<1x1x8x96xf32>
    %25 = vector.shape_cast %24 : vector<1x1x8x96xf32> to vector<8x96xf32>
    %c0_37 = arith.constant 0 : index
    %c2_38 = arith.constant 2 : index
    %c0_39 = arith.constant 0 : index
    %c0_40 = arith.constant 0 : index
    %26 = vector.load %arg0[%c0_37, %c2_38, %c0_39, %c0_40] : memref<2x4x8x96xf32, #tpu.memory_space<vmem>>, vector<1x1x8x96xf32>
    %27 = vector.shape_cast %26 : vector<1x1x8x96xf32> to vector<8x96xf32>
    %c0_41 = arith.constant 0 : index
    %c3_42 = arith.constant 3 : index
    %c0_43 = arith.constant 0 : index
    %c0_44 = arith.constant 0 : index
    %28 = vector.load %arg0[%c0_41, %c3_42, %c0_43, %c0_44] : memref<2x4x8x96xf32, #tpu.memory_space<vmem>>, vector<1x1x8x96xf32>
    %29 = vector.shape_cast %28 : vector<1x1x8x96xf32> to vector<8x96xf32>
    %30 = vector.extract_strided_slice %23 {offsets = [0, 0], sizes = [7, 96], strides = [1, 1]} : vector<8x96xf32> to vector<7x96xf32>
    %cst = arith.constant dense<0.000000e+00> : vector<7x120xf32>
    %31 = tpu.matmul %30, %1, %cst {dimension_numbers = #tpu.dot_dimension_numbers<[1], [0], [0], [1], [0, 0, 1, 1], [], []>} : vector<7x96xf32>, vector<96x120xf32>, vector<7x120xf32> -> vector<7x120xf32>
    %32 = vector.broadcast %20 : vector<1x120xf32> to vector<7x120xf32>
    %33 = arith.addf %32, %31 : vector<7x120xf32>
    %34 = vector.extract_strided_slice %25 {offsets = [0, 0], sizes = [7, 96], strides = [1, 1]} : vector<8x96xf32> to vector<7x96xf32>
    %cst_45 = arith.constant dense<0.000000e+00> : vector<7x120xf32>
    %35 = tpu.matmul %34, %3, %cst_45 {dimension_numbers = #tpu.dot_dimension_numbers<[1], [0], [0], [1], [0, 0, 1, 1], [], []>} : vector<7x96xf32>, vector<96x120xf32>, vector<7x120xf32> -> vector<7x120xf32>
    %36 = arith.addf %33, %35 : vector<7x120xf32>
    %37 = vector.extract_strided_slice %27 {offsets = [0, 0], sizes = [7, 96], strides = [1, 1]} : vector<8x96xf32> to vector<7x96xf32>
    %cst_46 = arith.constant dense<0.000000e+00> : vector<7x120xf32>
    %38 = tpu.matmul %37, %5, %cst_46 {dimension_numbers = #tpu.dot_dimension_numbers<[1], [0], [0], [1], [0, 0, 1, 1], [], []>} : vector<7x96xf32>, vector<96x120xf32>, vector<7x120xf32> -> vector<7x120xf32>
    %39 = arith.addf %36, %38 : vector<7x120xf32>
    %40 = vector.extract_strided_slice %29 {offsets = [0, 0], sizes = [7, 96], strides = [1, 1]} : vector<8x96xf32> to vector<7x96xf32>
    %cst_47 = arith.constant dense<0.000000e+00> : vector<7x120xf32>
    %41 = tpu.matmul %40, %7, %cst_47 {dimension_numbers = #tpu.dot_dimension_numbers<[1], [0], [0], [1], [0, 0, 1, 1], [], []>} : vector<7x96xf32>, vector<96x120xf32>, vector<7x120xf32> -> vector<7x120xf32>
    %42 = arith.addf %39, %41 : vector<7x120xf32>
    %43 = vector.extract_strided_slice %23 {offsets = [1, 0], sizes = [7, 96], strides = [1, 1]} : vector<8x96xf32> to vector<7x96xf32>
    %cst_48 = arith.constant dense<0.000000e+00> : vector<7x120xf32>
    %44 = tpu.matmul %43, %9, %cst_48 {dimension_numbers = #tpu.dot_dimension_numbers<[1], [0], [0], [1], [0, 0, 1, 1], [], []>} : vector<7x96xf32>, vector<96x120xf32>, vector<7x120xf32> -> vector<7x120xf32>
    %45 = arith.addf %42, %44 : vector<7x120xf32>
    %46 = vector.extract_strided_slice %25 {offsets = [0, 0], sizes = [7, 96], strides = [1, 1]} : vector<8x96xf32> to vector<7x96xf32>
    %cst_49 = arith.constant dense<0.000000e+00> : vector<7x120xf32>
    %47 = tpu.matmul %46, %1, %cst_49 {dimension_numbers = #tpu.dot_dimension_numbers<[1], [0], [0], [1], [0, 0, 1, 1], [], []>} : vector<7x96xf32>, vector<96x120xf32>, vector<7x120xf32> -> vector<7x120xf32>
    %48 = vector.broadcast %20 : vector<1x120xf32> to vector<7x120xf32>
    %49 = arith.addf %48, %47 : vector<7x120xf32>
    %50 = vector.extract_strided_slice %27 {offsets = [0, 0], sizes = [7, 96], strides = [1, 1]} : vector<8x96xf32> to vector<7x96xf32>
    %cst_50 = arith.constant dense<0.000000e+00> : vector<7x120xf32>
    %51 = tpu.matmul %50, %3, %cst_50 {dimension_numbers = #tpu.dot_dimension_numbers<[1], [0], [0], [1], [0, 0, 1, 1], [], []>} : vector<7x96xf32>, vector<96x120xf32>, vector<7x120xf32> -> vector<7x120xf32>
    %52 = arith.addf %49, %51 : vector<7x120xf32>
    %53 = vector.extract_strided_slice %29 {offsets = [0, 0], sizes = [7, 96], strides = [1, 1]} : vector<8x96xf32> to vector<7x96xf32>
    %cst_51 = arith.constant dense<0.000000e+00> : vector<7x120xf32>
    %54 = tpu.matmul %53, %5, %cst_51 {dimension_numbers = #tpu.dot_dimension_numbers<[1], [0], [0], [1], [0, 0, 1, 1], [], []>} : vector<7x96xf32>, vector<96x120xf32>, vector<7x120xf32> -> vector<7x120xf32>
    %55 = arith.addf %52, %54 : vector<7x120xf32>
    %56 = vector.extract_strided_slice %23 {offsets = [1, 0], sizes = [7, 96], strides = [1, 1]} : vector<8x96xf32> to vector<7x96xf32>
    %cst_52 = arith.constant dense<0.000000e+00> : vector<7x120xf32>
    %57 = tpu.matmul %56, %7, %cst_52 {dimension_numbers = #tpu.dot_dimension_numbers<[1], [0], [0], [1], [0, 0, 1, 1], [], []>} : vector<7x96xf32>, vector<96x120xf32>, vector<7x120xf32> -> vector<7x120xf32>
    %58 = arith.addf %55, %57 : vector<7x120xf32>
    %59 = vector.extract_strided_slice %25 {offsets = [1, 0], sizes = [7, 96], strides = [1, 1]} : vector<8x96xf32> to vector<7x96xf32>
    %cst_53 = arith.constant dense<0.000000e+00> : vector<7x120xf32>
    %60 = tpu.matmul %59, %9, %cst_53 {dimension_numbers = #tpu.dot_dimension_numbers<[1], [0], [0], [1], [0, 0, 1, 1], [], []>} : vector<7x96xf32>, vector<96x120xf32>, vector<7x120xf32> -> vector<7x120xf32>
    %61 = arith.addf %58, %60 : vector<7x120xf32>
    %62 = vector.extract_strided_slice %27 {offsets = [0, 0], sizes = [7, 96], strides = [1, 1]} : vector<8x96xf32> to vector<7x96xf32>
    %cst_54 = arith.constant dense<0.000000e+00> : vector<7x120xf32>
    %63 = tpu.matmul %62, %1, %cst_54 {dimension_numbers = #tpu.dot_dimension_numbers<[1], [0], [0], [1], [0, 0, 1, 1], [], []>} : vector<7x96xf32>, vector<96x120xf32>, vector<7x120xf32> -> vector<7x120xf32>
    %64 = vector.broadcast %20 : vector<1x120xf32> to vector<7x120xf32>
    %65 = arith.addf %64, %63 : vector<7x120xf32>
    %66 = vector.extract_strided_slice %29 {offsets = [0, 0], sizes = [7, 96], strides = [1, 1]} : vector<8x96xf32> to vector<7x96xf32>
    %cst_55 = arith.constant dense<0.000000e+00> : vector<7x120xf32>
    %67 = tpu.matmul %66, %3, %cst_55 {dimension_numbers = #tpu.dot_dimension_numbers<[1], [0], [0], [1], [0, 0, 1, 1], [], []>} : vector<7x96xf32>, vector<96x120xf32>, vector<7x120xf32> -> vector<7x120xf32>
    %68 = arith.addf %65, %67 : vector<7x120xf32>
    %69 = vector.extract_strided_slice %23 {offsets = [1, 0], sizes = [7, 96], strides = [1, 1]} : vector<8x96xf32> to vector<7x96xf32>
    %cst_56 = arith.constant dense<0.000000e+00> : vector<7x120xf32>
    %70 = tpu.matmul %69, %5, %cst_56 {dimension_numbers = #tpu.dot_dimension_numbers<[1], [0], [0], [1], [0, 0, 1, 1], [], []>} : vector<7x96xf32>, vector<96x120xf32>, vector<7x120xf32> -> vector<7x120xf32>
    %71 = arith.addf %68, %70 : vector<7x120xf32>
    %72 = vector.extract_strided_slice %25 {offsets = [1, 0], sizes = [7, 96], strides = [1, 1]} : vector<8x96xf32> to vector<7x96xf32>
    %cst_57 = arith.constant dense<0.000000e+00> : vector<7x120xf32>
    %73 = tpu.matmul %72, %7, %cst_57 {dimension_numbers = #tpu.dot_dimension_numbers<[1], [0], [0], [1], [0, 0, 1, 1], [], []>} : vector<7x96xf32>, vector<96x120xf32>, vector<7x120xf32> -> vector<7x120xf32>
    %74 = arith.addf %71, %73 : vector<7x120xf32>
    %75 = vector.extract_strided_slice %27 {offsets = [1, 0], sizes = [7, 96], strides = [1, 1]} : vector<8x96xf32> to vector<7x96xf32>
    %cst_58 = arith.constant dense<0.000000e+00> : vector<7x120xf32>
    %76 = tpu.matmul %75, %9, %cst_58 {dimension_numbers = #tpu.dot_dimension_numbers<[1], [0], [0], [1], [0, 0, 1, 1], [], []>} : vector<7x96xf32>, vector<96x120xf32>, vector<7x120xf32> -> vector<7x120xf32>
    %77 = arith.addf %74, %76 : vector<7x120xf32>
    %78 = vector.extract_strided_slice %29 {offsets = [0, 0], sizes = [7, 96], strides = [1, 1]} : vector<8x96xf32> to vector<7x96xf32>
    %cst_59 = arith.constant dense<0.000000e+00> : vector<7x120xf32>
    %79 = tpu.matmul %78, %1, %cst_59 {dimension_numbers = #tpu.dot_dimension_numbers<[1], [0], [0], [1], [0, 0, 1, 1], [], []>} : vector<7x96xf32>, vector<96x120xf32>, vector<7x120xf32> -> vector<7x120xf32>
    %80 = vector.broadcast %20 : vector<1x120xf32> to vector<7x120xf32>
    %81 = arith.addf %80, %79 : vector<7x120xf32>
    %82 = vector.extract_strided_slice %23 {offsets = [1, 0], sizes = [7, 96], strides = [1, 1]} : vector<8x96xf32> to vector<7x96xf32>
    %cst_60 = arith.constant dense<0.000000e+00> : vector<7x120xf32>
    %83 = tpu.matmul %82, %3, %cst_60 {dimension_numbers = #tpu.dot_dimension_numbers<[1], [0], [0], [1], [0, 0, 1, 1], [], []>} : vector<7x96xf32>, vector<96x120xf32>, vector<7x120xf32> -> vector<7x120xf32>
    %84 = arith.addf %81, %83 : vector<7x120xf32>
    %85 = vector.extract_strided_slice %25 {offsets = [1, 0], sizes = [7, 96], strides = [1, 1]} : vector<8x96xf32> to vector<7x96xf32>
    %cst_61 = arith.constant dense<0.000000e+00> : vector<7x120xf32>
    %86 = tpu.matmul %85, %5, %cst_61 {dimension_numbers = #tpu.dot_dimension_numbers<[1], [0], [0], [1], [0, 0, 1, 1], [], []>} : vector<7x96xf32>, vector<96x120xf32>, vector<7x120xf32> -> vector<7x120xf32>
    %87 = arith.addf %84, %86 : vector<7x120xf32>
    %88 = vector.extract_strided_slice %27 {offsets = [1, 0], sizes = [7, 96], strides = [1, 1]} : vector<8x96xf32> to vector<7x96xf32>
    %cst_62 = arith.constant dense<0.000000e+00> : vector<7x120xf32>
    %89 = tpu.matmul %88, %7, %cst_62 {dimension_numbers = #tpu.dot_dimension_numbers<[1], [0], [0], [1], [0, 0, 1, 1], [], []>} : vector<7x96xf32>, vector<96x120xf32>, vector<7x120xf32> -> vector<7x120xf32>
    %90 = arith.addf %87, %89 : vector<7x120xf32>
    %91 = vector.extract_strided_slice %29 {offsets = [1, 0], sizes = [7, 96], strides = [1, 1]} : vector<8x96xf32> to vector<7x96xf32>
    %cst_63 = arith.constant dense<0.000000e+00> : vector<7x120xf32>
    %92 = tpu.matmul %91, %9, %cst_63 {dimension_numbers = #tpu.dot_dimension_numbers<[1], [0], [0], [1], [0, 0, 1, 1], [], []>} : vector<7x96xf32>, vector<96x120xf32>, vector<7x120xf32> -> vector<7x120xf32>
    %93 = arith.addf %90, %92 : vector<7x120xf32>
    %94 = arith.maximumf %45, %61 : vector<7x120xf32>
    %95 = arith.maximumf %77, %93 : vector<7x120xf32>
    %96 = vector.extract_strided_slice %94 {offsets = [0, 0], sizes = [7, 60], strides = [1, 1]} : vector<7x120xf32> to vector<7x60xf32>
    %97 = vector.extract_strided_slice %94 {offsets = [0, 60], sizes = [7, 60], strides = [1, 1]} : vector<7x120xf32> to vector<7x60xf32>
    %98 = arith.maximumf %96, %97 : vector<7x60xf32>
    %99 = vector.extract_strided_slice %95 {offsets = [0, 0], sizes = [7, 60], strides = [1, 1]} : vector<7x120xf32> to vector<7x60xf32>
    %100 = vector.extract_strided_slice %95 {offsets = [0, 60], sizes = [7, 60], strides = [1, 1]} : vector<7x120xf32> to vector<7x60xf32>
    %101 = arith.maximumf %99, %100 : vector<7x60xf32>
    %102 = vector.extract_strided_slice %98 {offsets = [0, 0], sizes = [5, 60], strides = [1, 1]} : vector<7x60xf32> to vector<5x60xf32>
    %cst_64 = arith.constant dense<0.000000e+00> : vector<5x108xf32>
    %103 = tpu.matmul %102, %11, %cst_64 {dimension_numbers = #tpu.dot_dimension_numbers<[1], [0], [0], [1], [0, 0, 1, 1], [], []>} : vector<5x60xf32>, vector<60x108xf32>, vector<5x108xf32> -> vector<5x108xf32>
    %104 = vector.broadcast %21 : vector<1x108xf32> to vector<5x108xf32>
    %105 = arith.addf %104, %103 : vector<5x108xf32>
    %106 = vector.extract_strided_slice %101 {offsets = [0, 0], sizes = [5, 60], strides = [1, 1]} : vector<7x60xf32> to vector<5x60xf32>
    %cst_65 = arith.constant dense<0.000000e+00> : vector<5x108xf32>
    %107 = tpu.matmul %106, %13, %cst_65 {dimension_numbers = #tpu.dot_dimension_numbers<[1], [0], [0], [1], [0, 0, 1, 1], [], []>} : vector<5x60xf32>, vector<60x108xf32>, vector<5x108xf32> -> vector<5x108xf32>
    %108 = arith.addf %105, %107 : vector<5x108xf32>
    %109 = vector.extract_strided_slice %98 {offsets = [1, 0], sizes = [5, 60], strides = [1, 1]} : vector<7x60xf32> to vector<5x60xf32>
    %cst_66 = arith.constant dense<0.000000e+00> : vector<5x108xf32>
    %110 = tpu.matmul %109, %15, %cst_66 {dimension_numbers = #tpu.dot_dimension_numbers<[1], [0], [0], [1], [0, 0, 1, 1], [], []>} : vector<5x60xf32>, vector<60x108xf32>, vector<5x108xf32> -> vector<5x108xf32>
    %111 = arith.addf %108, %110 : vector<5x108xf32>
    %112 = vector.extract_strided_slice %101 {offsets = [1, 0], sizes = [5, 60], strides = [1, 1]} : vector<7x60xf32> to vector<5x60xf32>
    %cst_67 = arith.constant dense<0.000000e+00> : vector<5x108xf32>
    %113 = tpu.matmul %112, %17, %cst_67 {dimension_numbers = #tpu.dot_dimension_numbers<[1], [0], [0], [1], [0, 0, 1, 1], [], []>} : vector<5x60xf32>, vector<60x108xf32>, vector<5x108xf32> -> vector<5x108xf32>
    %114 = arith.addf %111, %113 : vector<5x108xf32>
    %115 = vector.extract_strided_slice %98 {offsets = [2, 0], sizes = [5, 60], strides = [1, 1]} : vector<7x60xf32> to vector<5x60xf32>
    %cst_68 = arith.constant dense<0.000000e+00> : vector<5x108xf32>
    %116 = tpu.matmul %115, %19, %cst_68 {dimension_numbers = #tpu.dot_dimension_numbers<[1], [0], [0], [1], [0, 0, 1, 1], [], []>} : vector<5x60xf32>, vector<60x108xf32>, vector<5x108xf32> -> vector<5x108xf32>
    %117 = arith.addf %114, %116 : vector<5x108xf32>
    %118 = vector.extract_strided_slice %101 {offsets = [0, 0], sizes = [5, 60], strides = [1, 1]} : vector<7x60xf32> to vector<5x60xf32>
    %cst_69 = arith.constant dense<0.000000e+00> : vector<5x108xf32>
    %119 = tpu.matmul %118, %11, %cst_69 {dimension_numbers = #tpu.dot_dimension_numbers<[1], [0], [0], [1], [0, 0, 1, 1], [], []>} : vector<5x60xf32>, vector<60x108xf32>, vector<5x108xf32> -> vector<5x108xf32>
    %120 = vector.broadcast %21 : vector<1x108xf32> to vector<5x108xf32>
    %121 = arith.addf %120, %119 : vector<5x108xf32>
    %122 = vector.extract_strided_slice %98 {offsets = [1, 0], sizes = [5, 60], strides = [1, 1]} : vector<7x60xf32> to vector<5x60xf32>
    %cst_70 = arith.constant dense<0.000000e+00> : vector<5x108xf32>
    %123 = tpu.matmul %122, %13, %cst_70 {dimension_numbers = #tpu.dot_dimension_numbers<[1], [0], [0], [1], [0, 0, 1, 1], [], []>} : vector<5x60xf32>, vector<60x108xf32>, vector<5x108xf32> -> vector<5x108xf32>
    %124 = arith.addf %121, %123 : vector<5x108xf32>
    %125 = vector.extract_strided_slice %101 {offsets = [1, 0], sizes = [5, 60], strides = [1, 1]} : vector<7x60xf32> to vector<5x60xf32>
    %cst_71 = arith.constant dense<0.000000e+00> : vector<5x108xf32>
    %126 = tpu.matmul %125, %15, %cst_71 {dimension_numbers = #tpu.dot_dimension_numbers<[1], [0], [0], [1], [0, 0, 1, 1], [], []>} : vector<5x60xf32>, vector<60x108xf32>, vector<5x108xf32> -> vector<5x108xf32>
    %127 = arith.addf %124, %126 : vector<5x108xf32>
    %128 = vector.extract_strided_slice %98 {offsets = [2, 0], sizes = [5, 60], strides = [1, 1]} : vector<7x60xf32> to vector<5x60xf32>
    %cst_72 = arith.constant dense<0.000000e+00> : vector<5x108xf32>
    %129 = tpu.matmul %128, %17, %cst_72 {dimension_numbers = #tpu.dot_dimension_numbers<[1], [0], [0], [1], [0, 0, 1, 1], [], []>} : vector<5x60xf32>, vector<60x108xf32>, vector<5x108xf32> -> vector<5x108xf32>
    %130 = arith.addf %127, %129 : vector<5x108xf32>
    %131 = vector.extract_strided_slice %101 {offsets = [2, 0], sizes = [5, 60], strides = [1, 1]} : vector<7x60xf32> to vector<5x60xf32>
    %cst_73 = arith.constant dense<0.000000e+00> : vector<5x108xf32>
    %132 = tpu.matmul %131, %19, %cst_73 {dimension_numbers = #tpu.dot_dimension_numbers<[1], [0], [0], [1], [0, 0, 1, 1], [], []>} : vector<5x60xf32>, vector<60x108xf32>, vector<5x108xf32> -> vector<5x108xf32>
    %133 = arith.addf %130, %132 : vector<5x108xf32>
    %134 = arith.maximumf %117, %133 : vector<5x108xf32>
    %135 = vector.extract_strided_slice %134 {offsets = [0, 0], sizes = [5, 54], strides = [1, 1]} : vector<5x108xf32> to vector<5x54xf32>
    %136 = vector.extract_strided_slice %134 {offsets = [0, 54], sizes = [5, 54], strides = [1, 1]} : vector<5x108xf32> to vector<5x54xf32>
    %137 = arith.maximumf %135, %136 : vector<5x54xf32>
    %138 = vector.extract_strided_slice %137 {offsets = [0, 0], sizes = [1, 54], strides = [1, 1]} : vector<5x54xf32> to vector<1x54xf32>
    %139 = vector.extract_strided_slice %137 {offsets = [1, 0], sizes = [1, 54], strides = [1, 1]} : vector<5x54xf32> to vector<1x54xf32>
    %140 = vector.extract_strided_slice %137 {offsets = [2, 0], sizes = [1, 54], strides = [1, 1]} : vector<5x54xf32> to vector<1x54xf32>
    %141 = vector.extract_strided_slice %137 {offsets = [3, 0], sizes = [1, 54], strides = [1, 1]} : vector<5x54xf32> to vector<1x54xf32>
    %142 = vector.extract_strided_slice %137 {offsets = [4, 0], sizes = [1, 54], strides = [1, 1]} : vector<5x54xf32> to vector<1x54xf32>
    %143 = tpu.concatenate %138, %139, %140, %141, %142 in 1 : vector<1x54xf32>, vector<1x54xf32>, vector<1x54xf32>, vector<1x54xf32>, vector<1x54xf32> -> vector<1x270xf32>
    %c1_74 = arith.constant 1 : index
    %c0_75 = arith.constant 0 : index
    %c0_76 = arith.constant 0 : index
    %c0_77 = arith.constant 0 : index
    %144 = vector.load %arg0[%c1_74, %c0_75, %c0_76, %c0_77] : memref<2x4x8x96xf32, #tpu.memory_space<vmem>>, vector<1x1x8x96xf32>
    %145 = vector.shape_cast %144 : vector<1x1x8x96xf32> to vector<8x96xf32>
    %c1_78 = arith.constant 1 : index
    %c1_79 = arith.constant 1 : index
    %c0_80 = arith.constant 0 : index
    %c0_81 = arith.constant 0 : index
    %146 = vector.load %arg0[%c1_78, %c1_79, %c0_80, %c0_81] : memref<2x4x8x96xf32, #tpu.memory_space<vmem>>, vector<1x1x8x96xf32>
    %147 = vector.shape_cast %146 : vector<1x1x8x96xf32> to vector<8x96xf32>
    %c1_82 = arith.constant 1 : index
    %c2_83 = arith.constant 2 : index
    %c0_84 = arith.constant 0 : index
    %c0_85 = arith.constant 0 : index
    %148 = vector.load %arg0[%c1_82, %c2_83, %c0_84, %c0_85] : memref<2x4x8x96xf32, #tpu.memory_space<vmem>>, vector<1x1x8x96xf32>
    %149 = vector.shape_cast %148 : vector<1x1x8x96xf32> to vector<8x96xf32>
    %c1_86 = arith.constant 1 : index
    %c3_87 = arith.constant 3 : index
    %c0_88 = arith.constant 0 : index
    %c0_89 = arith.constant 0 : index
    %150 = vector.load %arg0[%c1_86, %c3_87, %c0_88, %c0_89] : memref<2x4x8x96xf32, #tpu.memory_space<vmem>>, vector<1x1x8x96xf32>
    %151 = vector.shape_cast %150 : vector<1x1x8x96xf32> to vector<8x96xf32>
    %152 = vector.extract_strided_slice %145 {offsets = [0, 0], sizes = [7, 96], strides = [1, 1]} : vector<8x96xf32> to vector<7x96xf32>
    %cst_90 = arith.constant dense<0.000000e+00> : vector<7x120xf32>
    %153 = tpu.matmul %152, %1, %cst_90 {dimension_numbers = #tpu.dot_dimension_numbers<[1], [0], [0], [1], [0, 0, 1, 1], [], []>} : vector<7x96xf32>, vector<96x120xf32>, vector<7x120xf32> -> vector<7x120xf32>
    %154 = vector.broadcast %20 : vector<1x120xf32> to vector<7x120xf32>
    %155 = arith.addf %154, %153 : vector<7x120xf32>
    %156 = vector.extract_strided_slice %147 {offsets = [0, 0], sizes = [7, 96], strides = [1, 1]} : vector<8x96xf32> to vector<7x96xf32>
    %cst_91 = arith.constant dense<0.000000e+00> : vector<7x120xf32>
    %157 = tpu.matmul %156, %3, %cst_91 {dimension_numbers = #tpu.dot_dimension_numbers<[1], [0], [0], [1], [0, 0, 1, 1], [], []>} : vector<7x96xf32>, vector<96x120xf32>, vector<7x120xf32> -> vector<7x120xf32>
    %158 = arith.addf %155, %157 : vector<7x120xf32>
    %159 = vector.extract_strided_slice %149 {offsets = [0, 0], sizes = [7, 96], strides = [1, 1]} : vector<8x96xf32> to vector<7x96xf32>
    %cst_92 = arith.constant dense<0.000000e+00> : vector<7x120xf32>
    %160 = tpu.matmul %159, %5, %cst_92 {dimension_numbers = #tpu.dot_dimension_numbers<[1], [0], [0], [1], [0, 0, 1, 1], [], []>} : vector<7x96xf32>, vector<96x120xf32>, vector<7x120xf32> -> vector<7x120xf32>
    %161 = arith.addf %158, %160 : vector<7x120xf32>
    %162 = vector.extract_strided_slice %151 {offsets = [0, 0], sizes = [7, 96], strides = [1, 1]} : vector<8x96xf32> to vector<7x96xf32>
    %cst_93 = arith.constant dense<0.000000e+00> : vector<7x120xf32>
    %163 = tpu.matmul %162, %7, %cst_93 {dimension_numbers = #tpu.dot_dimension_numbers<[1], [0], [0], [1], [0, 0, 1, 1], [], []>} : vector<7x96xf32>, vector<96x120xf32>, vector<7x120xf32> -> vector<7x120xf32>
    %164 = arith.addf %161, %163 : vector<7x120xf32>
    %165 = vector.extract_strided_slice %145 {offsets = [1, 0], sizes = [7, 96], strides = [1, 1]} : vector<8x96xf32> to vector<7x96xf32>
    %cst_94 = arith.constant dense<0.000000e+00> : vector<7x120xf32>
    %166 = tpu.matmul %165, %9, %cst_94 {dimension_numbers = #tpu.dot_dimension_numbers<[1], [0], [0], [1], [0, 0, 1, 1], [], []>} : vector<7x96xf32>, vector<96x120xf32>, vector<7x120xf32> -> vector<7x120xf32>
    %167 = arith.addf %164, %166 : vector<7x120xf32>
    %168 = vector.extract_strided_slice %147 {offsets = [0, 0], sizes = [7, 96], strides = [1, 1]} : vector<8x96xf32> to vector<7x96xf32>
    %cst_95 = arith.constant dense<0.000000e+00> : vector<7x120xf32>
    %169 = tpu.matmul %168, %1, %cst_95 {dimension_numbers = #tpu.dot_dimension_numbers<[1], [0], [0], [1], [0, 0, 1, 1], [], []>} : vector<7x96xf32>, vector<96x120xf32>, vector<7x120xf32> -> vector<7x120xf32>
    %170 = vector.broadcast %20 : vector<1x120xf32> to vector<7x120xf32>
    %171 = arith.addf %170, %169 : vector<7x120xf32>
    %172 = vector.extract_strided_slice %149 {offsets = [0, 0], sizes = [7, 96], strides = [1, 1]} : vector<8x96xf32> to vector<7x96xf32>
    %cst_96 = arith.constant dense<0.000000e+00> : vector<7x120xf32>
    %173 = tpu.matmul %172, %3, %cst_96 {dimension_numbers = #tpu.dot_dimension_numbers<[1], [0], [0], [1], [0, 0, 1, 1], [], []>} : vector<7x96xf32>, vector<96x120xf32>, vector<7x120xf32> -> vector<7x120xf32>
    %174 = arith.addf %171, %173 : vector<7x120xf32>
    %175 = vector.extract_strided_slice %151 {offsets = [0, 0], sizes = [7, 96], strides = [1, 1]} : vector<8x96xf32> to vector<7x96xf32>
    %cst_97 = arith.constant dense<0.000000e+00> : vector<7x120xf32>
    %176 = tpu.matmul %175, %5, %cst_97 {dimension_numbers = #tpu.dot_dimension_numbers<[1], [0], [0], [1], [0, 0, 1, 1], [], []>} : vector<7x96xf32>, vector<96x120xf32>, vector<7x120xf32> -> vector<7x120xf32>
    %177 = arith.addf %174, %176 : vector<7x120xf32>
    %178 = vector.extract_strided_slice %145 {offsets = [1, 0], sizes = [7, 96], strides = [1, 1]} : vector<8x96xf32> to vector<7x96xf32>
    %cst_98 = arith.constant dense<0.000000e+00> : vector<7x120xf32>
    %179 = tpu.matmul %178, %7, %cst_98 {dimension_numbers = #tpu.dot_dimension_numbers<[1], [0], [0], [1], [0, 0, 1, 1], [], []>} : vector<7x96xf32>, vector<96x120xf32>, vector<7x120xf32> -> vector<7x120xf32>
    %180 = arith.addf %177, %179 : vector<7x120xf32>
    %181 = vector.extract_strided_slice %147 {offsets = [1, 0], sizes = [7, 96], strides = [1, 1]} : vector<8x96xf32> to vector<7x96xf32>
    %cst_99 = arith.constant dense<0.000000e+00> : vector<7x120xf32>
    %182 = tpu.matmul %181, %9, %cst_99 {dimension_numbers = #tpu.dot_dimension_numbers<[1], [0], [0], [1], [0, 0, 1, 1], [], []>} : vector<7x96xf32>, vector<96x120xf32>, vector<7x120xf32> -> vector<7x120xf32>
    %183 = arith.addf %180, %182 : vector<7x120xf32>
    %184 = vector.extract_strided_slice %149 {offsets = [0, 0], sizes = [7, 96], strides = [1, 1]} : vector<8x96xf32> to vector<7x96xf32>
    %cst_100 = arith.constant dense<0.000000e+00> : vector<7x120xf32>
    %185 = tpu.matmul %184, %1, %cst_100 {dimension_numbers = #tpu.dot_dimension_numbers<[1], [0], [0], [1], [0, 0, 1, 1], [], []>} : vector<7x96xf32>, vector<96x120xf32>, vector<7x120xf32> -> vector<7x120xf32>
    %186 = vector.broadcast %20 : vector<1x120xf32> to vector<7x120xf32>
    %187 = arith.addf %186, %185 : vector<7x120xf32>
    %188 = vector.extract_strided_slice %151 {offsets = [0, 0], sizes = [7, 96], strides = [1, 1]} : vector<8x96xf32> to vector<7x96xf32>
    %cst_101 = arith.constant dense<0.000000e+00> : vector<7x120xf32>
    %189 = tpu.matmul %188, %3, %cst_101 {dimension_numbers = #tpu.dot_dimension_numbers<[1], [0], [0], [1], [0, 0, 1, 1], [], []>} : vector<7x96xf32>, vector<96x120xf32>, vector<7x120xf32> -> vector<7x120xf32>
    %190 = arith.addf %187, %189 : vector<7x120xf32>
    %191 = vector.extract_strided_slice %145 {offsets = [1, 0], sizes = [7, 96], strides = [1, 1]} : vector<8x96xf32> to vector<7x96xf32>
    %cst_102 = arith.constant dense<0.000000e+00> : vector<7x120xf32>
    %192 = tpu.matmul %191, %5, %cst_102 {dimension_numbers = #tpu.dot_dimension_numbers<[1], [0], [0], [1], [0, 0, 1, 1], [], []>} : vector<7x96xf32>, vector<96x120xf32>, vector<7x120xf32> -> vector<7x120xf32>
    %193 = arith.addf %190, %192 : vector<7x120xf32>
    %194 = vector.extract_strided_slice %147 {offsets = [1, 0], sizes = [7, 96], strides = [1, 1]} : vector<8x96xf32> to vector<7x96xf32>
    %cst_103 = arith.constant dense<0.000000e+00> : vector<7x120xf32>
    %195 = tpu.matmul %194, %7, %cst_103 {dimension_numbers = #tpu.dot_dimension_numbers<[1], [0], [0], [1], [0, 0, 1, 1], [], []>} : vector<7x96xf32>, vector<96x120xf32>, vector<7x120xf32> -> vector<7x120xf32>
    %196 = arith.addf %193, %195 : vector<7x120xf32>
    %197 = vector.extract_strided_slice %149 {offsets = [1, 0], sizes = [7, 96], strides = [1, 1]} : vector<8x96xf32> to vector<7x96xf32>
    %cst_104 = arith.constant dense<0.000000e+00> : vector<7x120xf32>
    %198 = tpu.matmul %197, %9, %cst_104 {dimension_numbers = #tpu.dot_dimension_numbers<[1], [0], [0], [1], [0, 0, 1, 1], [], []>} : vector<7x96xf32>, vector<96x120xf32>, vector<7x120xf32> -> vector<7x120xf32>
    %199 = arith.addf %196, %198 : vector<7x120xf32>
    %200 = vector.extract_strided_slice %151 {offsets = [0, 0], sizes = [7, 96], strides = [1, 1]} : vector<8x96xf32> to vector<7x96xf32>
    %cst_105 = arith.constant dense<0.000000e+00> : vector<7x120xf32>
    %201 = tpu.matmul %200, %1, %cst_105 {dimension_numbers = #tpu.dot_dimension_numbers<[1], [0], [0], [1], [0, 0, 1, 1], [], []>} : vector<7x96xf32>, vector<96x120xf32>, vector<7x120xf32> -> vector<7x120xf32>
    %202 = vector.broadcast %20 : vector<1x120xf32> to vector<7x120xf32>
    %203 = arith.addf %202, %201 : vector<7x120xf32>
    %204 = vector.extract_strided_slice %145 {offsets = [1, 0], sizes = [7, 96], strides = [1, 1]} : vector<8x96xf32> to vector<7x96xf32>
    %cst_106 = arith.constant dense<0.000000e+00> : vector<7x120xf32>
    %205 = tpu.matmul %204, %3, %cst_106 {dimension_numbers = #tpu.dot_dimension_numbers<[1], [0], [0], [1], [0, 0, 1, 1], [], []>} : vector<7x96xf32>, vector<96x120xf32>, vector<7x120xf32> -> vector<7x120xf32>
    %206 = arith.addf %203, %205 : vector<7x120xf32>
    %207 = vector.extract_strided_slice %147 {offsets = [1, 0], sizes = [7, 96], strides = [1, 1]} : vector<8x96xf32> to vector<7x96xf32>
    %cst_107 = arith.constant dense<0.000000e+00> : vector<7x120xf32>
    %208 = tpu.matmul %207, %5, %cst_107 {dimension_numbers = #tpu.dot_dimension_numbers<[1], [0], [0], [1], [0, 0, 1, 1], [], []>} : vector<7x96xf32>, vector<96x120xf32>, vector<7x120xf32> -> vector<7x120xf32>
    %209 = arith.addf %206, %208 : vector<7x120xf32>
    %210 = vector.extract_strided_slice %149 {offsets = [1, 0], sizes = [7, 96], strides = [1, 1]} : vector<8x96xf32> to vector<7x96xf32>
    %cst_108 = arith.constant dense<0.000000e+00> : vector<7x120xf32>
    %211 = tpu.matmul %210, %7, %cst_108 {dimension_numbers = #tpu.dot_dimension_numbers<[1], [0], [0], [1], [0, 0, 1, 1], [], []>} : vector<7x96xf32>, vector<96x120xf32>, vector<7x120xf32> -> vector<7x120xf32>
    %212 = arith.addf %209, %211 : vector<7x120xf32>
    %213 = vector.extract_strided_slice %151 {offsets = [1, 0], sizes = [7, 96], strides = [1, 1]} : vector<8x96xf32> to vector<7x96xf32>
    %cst_109 = arith.constant dense<0.000000e+00> : vector<7x120xf32>
    %214 = tpu.matmul %213, %9, %cst_109 {dimension_numbers = #tpu.dot_dimension_numbers<[1], [0], [0], [1], [0, 0, 1, 1], [], []>} : vector<7x96xf32>, vector<96x120xf32>, vector<7x120xf32> -> vector<7x120xf32>
    %215 = arith.addf %212, %214 : vector<7x120xf32>
    %216 = arith.maximumf %167, %183 : vector<7x120xf32>
    %217 = arith.maximumf %199, %215 : vector<7x120xf32>
    %218 = vector.extract_strided_slice %216 {offsets = [0, 0], sizes = [7, 60], strides = [1, 1]} : vector<7x120xf32> to vector<7x60xf32>
    %219 = vector.extract_strided_slice %216 {offsets = [0, 60], sizes = [7, 60], strides = [1, 1]} : vector<7x120xf32> to vector<7x60xf32>
    %220 = arith.maximumf %218, %219 : vector<7x60xf32>
    %221 = vector.extract_strided_slice %217 {offsets = [0, 0], sizes = [7, 60], strides = [1, 1]} : vector<7x120xf32> to vector<7x60xf32>
    %222 = vector.extract_strided_slice %217 {offsets = [0, 60], sizes = [7, 60], strides = [1, 1]} : vector<7x120xf32> to vector<7x60xf32>
    %223 = arith.maximumf %221, %222 : vector<7x60xf32>
    %224 = vector.extract_strided_slice %220 {offsets = [0, 0], sizes = [5, 60], strides = [1, 1]} : vector<7x60xf32> to vector<5x60xf32>
    %cst_110 = arith.constant dense<0.000000e+00> : vector<5x108xf32>
    %225 = tpu.matmul %224, %11, %cst_110 {dimension_numbers = #tpu.dot_dimension_numbers<[1], [0], [0], [1], [0, 0, 1, 1], [], []>} : vector<5x60xf32>, vector<60x108xf32>, vector<5x108xf32> -> vector<5x108xf32>
    %226 = vector.broadcast %21 : vector<1x108xf32> to vector<5x108xf32>
    %227 = arith.addf %226, %225 : vector<5x108xf32>
    %228 = vector.extract_strided_slice %223 {offsets = [0, 0], sizes = [5, 60], strides = [1, 1]} : vector<7x60xf32> to vector<5x60xf32>
    %cst_111 = arith.constant dense<0.000000e+00> : vector<5x108xf32>
    %229 = tpu.matmul %228, %13, %cst_111 {dimension_numbers = #tpu.dot_dimension_numbers<[1], [0], [0], [1], [0, 0, 1, 1], [], []>} : vector<5x60xf32>, vector<60x108xf32>, vector<5x108xf32> -> vector<5x108xf32>
    %230 = arith.addf %227, %229 : vector<5x108xf32>
    %231 = vector.extract_strided_slice %220 {offsets = [1, 0], sizes = [5, 60], strides = [1, 1]} : vector<7x60xf32> to vector<5x60xf32>
    %cst_112 = arith.constant dense<0.000000e+00> : vector<5x108xf32>
    %232 = tpu.matmul %231, %15, %cst_112 {dimension_numbers = #tpu.dot_dimension_numbers<[1], [0], [0], [1], [0, 0, 1, 1], [], []>} : vector<5x60xf32>, vector<60x108xf32>, vector<5x108xf32> -> vector<5x108xf32>
    %233 = arith.addf %230, %232 : vector<5x108xf32>
    %234 = vector.extract_strided_slice %223 {offsets = [1, 0], sizes = [5, 60], strides = [1, 1]} : vector<7x60xf32> to vector<5x60xf32>
    %cst_113 = arith.constant dense<0.000000e+00> : vector<5x108xf32>
    %235 = tpu.matmul %234, %17, %cst_113 {dimension_numbers = #tpu.dot_dimension_numbers<[1], [0], [0], [1], [0, 0, 1, 1], [], []>} : vector<5x60xf32>, vector<60x108xf32>, vector<5x108xf32> -> vector<5x108xf32>
    %236 = arith.addf %233, %235 : vector<5x108xf32>
    %237 = vector.extract_strided_slice %220 {offsets = [2, 0], sizes = [5, 60], strides = [1, 1]} : vector<7x60xf32> to vector<5x60xf32>
    %cst_114 = arith.constant dense<0.000000e+00> : vector<5x108xf32>
    %238 = tpu.matmul %237, %19, %cst_114 {dimension_numbers = #tpu.dot_dimension_numbers<[1], [0], [0], [1], [0, 0, 1, 1], [], []>} : vector<5x60xf32>, vector<60x108xf32>, vector<5x108xf32> -> vector<5x108xf32>
    %239 = arith.addf %236, %238 : vector<5x108xf32>
    %240 = vector.extract_strided_slice %223 {offsets = [0, 0], sizes = [5, 60], strides = [1, 1]} : vector<7x60xf32> to vector<5x60xf32>
    %cst_115 = arith.constant dense<0.000000e+00> : vector<5x108xf32>
    %241 = tpu.matmul %240, %11, %cst_115 {dimension_numbers = #tpu.dot_dimension_numbers<[1], [0], [0], [1], [0, 0, 1, 1], [], []>} : vector<5x60xf32>, vector<60x108xf32>, vector<5x108xf32> -> vector<5x108xf32>
    %242 = vector.broadcast %21 : vector<1x108xf32> to vector<5x108xf32>
    %243 = arith.addf %242, %241 : vector<5x108xf32>
    %244 = vector.extract_strided_slice %220 {offsets = [1, 0], sizes = [5, 60], strides = [1, 1]} : vector<7x60xf32> to vector<5x60xf32>
    %cst_116 = arith.constant dense<0.000000e+00> : vector<5x108xf32>
    %245 = tpu.matmul %244, %13, %cst_116 {dimension_numbers = #tpu.dot_dimension_numbers<[1], [0], [0], [1], [0, 0, 1, 1], [], []>} : vector<5x60xf32>, vector<60x108xf32>, vector<5x108xf32> -> vector<5x108xf32>
    %246 = arith.addf %243, %245 : vector<5x108xf32>
    %247 = vector.extract_strided_slice %223 {offsets = [1, 0], sizes = [5, 60], strides = [1, 1]} : vector<7x60xf32> to vector<5x60xf32>
    %cst_117 = arith.constant dense<0.000000e+00> : vector<5x108xf32>
    %248 = tpu.matmul %247, %15, %cst_117 {dimension_numbers = #tpu.dot_dimension_numbers<[1], [0], [0], [1], [0, 0, 1, 1], [], []>} : vector<5x60xf32>, vector<60x108xf32>, vector<5x108xf32> -> vector<5x108xf32>
    %249 = arith.addf %246, %248 : vector<5x108xf32>
    %250 = vector.extract_strided_slice %220 {offsets = [2, 0], sizes = [5, 60], strides = [1, 1]} : vector<7x60xf32> to vector<5x60xf32>
    %cst_118 = arith.constant dense<0.000000e+00> : vector<5x108xf32>
    %251 = tpu.matmul %250, %17, %cst_118 {dimension_numbers = #tpu.dot_dimension_numbers<[1], [0], [0], [1], [0, 0, 1, 1], [], []>} : vector<5x60xf32>, vector<60x108xf32>, vector<5x108xf32> -> vector<5x108xf32>
    %252 = arith.addf %249, %251 : vector<5x108xf32>
    %253 = vector.extract_strided_slice %223 {offsets = [2, 0], sizes = [5, 60], strides = [1, 1]} : vector<7x60xf32> to vector<5x60xf32>
    %cst_119 = arith.constant dense<0.000000e+00> : vector<5x108xf32>
    %254 = tpu.matmul %253, %19, %cst_119 {dimension_numbers = #tpu.dot_dimension_numbers<[1], [0], [0], [1], [0, 0, 1, 1], [], []>} : vector<5x60xf32>, vector<60x108xf32>, vector<5x108xf32> -> vector<5x108xf32>
    %255 = arith.addf %252, %254 : vector<5x108xf32>
    %256 = arith.maximumf %239, %255 : vector<5x108xf32>
    %257 = vector.extract_strided_slice %256 {offsets = [0, 0], sizes = [5, 54], strides = [1, 1]} : vector<5x108xf32> to vector<5x54xf32>
    %258 = vector.extract_strided_slice %256 {offsets = [0, 54], sizes = [5, 54], strides = [1, 1]} : vector<5x108xf32> to vector<5x54xf32>
    %259 = arith.maximumf %257, %258 : vector<5x54xf32>
    %260 = vector.extract_strided_slice %259 {offsets = [0, 0], sizes = [1, 54], strides = [1, 1]} : vector<5x54xf32> to vector<1x54xf32>
    %261 = vector.extract_strided_slice %259 {offsets = [1, 0], sizes = [1, 54], strides = [1, 1]} : vector<5x54xf32> to vector<1x54xf32>
    %262 = vector.extract_strided_slice %259 {offsets = [2, 0], sizes = [1, 54], strides = [1, 1]} : vector<5x54xf32> to vector<1x54xf32>
    %263 = vector.extract_strided_slice %259 {offsets = [3, 0], sizes = [1, 54], strides = [1, 1]} : vector<5x54xf32> to vector<1x54xf32>
    %264 = vector.extract_strided_slice %259 {offsets = [4, 0], sizes = [1, 54], strides = [1, 1]} : vector<5x54xf32> to vector<1x54xf32>
    %265 = tpu.concatenate %260, %261, %262, %263, %264 in 1 : vector<1x54xf32>, vector<1x54xf32>, vector<1x54xf32>, vector<1x54xf32>, vector<1x54xf32> -> vector<1x270xf32>
    %266 = tpu.concatenate %143, %265 in 0 : vector<1x270xf32>, vector<1x270xf32> -> vector<2x270xf32>
    %c0_120 = arith.constant 0 : index
    %c0_121 = arith.constant 0 : index
    %267 = vector.load %arg5[%c0_120, %c0_121] : memref<270x200xf32, #tpu.memory_space<vmem>>, vector<270x200xf32>
    %cst_122 = arith.constant dense<0.000000e+00> : vector<2x200xf32>
    %268 = tpu.matmul %266, %267, %cst_122 {dimension_numbers = #tpu.dot_dimension_numbers<[1], [0], [0], [1], [0, 0, 1, 1], [], []>} : vector<2x270xf32>, vector<270x200xf32>, vector<2x200xf32> -> vector<2x200xf32>
    %c0_123 = arith.constant 0 : index
    %c0_124 = arith.constant 0 : index
    %269 = vector.load %arg6[%c0_123, %c0_124] : memref<1x200xf32, #tpu.memory_space<vmem>>, vector<1x200xf32>
    %270 = vector.broadcast %269 : vector<1x200xf32> to vector<2x200xf32>
    %271 = arith.addf %268, %270 : vector<2x200xf32>
    %c0_125 = arith.constant 0 : index
    %c0_126 = arith.constant 0 : index
    %272 = vector.load %arg7[%c0_125, %c0_126] : memref<200x100xf32, #tpu.memory_space<vmem>>, vector<200x100xf32>
    %cst_127 = arith.constant dense<0.000000e+00> : vector<2x100xf32>
    %273 = tpu.matmul %271, %272, %cst_127 {dimension_numbers = #tpu.dot_dimension_numbers<[1], [0], [0], [1], [0, 0, 1, 1], [], []>} : vector<2x200xf32>, vector<200x100xf32>, vector<2x100xf32> -> vector<2x100xf32>
    %c0_128 = arith.constant 0 : index
    %c0_129 = arith.constant 0 : index
    %274 = vector.load %arg8[%c0_128, %c0_129] : memref<1x100xf32, #tpu.memory_space<vmem>>, vector<1x100xf32>
    %275 = vector.broadcast %274 : vector<1x100xf32> to vector<2x100xf32>
    %276 = arith.addf %273, %275 : vector<2x100xf32>
    %c0_130 = arith.constant 0 : index
    %c0_131 = arith.constant 0 : index
    %277 = vector.load %arg9[%c0_130, %c0_131] : memref<100x40xf32, #tpu.memory_space<vmem>>, vector<100x40xf32>
    %cst_132 = arith.constant dense<0.000000e+00> : vector<2x40xf32>
    %278 = tpu.matmul %276, %277, %cst_132 {dimension_numbers = #tpu.dot_dimension_numbers<[1], [0], [0], [1], [0, 0, 1, 1], [], []>} : vector<2x100xf32>, vector<100x40xf32>, vector<2x40xf32> -> vector<2x40xf32>
    %c0_133 = arith.constant 0 : index
    %c0_134 = arith.constant 0 : index
    %279 = vector.load %arg10[%c0_133, %c0_134] : memref<1x40xf32, #tpu.memory_space<vmem>>, vector<1x40xf32>
    %280 = vector.broadcast %279 : vector<1x40xf32> to vector<2x40xf32>
    %281 = arith.addf %278, %280 : vector<2x40xf32>
    %c0_135 = arith.constant 0 : index
    %c0_136 = arith.constant 0 : index
    %282 = vector.load %arg11[%c0_135, %c0_136] : memref<40x8xf32, #tpu.memory_space<vmem>>, vector<40x8xf32>
    %cst_137 = arith.constant dense<0.000000e+00> : vector<2x8xf32>
    %283 = tpu.matmul %281, %282, %cst_137 {dimension_numbers = #tpu.dot_dimension_numbers<[1], [0], [0], [1], [0, 0, 1, 1], [], []>} : vector<2x40xf32>, vector<40x8xf32>, vector<2x8xf32> -> vector<2x8xf32>
    %c0_138 = arith.constant 0 : index
    %c0_139 = arith.constant 0 : index
    %284 = vector.load %arg12[%c0_138, %c0_139] : memref<1x8xf32, #tpu.memory_space<vmem>>, vector<1x8xf32>
    %285 = vector.broadcast %284 : vector<1x8xf32> to vector<2x8xf32>
    %286 = arith.addf %283, %285 : vector<2x8xf32>
    %c0_140 = arith.constant 0 : index
    %c0_141 = arith.constant 0 : index
    %287 = vector.load %arg13[%c0_140, %c0_141] : memref<2x8xf32, #tpu.memory_space<vmem>>, vector<2x8xf32>
    tpu.vector_store %arg13[%c0_140, %c0_141], %286 {strides = array<i32>} : memref<2x8xf32, #tpu.memory_space<vmem>>, vector<2x8xf32>,
    return
  }
}

</mosaic_0001>

<bundles_post_ra>
// kernel: dqn_forward.1
= control target key start
LH: loop header
LB: loop body
LE: loop exit
PB: predicated region body
PF: predicated region fallthrough
CT: control target
= control target key end

     0   :  { %18 = vsyncpa [#allocation3], 0  ;;  %s10732_s0 = inlined_call_operand.vmem [shape: f32[2,4,8,96], index: 0, kind: input, shape index: {}]   ;;  %s10733_s1 = inlined_call_operand.vmem [shape: f32[5,96,120], index: 1, kind: input, shape index: {}]   ;;  %s10734_s2 = inlined_call_operand.vmem [shape: f32[1,120], index: 2, kind: input, shape index: {}]   ;;  %s10735_s3 = inlined_call_operand.hbm [shape: f32[5,60,108], index: 3, kind: input, shape index: {}]   ;;  %s10736_s4 = inlined_call_operand.vmem [shape: f32[1,108], index: 4, kind: input, shape index: {}]   ;;  %s10737_s5 = inlined_call_operand.vmem [shape: f32[270,200], index: 5, kind: input, shape index: {}]   ;;  %s10738_s6 = inlined_call_operand.vmem [shape: f32[1,200], index: 6, kind: input, shape index: {}]   ;;  %s10739_s7 = inlined_call_operand.hbm [shape: f32[200,100], index: 7, kind: input, shape index: {}]   ;;  %s10740_s8 = inlined_call_operand.vmem [shape: f32[1,100], index: 8, kind: input, shape index: {}]   ;;  %s10741_s9 = inlined_call_operand.vmem [shape: f32[100,40], index: 9, kind: input, shape index: {}]   ;;  %s10742_s10 = inlined_call_operand.vmem [shape: f32[1,40], index: 10, kind: input, shape index: {}]   ;;  %s10743_s11 = inlined_call_operand.vmem [shape: f32[40,8], index: 11, kind: input, shape index: {}]   ;;  %s10744_s12 = inlined_call_operand.vmem [shape: f32[1,8], index: 12, kind: input, shape index: {}]   ;;  %s10745_s13 = inlined_call_operand.hbm [shape: f32[2,8], index: 13, kind: output, shape index: {}]  }
   0x1   :  { %19 = vsyncpa [#allocation6], 0 }
   0x2   :  { %20 = vsyncpa [#allocation4], 0  ;;  %s7806_s25 = smov [#allocation2]  }
   0x3   :  { %s32_s26 = sshll.u32 %s7806_s25, 4  ;;  %s33_s26 = int_to_ptr.vmem [resolvable:$true] %s32_s26 }
   0x4   :  { %s7748_s27 = scalar_lea.vmem %s33_s26, 5120  ;;  %p7753_p1 = scmp.lt.s32.totalorder %s33_s26, %s33_s26 }
   0x5   :  { %p7749_p0 = scmp.ne.s32.totalorder %s33_s26, %s7748_s27  ;;  %p7754_p2 = scmp.lt.s32.totalorder %s7748_s27, %s7748_s27 }
   0x7   :  { %p7755_p3 = por %p7754_p2, %p7753_p1 }
   0x9   :  { %p7756_p4 = pnand %p7755_p3, %p7749_p0 }
   0xb   :  { %7759 = shalt.err (!%p7756_p4)
}
   0xc   :  { %s7807_s28 = smov 128   ;;  %s7808_s29 = smov 8  }
   0xd   :  { %38 = dma.hbm_to_vmem [thread:$0]  %s10735_s3, 5120, %s33_s26, [#allocation3], %s7807_s28, %s7807_s28, %s7808_s29  }
   0xe   :  { %s7809_s15 = smov [#allocation5]  }
   0xf   :  { %s50_s16 = sshll.u32 %s7809_s15, 4  ;;  %s51_s16 = int_to_ptr.vmem [resolvable:$true] %s50_s16 }
  0x10   :  { %s7768_s17 = scalar_lea.vmem %s51_s16, 3200  ;;  %p7773_p6 = scmp.lt.s32.totalorder %s51_s16, %s51_s16 }
  0x11   :  { %p7769_p5 = scmp.ne.s32.totalorder %s51_s16, %s7768_s17  ;;  %p7774_p7 = scmp.lt.s32.totalorder %s7768_s17, %s7768_s17 }
  0x13   :  { %p7775_p8 = por %p7774_p7, %p7773_p6 }
  0x15   :  { %p7776_p9 = pnand %p7775_p8, %p7769_p5 }
  0x17   :  { %7779 = shalt.err (!%p7776_p9)
}
  0x18   :  { %56 = dma.hbm_to_vmem [thread:$0]  %s10739_s7, 3200, %s51_s16, [#allocation6], %s7807_s28, %s7807_s28, %s7808_s29  }
  0x19   :  { %7800 = dma.done.wait [#allocation3], 5120  }
  0x1a   :  { %7801 = vsyncadd [#allocation3], 4294962176 }
  0x1b   :  { %7802 = dma.done.wait [#allocation6], 3200  }
  0x1c   :  { %7803 = vsyncadd [#allocation6], 4294964096  ;;  %v7810_v0 = vmov 0.0   ;;  %vm7811_vm0 = vmmov 0   ;;  %v7904_v1 = vld [vmem:[%s10733_s1 + $0x58] sm:$0xff]  ;;  %v7914_v3 = vld [vmem:[%s10733_s1 + $0x50] sm:$0xff] }
  0x1d   :  { %6073 = vmatprep.subr.mxu0 %v7810_v0  ;;  %6100 = vmatprep.subr.mxu1 %v7810_v0  ;;  %v7909_v2 = vld [vmem:[%s10733_s1 + $0xb8] sm:$0xff]  ;;  %v7921_v4 = vld [vmem:[%s10733_s1 + $0xb0] sm:$0xff]  ;;  %v7928_v5 = vld [vmem:[%s10733_s1 + $0x48] sm:$0xff]  ;;  %vm190_vm1 = vcmask 785408   ;;  %vm1657_vm2 = vcmask 1043456   ;;  %s7812_s17 = smov 68  }
  0x1e   :  { %6097 = vmatprep.mubr.msk.f32.mxu0 %vm7811_vm0, %v7810_v0  ;;  %6124 = vmatprep.mubr.msk.f32.mxu1 %vm7811_vm0, %v7810_v0  ;;  %v7933_v6 = vld [vmem:[%s10733_s1 + $0xa8] sm:$0xff]  ;;  %v7942_v7 = vld [vmem:[%s10733_s1 + $0x40] sm:$0xff]  ;;  %v7956_v9 = vld [vmem:[%s10733_s1 + $0x38] sm:$0xff]  ;;  %vm1653_vm3 = vcmask 490496   ;;  %vm4750_vm4 = vcmask 1045504   ;;  %s7814_s24 = smov 34  }
  0x1f   :  { %6074 = vmatpush3.msra.mxu0 %v7904_v1  ;;  %6101 = vmatpush3.msra.mxu1 %v7909_v2  ;;  %v7947_v8 = vld [vmem:[%s10733_s1 + $0xa0] sm:$0xff]  ;;  %v7961_v10 = vld [vmem:[%s10733_s1 + $0x98] sm:$0xff]  ;;  %v7970_v11 = vld [vmem:[%s10733_s1 + $0x30] sm:$0xff]  ;;  %s7815_s25 = smov 108   ;;  %s7816_s26 = smov 88   ;;  %vm2431_vm5 = vcmask 277504  }
  0x20   :  { %6075 = vmatprep.subr.mxu0 %v7810_v0  ;;  %6102 = vmatprep.subr.mxu1 %v7810_v0  ;;  %v7975_v12 = vld [vmem:[%s10733_s1 + $0x90] sm:$0xff]  ;;  %v7984_v13 = vld [vmem:[%s10733_s1 + $0x28] sm:$0xff]  ;;  %v7998_v15 = vld [vmem:[%s10733_s1 + $0x20] sm:$0xff]  ;;  %s7817_s27 = smov 54   ;;  %vm2433_vm6 = vcmask 719872   ;;  %vm2427_vm7 = vcmask 441344  }
  0x21   :  { %6076 = vmatpush3.msra.mxu0 %v7914_v3  ;;  %6103 = vmatpush3.msra.mxu1 %v7921_v4  ;;  %10767 = vst [vmem:[#allocation11_spill] sm:$0xff] %v7975_v12  ;;  %v7989_v14 = vld [vmem:[%s10733_s1 + $0x88] sm:$0xff]  ;;  %10768 = vst [vmem:[#allocation12_spill] sm:$0xff] %v7998_v15  ;;  %v8003_v16 = vld [vmem:[%s10733_s1 + $0x80] sm:$0xff]  ;;  %vm2429_vm8 = vcmask 883712   ;;  %vm4662_vm9 = vcmask 1040384  }
  0x22   :  { %6077 = vmatprep.subr.mxu0 %v7810_v0  ;;  %6104 = vmatprep.subr.mxu1 %v7810_v0  ;;  %v8012_v17 = vld [vmem:[%s10733_s1 + $0x18] sm:$0xff]  ;;  %v8026_v19 = vld [vmem:[%s10733_s1 + $0x10] sm:$0xff]  ;;  %v8040_v21 = vld [vmem:[%s10733_s1 + $0x8] sm:$0xff]  ;;  %vm4746_vm10 = vcmask 113664   ;;  %vm4931_vm11 = vcmask 588800   ;;  %vm5025_vm12 = vcmask 818176  }
  0x23   :  { %6078 = vmatpush3.msra.mxu0 %v7928_v5  ;;  %6105 = vmatpush3.msra.mxu1 %v7933_v6  ;;  %10769 = vst [vmem:[#allocation13_spill] sm:$0xff] %v8012_v17  ;;  %v8017_v18 = vld [vmem:[%s10733_s1 + $0x78] sm:$0xff]  ;;  %v8031_v20 = vld [vmem:[%s10733_s1 + $0x70] sm:$0xff]  ;;  %v8045_v22 = vld [vmem:[%s10733_s1 + $0x68] sm:$0xff]  ;;  %vm5114_vm13 = vcmask 326656   ;;  %vm5188_vm14 = vcmask 58368  }
  0x24   :  { %6079 = vmatprep.subr.mxu0 %v7810_v0  ;;  %6106 = vmatprep.subr.mxu1 %v7810_v0  ;;  %v8054_v23 = vld [vmem:[%s10733_s1] sm:$0xff]  ;;  %v8073_v26 = vld [vmem:[%s10732_s0 + $0x8] sm:$0xff]  ;;  %v8080_v27 = vld [vmem:[%s10733_s1 + $0x118] sm:$0xff] }
  0x25   :  { %6080 = vmatpush3.msra.mxu0 %v7942_v7  ;;  %6107 = vmatpush3.msra.mxu1 %v7947_v8  ;;  %v8059_v24 = vld [vmem:[%s10733_s1 + $0x60] sm:$0xff]  ;;  %v8085_v28 = vld [vmem:[%s10733_s1 + $0x178] sm:$0xff]  ;;  %v8096_v29 = vld [vmem:[%s10733_s1 + $0x110] sm:$0xff] }
  0x26   :  { %6081 = vmatprep.subr.mxu0 %v7810_v0  ;;  %6108 = vmatprep.subr.mxu1 %v7810_v0  ;;  %v8066_v25 = vld [vmem:[%s10732_s0] sm:$0xff]  ;;  %v8101_v30 = vld [vmem:[%s10733_s1 + $0x170] sm:$0xff]  ;;  %v8110_v31 = vld [vmem:[%s10733_s1 + $0x108] sm:$0xff] }
  0x27   :  { %6082 = vmatpush3.msra.mxu0 %v7956_v9  ;;  %6109 = vmatpush3.msra.mxu1 %v7961_v10  ;;  %v8115_v32 = vld [vmem:[%s10733_s1 + $0x168] sm:$0xff]  ;;  %v8124_v33 = vld [vmem:[%s10733_s1 + $0x100] sm:$0xff]  ;;  %v8138_v35 = vld [vmem:[%s10733_s1 + $0xf8] sm:$0xff] }
  0x28   :  { %6083 = vmatprep.subr.mxu0 %v7810_v0  ;;  %6110 = vmatprep.subr.mxu1 %v7810_v0  ;;  %v8129_v34 = vld [vmem:[%s10733_s1 + $0x160] sm:$0xff]  ;;  %v8143_v36 = vld [vmem:[%s10733_s1 + $0x158] sm:$0xff]  ;;  %v8152_v37 = vld [vmem:[%s10733_s1 + $0xf0] sm:$0xff] }
  0x29   :  { %6084 = vmatpush3.msra.mxu0 %v7970_v11  ;;  %6111 = vmatpush3.msra.mxu1 %v7975_v12  ;;  %v8157_v38 = vld [vmem:[%s10733_s1 + $0x150] sm:$0xff]  ;;  %v8166_v39 = vld [vmem:[%s10733_s1 + $0xe8] sm:$0xff]  ;;  %v8180_v41 = vld [vmem:[%s10733_s1 + $0xe0] sm:$0xff] }
  0x2a   :  { %6085 = vmatprep.subr.mxu0 %v7810_v0  ;;  %6112 = vmatprep.subr.mxu1 %v7810_v0  ;;  %v8171_v40 = vld [vmem:[%s10733_s1 + $0x148] sm:$0xff]  ;;  %v8185_v42 = vld [vmem:[%s10733_s1 + $0x140] sm:$0xff]  ;;  %v8194_v43 = vld [vmem:[%s10733_s1 + $0xd8] sm:$0xff] }
  0x2b   :  { %6086 = vmatpush3.msra.mxu0 %v7984_v13  ;;  %6113 = vmatpush3.msra.mxu1 %v7989_v14  ;;  %v8199_v44 = vld [vmem:[%s10733_s1 + $0x138] sm:$0xff]  ;;  %v8208_v45 = vld [vmem:[%s10733_s1 + $0xd0] sm:$0xff]  ;;  %v8222_v47 = vld [vmem:[%s10733_s1 + $0xc8] sm:$0xff] }
  0x2c   :  { %6087 = vmatprep.subr.mxu0 %v7810_v0  ;;  %6114 = vmatprep.subr.mxu1 %v7810_v0  ;;  %v8213_v46 = vld [vmem:[%s10733_s1 + $0x130] sm:$0xff]  ;;  %v8227_v48 = vld [vmem:[%s10733_s1 + $0x128] sm:$0xff]  ;;  %v8236_v49 = vld [vmem:[%s10733_s1 + $0xc0] sm:$0xff] }
  0x2d   :  { %6088 = vmatpush3.msra.mxu0 %v7998_v15  ;;  %6115 = vmatpush3.msra.mxu1 %v8003_v16  ;;  %v8243_v50 = vld [vmem:[%s10733_s1 + $0x120] sm:$0xff]  ;;  %v8248_v51 = vld [vmem:[%s10732_s0 + $0x10] sm:$0xff]  ;;  %v8258_v52 = vld [vmem:[%s10732_s0 + $0x18] sm:$0xff] }
  0x2e   :  { %6089 = vmatprep.subr.mxu0 %v7810_v0  ;;  %6116 = vmatprep.subr.mxu1 %v7810_v0  ;;  %v8266_v53 = vld [vmem:[%s10733_s1 + $0x1d8] sm:$0xff]  ;;  %v8277_v54 = vld [vmem:[%s10733_s1 + $0x1d0] sm:$0xff]  ;;  %v8286_v55 = vld [vmem:[%s10733_s1 + $0x1c8] sm:$0xff] }
  0x2f   :  { %6090 = vmatpush3.msra.mxu0 %v8012_v17  ;;  %6117 = vmatpush3.msra.mxu1 %v8017_v18  ;;  %v8295_v56 = vld [vmem:[%s10733_s1 + $0x1c0] sm:$0xff]  ;;  %v8304_v57 = vld [vmem:[%s10733_s1 + $0x1b8] sm:$0xff]  ;;  %v8313_v58 = vld [vmem:[%s10733_s1 + $0x1b0] sm:$0xff] }
  0x30   :  { %6091 = vmatprep.subr.mxu0 %v7810_v0  ;;  %6118 = vmatprep.subr.mxu1 %v7810_v0  ;;  %v8322_v59 = vld [vmem:[%s10733_s1 + $0x1a8] sm:$0xff]  ;;  %v8331_v60 = vld [vmem:[%s10733_s1 + $0x1a0] sm:$0xff]  ;;  %v8340_v61 = vld [vmem:[%s10733_s1 + $0x198] sm:$0xff] }
  0x31   :  { %6092 = vmatpush3.msra.mxu0 %v8026_v19  ;;  %6119 = vmatpush3.msra.mxu1 %v8031_v20  ;;  %v8349_v62 = vld [vmem:[%s10733_s1 + $0x190] sm:$0xff]  ;;  %v8358_v63 = vld [vmem:[%s10733_s1 + $0x188] sm:$0xff] }
  0x32   :  { %6093 = vmatprep.subr.mxu0 %v7810_v0  ;;  %6120 = vmatprep.subr.mxu1 %v7810_v0 }
  0x33   :  { %6094 = vmatpush3.msra.mxu0 %v8040_v21  ;;  %6121 = vmatpush3.msra.mxu1 %v8045_v22 }
  0x34   :  { %6095 = vmatprep.subr.mxu0 %v7810_v0  ;;  %6122 = vmatprep.subr.mxu1 %v7810_v0 }
  0x35   :  { %6096 = vmatpush3.msra.mxu0 %v8054_v23  ;;  %6123 = vmatpush3.msra.mxu1 %v8059_v24 }
  0x36   :  { %6098 = vmatmul.mubr.msk.f32.vlgmr.msra.gmra.mxu0 %vm190_vm1, %v8066_v25  ;;  %6127 = vmatprep.subr.mxu0 %v7810_v0 }
  0x37   :  { %6154 = vmatprep.subr.mxu1 %v7810_v0  ;;  %6125 = vmatmul.mubr.msk.f32.vlgmr.msra.gmra.mxu1 %vm190_vm1, %v8073_v26 }
  0x38   :  { %6128 = vmatpush3.msra.mxu0 %v8080_v27  ;;  %6155 = vmatpush3.msra.mxu1 %v8085_v28 }
  0x39   :  { %6129 = vmatprep.subr.mxu0 %v7810_v0  ;;  %6156 = vmatprep.subr.mxu1 %v7810_v0 }
  0x3a   :  { %6130 = vmatpush3.msra.mxu0 %v8096_v29  ;;  %6157 = vmatpush3.msra.mxu1 %v8101_v30 }
  0x3b   :  { %6131 = vmatprep.subr.mxu0 %v7810_v0  ;;  %6158 = vmatprep.subr.mxu1 %v7810_v0 }
  0x3c   :  { %6132 = vmatpush3.msra.mxu0 %v8110_v31  ;;  %6159 = vmatpush3.msra.mxu1 %v8115_v32 }
  0x3d   :  { %6133 = vmatprep.subr.mxu0 %v7810_v0  ;;  %6160 = vmatprep.subr.mxu1 %v7810_v0 }
  0x3e   :  { %6134 = vmatpush3.msra.mxu0 %v8124_v33  ;;  %6161 = vmatpush3.msra.mxu1 %v8129_v34 }
  0x3f   :  { %6135 = vmatprep.subr.mxu0 %v7810_v0  ;;  %6162 = vmatprep.subr.mxu1 %v7810_v0 }
  0x40   :  { %6136 = vmatpush3.msra.mxu0 %v8138_v35  ;;  %6163 = vmatpush3.msra.mxu1 %v8143_v36 }
  0x41   :  { %6137 = vmatprep.subr.mxu0 %v7810_v0  ;;  %6164 = vmatprep.subr.mxu1 %v7810_v0 }
  0x42   :  { %6138 = vmatpush3.msra.mxu0 %v8152_v37  ;;  %6165 = vmatpush3.msra.mxu1 %v8157_v38 }
  0x43   :  { %6139 = vmatprep.subr.mxu0 %v7810_v0  ;;  %6166 = vmatprep.subr.mxu1 %v7810_v0 }
  0x44   :  { %6140 = vmatpush3.msra.mxu0 %v8166_v39  ;;  %6167 = vmatpush3.msra.mxu1 %v8171_v40 }
  0x45   :  { %6141 = vmatprep.subr.mxu0 %v7810_v0  ;;  %6168 = vmatprep.subr.mxu1 %v7810_v0 }
  0x46   :  { %6142 = vmatpush3.msra.mxu0 %v8180_v41  ;;  %6169 = vmatpush3.msra.mxu1 %v8185_v42 }
  0x47   :  { %6143 = vmatprep.subr.mxu0 %v7810_v0  ;;  %6170 = vmatprep.subr.mxu1 %v7810_v0 }
  0x48   :  { %6144 = vmatpush3.msra.mxu0 %v8194_v43  ;;  %6171 = vmatpush3.msra.mxu1 %v8199_v44 }
  0x49   :  { %6145 = vmatprep.subr.mxu0 %v7810_v0  ;;  %6172 = vmatprep.subr.mxu1 %v7810_v0 }
  0x4a   :  { %6146 = vmatpush3.msra.mxu0 %v8208_v45  ;;  %6173 = vmatpush3.msra.mxu1 %v8213_v46 }
  0x4b   :  { %6147 = vmatprep.subr.mxu0 %v7810_v0  ;;  %6174 = vmatprep.subr.mxu1 %v7810_v0 }
  0x4c   :  { %6148 = vmatpush3.msra.mxu0 %v8222_v47  ;;  %6175 = vmatpush3.msra.mxu1 %v8227_v48 }
  0x4d   :  { %6149 = vmatprep.subr.mxu0 %v7810_v0  ;;  %6176 = vmatprep.subr.mxu1 %v7810_v0 }
  0x4e   :  { %6150 = vmatpush3.msra.mxu0 %v8236_v49  ;;  %6151 = vmatprep.mubr.msk.f32.mxu0 %vm7811_vm0, %v7810_v0 }
  0x4f   :  { %6177 = vmatpush3.msra.mxu1 %v8243_v50  ;;  %6152 = vmatmul.mubr.msk.f32.vlgmr.msra.gmra.mxu0 %vm190_vm1, %v8248_v51 }
  0x50   :  { %6178 = vmatprep.mubr.msk.f32.mxu1 %vm7811_vm0, %v7810_v0  ;;  %6181 = vmatprep.subr.mxu0 %v7810_v0 }
  0x51   :  { %6208 = vmatprep.subr.mxu1 %v7810_v0  ;;  %6179 = vmatmul.mubr.msk.f32.vlgmr.msra.gmra.mxu1 %vm190_vm1, %v8258_v52 }
  0x52   :  { %6182 = vmatpush3.msra.mxu0 %v8266_v53  ;;  %6209 = vmatpush3.msra.mxu1 %v7904_v1 }
  0x53   :  { %6183 = vmatprep.subr.mxu0 %v7810_v0  ;;  %6210 = vmatprep.subr.mxu1 %v7810_v0 }
  0x54   :  { %6184 = vmatpush3.msra.mxu0 %v8277_v54  ;;  %6211 = vmatpush3.msra.mxu1 %v7914_v3 }
  0x55   :  { %6185 = vmatprep.subr.mxu0 %v7810_v0  ;;  %6212 = vmatprep.subr.mxu1 %v7810_v0 }
  0x56   :  { %6186 = vmatpush3.msra.mxu0 %v8286_v55  ;;  %6213 = vmatpush3.msra.mxu1 %v7928_v5 }
  0x57   :  { %6187 = vmatprep.subr.mxu0 %v7810_v0  ;;  %6214 = vmatprep.subr.mxu1 %v7810_v0 }
  0x58   :  { %6188 = vmatpush3.msra.mxu0 %v8295_v56  ;;  %6215 = vmatpush3.msra.mxu1 %v7942_v7 }
  0x59   :  { %6189 = vmatprep.subr.mxu0 %v7810_v0  ;;  %6216 = vmatprep.subr.mxu1 %v7810_v0 }
  0x5a   :  { %6190 = vmatpush3.msra.mxu0 %v8304_v57  ;;  %6217 = vmatpush3.msra.mxu1 %v7956_v9 }
  0x5b   :  { %6191 = vmatprep.subr.mxu0 %v7810_v0  ;;  %6218 = vmatprep.subr.mxu1 %v7810_v0 }
  0x5c   :  { %6192 = vmatpush3.msra.mxu0 %v8313_v58  ;;  %6219 = vmatpush3.msra.mxu1 %v7970_v11 }
  0x5d   :  { %6193 = vmatprep.subr.mxu0 %v7810_v0  ;;  %6220 = vmatprep.subr.mxu1 %v7810_v0 }
  0x5e   :  { %6194 = vmatpush3.msra.mxu0 %v8322_v59  ;;  %6221 = vmatpush3.msra.mxu1 %v7984_v13 }
  0x5f   :  { %6195 = vmatprep.subr.mxu0 %v7810_v0  ;;  %6222 = vmatprep.subr.mxu1 %v7810_v0 }
  0x60   :  { %6196 = vmatpush3.msra.mxu0 %v8331_v60  ;;  %6223 = vmatpush3.msra.mxu1 %v7998_v15  ;;  %v8363_v15 = vrot.slane %v8066_v25, 1  ;;  %v8487_v25 = vrot.slane %v8073_v26, 1 }
  0x61   :  { %6197 = vmatprep.subr.mxu0 %v7810_v0  ;;  %6224 = vmatprep.subr.mxu1 %v7810_v0 }
  0x62   :  { %6198 = vmatpush3.msra.mxu0 %v8340_v61  ;;  %6225 = vmatpush3.msra.mxu1 %v8012_v17  ;;  %v8370_v17 = vld [vmem:[%s10733_s1 + $0x180] sm:$0xff] }
  0x63   :  { %6199 = vmatprep.subr.mxu0 %v7810_v0  ;;  %6226 = vmatprep.subr.mxu1 %v7810_v0 }
  0x64   :  { %6200 = vmatpush3.msra.mxu0 %v8349_v62  ;;  %6227 = vmatpush3.msra.mxu1 %v8026_v19 }
  0x65   :  { %6201 = vmatprep.subr.mxu0 %v7810_v0  ;;  %6228 = vmatprep.subr.mxu1 %v7810_v0 }
  0x66   :  { %6202 = vmatpush3.msra.mxu0 %v8358_v63  ;;  %6229 = vmatpush3.msra.mxu1 %v8040_v21 }
  0x67   :  { %6203 = vmatprep.subr.mxu0 %v7810_v0  ;;  %6230 = vmatprep.subr.mxu1 %v7810_v0 }
  0x68   :  { %6204 = vmatpush3.msra.mxu0 %v8370_v17  ;;  %6205 = vmatprep.mubr.msk.f32.mxu0 %vm7811_vm0, %v7810_v0 }
  0x69   :  { %6231 = vmatpush3.msra.mxu1 %v8054_v23  ;;  %6206 = vmatmul.mubr.msk.f32.vlgmr.msra.gmra.mxu0 %vm190_vm1, %v8363_v15 }
  0x6a   :  { %6232 = vmatprep.mubr.msk.f32.mxu1 %vm7811_vm0, %v7810_v0  ;;  %6235 = vmatprep.subr.mxu0 %v7810_v0 }
  0x6b   :  { %6262 = vmatprep.subr.mxu1 %v7810_v0  ;;  %6233 = vmatmul.mubr.msk.f32.vlgmr.msra.gmra.mxu1 %vm190_vm1, %v8073_v26  ;;  %v10770_v26 = vld [vmem:[#allocation12_spill] sm:$0xff] }
  0x6c   :  { %6236 = vmatpush3.msra.mxu0 %v7909_v2  ;;  %6263 = vmatpush3.msra.mxu1 %v8080_v27 }
  0x6d   :  { %6237 = vmatprep.subr.mxu0 %v7810_v0  ;;  %6264 = vmatprep.subr.mxu1 %v7810_v0 }
  0x6e   :  { %6238 = vmatpush3.msra.mxu0 %v7921_v4  ;;  %6265 = vmatpush3.msra.mxu1 %v8096_v29 }
  0x6f   :  { %6239 = vmatprep.subr.mxu0 %v7810_v0  ;;  %6266 = vmatprep.subr.mxu1 %v7810_v0 }
  0x70   :  { %6240 = vmatpush3.msra.mxu0 %v7933_v6  ;;  %6267 = vmatpush3.msra.mxu1 %v8110_v31 }
  0x71   :  { %6241 = vmatprep.subr.mxu0 %v7810_v0  ;;  %6268 = vmatprep.subr.mxu1 %v7810_v0 }
  0x72   :  { %6242 = vmatpush3.msra.mxu0 %v7947_v8  ;;  %6269 = vmatpush3.msra.mxu1 %v8124_v33 }
  0x73   :  { %6243 = vmatprep.subr.mxu0 %v7810_v0  ;;  %6270 = vmatprep.subr.mxu1 %v7810_v0 }
  0x74   :  { %6244 = vmatpush3.msra.mxu0 %v7961_v10  ;;  %6271 = vmatpush3.msra.mxu1 %v8138_v35 }
  0x75   :  { %6245 = vmatprep.subr.mxu0 %v7810_v0  ;;  %6272 = vmatprep.subr.mxu1 %v7810_v0 }
  0x76   :  { %6246 = vmatpush3.msra.mxu0 %v7975_v12  ;;  %6273 = vmatpush3.msra.mxu1 %v8152_v37 }
  0x77   :  { %6247 = vmatprep.subr.mxu0 %v7810_v0  ;;  %6274 = vmatprep.subr.mxu1 %v7810_v0 }
  0x78   :  { %6248 = vmatpush3.msra.mxu0 %v7989_v14  ;;  %6275 = vmatpush3.msra.mxu1 %v8166_v39 }
  0x79   :  { %6249 = vmatprep.subr.mxu0 %v7810_v0  ;;  %6276 = vmatprep.subr.mxu1 %v7810_v0 }
  0x7a   :  { %6250 = vmatpush3.msra.mxu0 %v8003_v16  ;;  %6277 = vmatpush3.msra.mxu1 %v8180_v41 }
  0x7b   :  { %6251 = vmatprep.subr.mxu0 %v7810_v0  ;;  %6278 = vmatprep.subr.mxu1 %v7810_v0 }
  0x7c   :  { %6252 = vmatpush3.msra.mxu0 %v8017_v18  ;;  %6279 = vmatpush3.msra.mxu1 %v8194_v43 }
  0x7d   :  { %6253 = vmatprep.subr.mxu0 %v7810_v0  ;;  %6280 = vmatprep.subr.mxu1 %v7810_v0 }
  0x7e   :  { %6254 = vmatpush3.msra.mxu0 %v8031_v20  ;;  %6281 = vmatpush3.msra.mxu1 %v8208_v45 }
  0x7f   :  { %6255 = vmatprep.subr.mxu0 %v7810_v0  ;;  %6282 = vmatprep.subr.mxu1 %v7810_v0 }
  0x80   :  { %6256 = vmatpush3.msra.mxu0 %v8045_v22  ;;  %6283 = vmatpush3.msra.mxu1 %v8222_v47 }
  0x81   :  { %6257 = vmatprep.subr.mxu0 %v7810_v0  ;;  %6284 = vmatprep.subr.mxu1 %v7810_v0 }
  0x82   :  { %6258 = vmatpush3.msra.mxu0 %v8059_v24  ;;  %6259 = vmatprep.mubr.msk.f32.mxu0 %vm7811_vm0, %v7810_v0 }
  0x83   :  { %6285 = vmatpush3.msra.mxu1 %v8236_v49  ;;  %6260 = vmatmul.mubr.msk.f32.vlgmr.msra.gmra.mxu0 %vm190_vm1, %v8248_v51 }
  0x84   :  { %6286 = vmatprep.mubr.msk.f32.mxu1 %vm7811_vm0, %v7810_v0  ;;  %6289 = vmatprep.subr.mxu0 %v7810_v0 }
  0x85   :  { %6316 = vmatprep.subr.mxu1 %v7810_v0  ;;  %6287 = vmatmul.mubr.msk.f32.vlgmr.msra.gmra.mxu1 %vm190_vm1, %v8258_v52 }
  0x86   :  { %6290 = vmatpush3.msra.mxu0 %v8085_v28  ;;  %6317 = vmatpush3.msra.mxu1 %v8266_v53 }
  0x87   :  { %6291 = vmatprep.subr.mxu0 %v7810_v0  ;;  %6318 = vmatprep.subr.mxu1 %v7810_v0 }
  0x88   :  { %6292 = vmatpush3.msra.mxu0 %v8101_v30  ;;  %6319 = vmatpush3.msra.mxu1 %v8277_v54 }
  0x89   :  { %6293 = vmatprep.subr.mxu0 %v7810_v0  ;;  %6320 = vmatprep.subr.mxu1 %v7810_v0 }
  0x8a   :  { %6294 = vmatpush3.msra.mxu0 %v8115_v32  ;;  %6321 = vmatpush3.msra.mxu1 %v8286_v55 }
  0x8b   :  { %6295 = vmatprep.subr.mxu0 %v7810_v0  ;;  %6322 = vmatprep.subr.mxu1 %v7810_v0 }
  0x8c   :  { %6296 = vmatpush3.msra.mxu0 %v8129_v34  ;;  %6323 = vmatpush3.msra.mxu1 %v8295_v56 }
  0x8d   :  { %6297 = vmatprep.subr.mxu0 %v7810_v0  ;;  %6324 = vmatprep.subr.mxu1 %v7810_v0 }
  0x8e   :  { %6298 = vmatpush3.msra.mxu0 %v8143_v36  ;;  %6325 = vmatpush3.msra.mxu1 %v8304_v57 }
  0x8f   :  { %6299 = vmatprep.subr.mxu0 %v7810_v0  ;;  %6326 = vmatprep.subr.mxu1 %v7810_v0 }
  0x90   :  { %6300 = vmatpush3.msra.mxu0 %v8157_v38  ;;  %6327 = vmatpush3.msra.mxu1 %v8313_v58 }
  0x91   :  { %6301 = vmatprep.subr.mxu0 %v7810_v0  ;;  %6328 = vmatprep.subr.mxu1 %v7810_v0 }
  0x92   :  { %6302 = vmatpush3.msra.mxu0 %v8171_v40  ;;  %6329 = vmatpush3.msra.mxu1 %v8322_v59 }
  0x93   :  { %6303 = vmatprep.subr.mxu0 %v7810_v0  ;;  %6330 = vmatprep.subr.mxu1 %v7810_v0 }
  0x94   :  { %6304 = vmatpush3.msra.mxu0 %v8185_v42  ;;  %6331 = vmatpush3.msra.mxu1 %v8331_v60 }
  0x95   :  { %6305 = vmatprep.subr.mxu0 %v7810_v0  ;;  %6332 = vmatprep.subr.mxu1 %v7810_v0 }
  0x96   :  { %6306 = vmatpush3.msra.mxu0 %v8199_v44  ;;  %6333 = vmatpush3.msra.mxu1 %v8340_v61 }
  0x97   :  { %6307 = vmatprep.subr.mxu0 %v7810_v0  ;;  %6334 = vmatprep.subr.mxu1 %v7810_v0 }
  0x98   :  { %6308 = vmatpush3.msra.mxu0 %v8213_v46  ;;  %6335 = vmatpush3.msra.mxu1 %v8349_v62 }
  0x99   :  { %6309 = vmatprep.subr.mxu0 %v7810_v0  ;;  %6336 = vmatprep.subr.mxu1 %v7810_v0 }
  0x9a   :  { %6310 = vmatpush3.msra.mxu0 %v8227_v48  ;;  %6337 = vmatpush3.msra.mxu1 %v8358_v63 }
  0x9b   :  { %6311 = vmatprep.subr.mxu0 %v7810_v0  ;;  %6338 = vmatprep.subr.mxu1 %v7810_v0 }
  0x9c   :  { %6312 = vmatpush3.msra.mxu0 %v8243_v50  ;;  %6313 = vmatprep.mubr.msk.f32.mxu0 %vm7811_vm0, %v7810_v0 }
  0x9d   :  { %6339 = vmatpush3.msra.mxu1 %v8370_v17  ;;  %6314 = vmatmul.mubr.msk.f32.vlgmr.msra.gmra.mxu0 %vm190_vm1, %v8363_v15 }
  0x9e   :  { %6340 = vmatprep.mubr.msk.f32.mxu1 %vm7811_vm0, %v7810_v0  ;;  %6343 = vmatprep.subr.mxu0 %v7810_v0 }
  0x9f   :  { %6370 = vmatprep.subr.mxu1 %v7810_v0  ;;  %6341 = vmatmul.mubr.msk.f32.vlgmr.msra.gmra.mxu1 %vm190_vm1, %v8487_v25 }
  0xa0   :  { %6344 = vmatpush3.msra.mxu0 %v7904_v1  ;;  %6371 = vmatpush3.msra.mxu1 %v7909_v2 }
  0xa1   :  { %6345 = vmatprep.subr.mxu0 %v7810_v0  ;;  %6372 = vmatprep.subr.mxu1 %v7810_v0 }
  0xa2   :  { %6346 = vmatpush3.msra.mxu0 %v7914_v3  ;;  %6373 = vmatpush3.msra.mxu1 %v7921_v4 }
  0xa3   :  { %6347 = vmatprep.subr.mxu0 %v7810_v0  ;;  %6374 = vmatprep.subr.mxu1 %v7810_v0 }
  0xa4   :  { %6348 = vmatpush3.msra.mxu0 %v7928_v5  ;;  %6375 = vmatpush3.msra.mxu1 %v7933_v6 }
  0xa5   :  { %6349 = vmatprep.subr.mxu0 %v7810_v0  ;;  %6376 = vmatprep.subr.mxu1 %v7810_v0 }
  0xa6   :  { %6350 = vmatpush3.msra.mxu0 %v7942_v7  ;;  %6377 = vmatpush3.msra.mxu1 %v7947_v8 }
  0xa7   :  { %6351 = vmatprep.subr.mxu0 %v7810_v0  ;;  %6378 = vmatprep.subr.mxu1 %v7810_v0 }
  0xa8   :  { %6352 = vmatpush3.msra.mxu0 %v7956_v9  ;;  %6379 = vmatpush3.msra.mxu1 %v7961_v10 }
  0xa9   :  { %6353 = vmatprep.subr.mxu0 %v7810_v0  ;;  %6380 = vmatprep.subr.mxu1 %v7810_v0 }
  0xaa   :  { %6354 = vmatpush3.msra.mxu0 %v7970_v11  ;;  %6381 = vmatpush3.msra.mxu1 %v7975_v12  ;;  %v10771_v12 = vld [vmem:[#allocation13_spill] sm:$0xff] }
  0xab   :  { %6355 = vmatprep.subr.mxu0 %v7810_v0  ;;  %6382 = vmatprep.subr.mxu1 %v7810_v0 }
  0xac   :  { %6356 = vmatpush3.msra.mxu0 %v7984_v13  ;;  %6383 = vmatpush3.msra.mxu1 %v7989_v14 }
  0xad   :  { %6357 = vmatprep.subr.mxu0 %v7810_v0  ;;  %6384 = vmatprep.subr.mxu1 %v7810_v0 }
  0xae   :  { %6358 = vmatpush3.msra.mxu0 %v10770_v26  ;;  %6385 = vmatpush3.msra.mxu1 %v8003_v16 }
  0xaf   :  { %6359 = vmatprep.subr.mxu0 %v7810_v0  ;;  %6386 = vmatprep.subr.mxu1 %v7810_v0 }
  0xb0   :  { %6360 = vmatpush3.msra.mxu0 %v10771_v12  ;;  %6387 = vmatpush3.msra.mxu1 %v8017_v18 }
  0xb1   :  { %6361 = vmatprep.subr.mxu0 %v7810_v0  ;;  %6388 = vmatprep.subr.mxu1 %v7810_v0 }
  0xb2   :  { %6362 = vmatpush3.msra.mxu0 %v8026_v19  ;;  %6389 = vmatpush3.msra.mxu1 %v8031_v20 }
  0xb3   :  { %6363 = vmatprep.subr.mxu0 %v7810_v0  ;;  %6390 = vmatprep.subr.mxu1 %v7810_v0 }
  0xb4   :  { %6364 = vmatpush3.msra.mxu0 %v8040_v21  ;;  %6391 = vmatpush3.msra.mxu1 %v8045_v22 }
  0xb5   :  { %6365 = vmatprep.subr.mxu0 %v7810_v0  ;;  %6392 = vmatprep.subr.mxu1 %v7810_v0 }
  0xb6   :  { %6366 = vmatpush3.msra.mxu0 %v8054_v23  ;;  %6367 = vmatprep.mubr.msk.f32.mxu0 %vm7811_vm0, %v7810_v0 }
  0xb7   :  { %6393 = vmatpush3.msra.mxu1 %v8059_v24  ;;  %6368 = vmatmul.mubr.msk.f32.vlgmr.msra.gmra.mxu0 %vm190_vm1, %v8248_v51 }
  0xb8   :  { %6394 = vmatprep.mubr.msk.f32.mxu1 %vm7811_vm0, %v7810_v0  ;;  %6397 = vmatprep.subr.mxu0 %v7810_v0 }
  0xb9   :  { %6424 = vmatprep.subr.mxu1 %v7810_v0  ;;  %6395 = vmatmul.mubr.msk.f32.vlgmr.msra.gmra.mxu1 %vm190_vm1, %v8258_v52 }
  0xba   :  { %6398 = vmatpush3.msra.mxu0 %v8080_v27  ;;  %6425 = vmatpush3.msra.mxu1 %v8085_v28 }
  0xbb   :  { %6399 = vmatprep.subr.mxu0 %v7810_v0  ;;  %6426 = vmatprep.subr.mxu1 %v7810_v0 }
  0xbc   :  { %6400 = vmatpush3.msra.mxu0 %v8096_v29  ;;  %6427 = vmatpush3.msra.mxu1 %v8101_v30 }
  0xbd   :  { %6401 = vmatprep.subr.mxu0 %v7810_v0  ;;  %6428 = vmatprep.subr.mxu1 %v7810_v0 }
  0xbe   :  { %6402 = vmatpush3.msra.mxu0 %v8110_v31  ;;  %6429 = vmatpush3.msra.mxu1 %v8115_v32 }
  0xbf   :  { %6403 = vmatprep.subr.mxu0 %v7810_v0  ;;  %6430 = vmatprep.subr.mxu1 %v7810_v0 }
  0xc0   :  { %6404 = vmatpush3.msra.mxu0 %v8124_v33  ;;  %6431 = vmatpush3.msra.mxu1 %v8129_v34 }
  0xc1   :  { %6405 = vmatprep.subr.mxu0 %v7810_v0  ;;  %6432 = vmatprep.subr.mxu1 %v7810_v0 }
  0xc2   :  { %6406 = vmatpush3.msra.mxu0 %v8138_v35  ;;  %6433 = vmatpush3.msra.mxu1 %v8143_v36 }
  0xc3   :  { %6407 = vmatprep.subr.mxu0 %v7810_v0  ;;  %6434 = vmatprep.subr.mxu1 %v7810_v0 }
  0xc4   :  { %6408 = vmatpush3.msra.mxu0 %v8152_v37  ;;  %6435 = vmatpush3.msra.mxu1 %v8157_v38 }
  0xc5   :  { %6409 = vmatprep.subr.mxu0 %v7810_v0  ;;  %6436 = vmatprep.subr.mxu1 %v7810_v0 }
  0xc6   :  { %6410 = vmatpush3.msra.mxu0 %v8166_v39  ;;  %6437 = vmatpush3.msra.mxu1 %v8171_v40 }
  0xc7   :  { %6411 = vmatprep.subr.mxu0 %v7810_v0  ;;  %6438 = vmatprep.subr.mxu1 %v7810_v0 }
  0xc8   :  { %6412 = vmatpush3.msra.mxu0 %v8180_v41  ;;  %6439 = vmatpush3.msra.mxu1 %v8185_v42 }
  0xc9   :  { %6413 = vmatprep.subr.mxu0 %v7810_v0  ;;  %6440 = vmatprep.subr.mxu1 %v7810_v0 }
  0xca   :  { %6414 = vmatpush3.msra.mxu0 %v8194_v43  ;;  %6441 = vmatpush3.msra.mxu1 %v8199_v44 }
  0xcb   :  { %6415 = vmatprep.subr.mxu0 %v7810_v0  ;;  %6442 = vmatprep.subr.mxu1 %v7810_v0 }
  0xcc   :  { %6416 = vmatpush3.msra.mxu0 %v8208_v45  ;;  %6443 = vmatpush3.msra.mxu1 %v8213_v46 }
  0xcd   :  { %6417 = vmatprep.subr.mxu0 %v7810_v0  ;;  %6444 = vmatprep.subr.mxu1 %v7810_v0 }
  0xce   :  { %6418 = vmatpush3.msra.mxu0 %v8222_v47  ;;  %6445 = vmatpush3.msra.mxu1 %v8227_v48 }
  0xcf   :  { %6419 = vmatprep.subr.mxu0 %v7810_v0  ;;  %6446 = vmatprep.subr.mxu1 %v7810_v0 }
  0xd0   :  { %6420 = vmatpush3.msra.mxu0 %v8236_v49  ;;  %6421 = vmatprep.mubr.msk.f32.mxu0 %vm7811_vm0, %v7810_v0 }
  0xd1   :  { %6447 = vmatpush3.msra.mxu1 %v8243_v50  ;;  %6422 = vmatmul.mubr.msk.f32.vlgmr.msra.gmra.mxu0 %vm190_vm1, %v8363_v15 }
  0xd2   :  { %6448 = vmatprep.mubr.msk.f32.mxu1 %vm7811_vm0, %v7810_v0  ;;  %6451 = vmatprep.subr.mxu0 %v7810_v0 }
  0xd3   :  { %6478 = vmatprep.subr.mxu1 %v7810_v0  ;;  %6449 = vmatmul.mubr.msk.f32.vlgmr.msra.gmra.mxu1 %vm190_vm1, %v8487_v25 }
  0xd4   :  { %6452 = vmatpush3.msra.mxu0 %v8266_v53  ;;  %6479 = vmatpush3.msra.mxu1 %v7904_v1  ;;  %v1209_v1 = vrot.slane %v8248_v51, 1 }
  0xd5   :  { %6453 = vmatprep.subr.mxu0 %v7810_v0  ;;  %6480 = vmatprep.subr.mxu1 %v7810_v0 }
  0xd6   :  { %6454 = vmatpush3.msra.mxu0 %v8277_v54  ;;  %6481 = vmatpush3.msra.mxu1 %v7914_v3 }
  0xd7   :  { %6455 = vmatprep.subr.mxu0 %v7810_v0  ;;  %6482 = vmatprep.subr.mxu1 %v7810_v0 }
  0xd8   :  { %6456 = vmatpush3.msra.mxu0 %v8286_v55  ;;  %6483 = vmatpush3.msra.mxu1 %v7928_v5 }
  0xd9   :  { %6457 = vmatprep.subr.mxu0 %v7810_v0  ;;  %6484 = vmatprep.subr.mxu1 %v7810_v0 }
  0xda   :  { %6458 = vmatpush3.msra.mxu0 %v8295_v56  ;;  %6485 = vmatpush3.msra.mxu1 %v7942_v7 }
  0xdb   :  { %6459 = vmatprep.subr.mxu0 %v7810_v0  ;;  %6486 = vmatprep.subr.mxu1 %v7810_v0 }
  0xdc   :  { %6460 = vmatpush3.msra.mxu0 %v8304_v57  ;;  %6487 = vmatpush3.msra.mxu1 %v7956_v9 }
  0xdd   :  { %6461 = vmatprep.subr.mxu0 %v7810_v0  ;;  %6488 = vmatprep.subr.mxu1 %v7810_v0 }
  0xde   :  { %6462 = vmatpush3.msra.mxu0 %v8313_v58  ;;  %6489 = vmatpush3.msra.mxu1 %v7970_v11 }
  0xdf   :  { %6463 = vmatprep.subr.mxu0 %v7810_v0  ;;  %6490 = vmatprep.subr.mxu1 %v7810_v0 }
  0xe0   :  { %6464 = vmatpush3.msra.mxu0 %v8322_v59  ;;  %6491 = vmatpush3.msra.mxu1 %v7984_v13 }
  0xe1   :  { %6465 = vmatprep.subr.mxu0 %v7810_v0  ;;  %6492 = vmatprep.subr.mxu1 %v7810_v0 }
  0xe2   :  { %6466 = vmatpush3.msra.mxu0 %v8331_v60  ;;  %6493 = vmatpush3.msra.mxu1 %v10770_v26 }
  0xe3   :  { %6467 = vmatprep.subr.mxu0 %v7810_v0  ;;  %6494 = vmatprep.subr.mxu1 %v7810_v0 }
  0xe4   :  { %6468 = vmatpush3.msra.mxu0 %v8340_v61  ;;  %6495 = vmatpush3.msra.mxu1 %v10771_v12 }
  0xe5   :  { %6469 = vmatprep.subr.mxu0 %v7810_v0  ;;  %6496 = vmatprep.subr.mxu1 %v7810_v0 }
  0xe6   :  { %6470 = vmatpush3.msra.mxu0 %v8349_v62  ;;  %6497 = vmatpush3.msra.mxu1 %v8026_v19 }
  0xe7   :  { %6471 = vmatprep.subr.mxu0 %v7810_v0  ;;  %6498 = vmatprep.subr.mxu1 %v7810_v0 }
  0xe8   :  { %6472 = vmatpush3.msra.mxu0 %v8358_v63  ;;  %6499 = vmatpush3.msra.mxu1 %v8040_v21 }
  0xe9   :  { %6473 = vmatprep.subr.mxu0 %v7810_v0  ;;  %6500 = vmatprep.subr.mxu1 %v7810_v0 }
  0xea   :  { %6474 = vmatpush3.msra.mxu0 %v8370_v17  ;;  %6475 = vmatprep.mubr.msk.f32.mxu0 %vm7811_vm0, %v7810_v0 }
  0xeb   :  { %6501 = vmatpush3.msra.mxu1 %v8054_v23  ;;  %6476 = vmatmul.mubr.msk.f32.vlgmr.msra.gmra.mxu0 %vm190_vm1, %v1209_v1 }
  0xec   :  { %6502 = vmatprep.mubr.msk.f32.mxu1 %vm7811_vm0, %v7810_v0  ;;  %6505 = vmatprep.subr.mxu0 %v7810_v0 }
  0xed   :  { %6532 = vmatprep.subr.mxu1 %v7810_v0  ;;  %6503 = vmatmul.mubr.msk.f32.vlgmr.msra.gmra.mxu1 %vm190_vm1, %v8258_v52 }
  0xee   :  { %6506 = vmatpush3.msra.mxu0 %v7909_v2  ;;  %6533 = vmatpush3.msra.mxu1 %v8080_v27  ;;  %v8690_v2 = vld [vmem:[%s10734_s2] ss:$0 sm:$0xff]  ;;  %v8798_v27 = vld [vmem:[#allocation2 + $0x38] sm:$0xf] }
  0xef   :  { %6507 = vmatprep.subr.mxu0 %v7810_v0  ;;  %6534 = vmatprep.subr.mxu1 %v7810_v0 }
  0xf0   :  { %6508 = vmatpush3.msra.mxu0 %v7921_v4  ;;  %6535 = vmatpush3.msra.mxu1 %v8096_v29  ;;  %v8805_v29 = vld [vmem:[#allocation2 + $0x28] sm:$0xff] }
  0xf1   :  { %6509 = vmatprep.subr.mxu0 %v7810_v0  ;;  %6536 = vmatprep.subr.mxu1 %v7810_v0 }
  0xf2   :  { %6510 = vmatpush3.msra.mxu0 %v7933_v6  ;;  %6537 = vmatpush3.msra.mxu1 %v8110_v31  ;;  %v10772_v6 = vld [vmem:[#allocation11_spill] sm:$0xff]  ;;  %v8813_v31 = vld [vmem:[#allocation2 + $0x18] sm:$0xff] }
  0xf3   :  { %6511 = vmatprep.subr.mxu0 %v7810_v0  ;;  %6538 = vmatprep.subr.mxu1 %v7810_v0 }
  0xf4   :  { %6512 = vmatpush3.msra.mxu0 %v7947_v8  ;;  %6539 = vmatpush3.msra.mxu1 %v8124_v33 }
  0xf5   :  { %6513 = vmatprep.subr.mxu0 %v7810_v0  ;;  %6540 = vmatprep.subr.mxu1 %v7810_v0 }
  0xf6   :  { %6514 = vmatpush3.msra.mxu0 %v7961_v10  ;;  %6541 = vmatpush3.msra.mxu1 %v8138_v35  ;;  %v260_v3 = vpop.f32.mrf.mxu0 }
  0xf7   :  { %6515 = vmatprep.subr.mxu0 %v7810_v0  ;;  %6542 = vmatprep.subr.mxu1 %v7810_v0  ;;  %v270_v4 = vadd.f32 %v8690_v2, %v260_v3  ;;  %v340_v5 = vpop.f32.mrf.mxu1 }
  0xf8   :  { %6516 = vmatpush3.msra.mxu0 %v10772_v6  ;;  %6543 = vmatpush3.msra.mxu1 %v8152_v37  ;;  %v6099_v7 = vpop.f32.mrf.mxu0 }
  0xf9   :  { %6517 = vmatprep.subr.mxu0 %v7810_v0  ;;  %6544 = vmatprep.subr.mxu1 %v7810_v0  ;;  %v344_v8 = vadd.f32 %v340_v5, %v270_v4  ;;  %v6126_v9 = vpop.f32.mrf.mxu1 }
  0xfa   :  { %6518 = vmatpush3.msra.mxu0 %v7989_v14  ;;  %6545 = vmatpush3.msra.mxu1 %v8166_v39 }
  0xfb   :  { %6519 = vmatprep.subr.mxu0 %v7810_v0  ;;  %6546 = vmatprep.subr.mxu1 %v7810_v0 }
  0xfc   :  { %6520 = vmatpush3.msra.mxu0 %v8003_v16  ;;  %6547 = vmatpush3.msra.mxu1 %v8180_v41  ;;  %v1567_v16 = vrot.slane %v8258_v52, 1 }
  0xfd   :  { %6521 = vmatprep.subr.mxu0 %v7810_v0  ;;  %6548 = vmatprep.subr.mxu1 %v7810_v0 }
  0xfe   :  { %6522 = vmatpush3.msra.mxu0 %v8017_v18  ;;  %6549 = vmatpush3.msra.mxu1 %v8194_v43 }
  0xff   :  { %6523 = vmatprep.subr.mxu0 %v7810_v0  ;;  %6550 = vmatprep.subr.mxu1 %v7810_v0 }
 0x100   :  { %6524 = vmatpush3.msra.mxu0 %v8031_v20  ;;  %6551 = vmatpush3.msra.mxu1 %v8208_v45 }
 0x101   :  { %6525 = vmatprep.subr.mxu0 %v7810_v0  ;;  %6552 = vmatprep.subr.mxu1 %v7810_v0 }
 0x102   :  { %6526 = vmatpush3.msra.mxu0 %v8045_v22  ;;  %6553 = vmatpush3.msra.mxu1 %v8222_v47 }
 0x103   :  { %6527 = vmatprep.subr.mxu0 %v7810_v0  ;;  %6554 = vmatprep.subr.mxu1 %v7810_v0 }
 0x104   :  { %6528 = vmatpush3.msra.mxu0 %v8059_v24  ;;  %6529 = vmatprep.mubr.msk.f32.mxu0 %vm7811_vm0, %v7810_v0 }
 0x105   :  { %6555 = vmatpush3.msra.mxu1 %v8236_v49  ;;  %6530 = vmatmul.mubr.msk.f32.vlgmr.msra.gmra.mxu0 %vm190_vm1, %v8363_v15 }
 0x106   :  { %6556 = vmatprep.mubr.msk.f32.mxu1 %vm7811_vm0, %v7810_v0  ;;  %6559 = vmatprep.subr.mxu0 %v7810_v0 }
 0x107   :  { %6586 = vmatprep.subr.mxu1 %v7810_v0  ;;  %6557 = vmatmul.mubr.msk.f32.vlgmr.msra.gmra.mxu1 %vm190_vm1, %v8487_v25 }
 0x108   :  { %6560 = vmatpush3.msra.mxu0 %v8085_v28  ;;  %6587 = vmatpush3.msra.mxu1 %v8266_v53  ;;  %v8800_v28 = vld [vmem:[#allocation2 + $0x30] sm:$0xff] }
 0x109   :  { %6561 = vmatprep.subr.mxu0 %v7810_v0  ;;  %6588 = vmatprep.subr.mxu1 %v7810_v0  ;;  %v8839_v53 = vld [vmem:[#allocation2 + $0x70] sm:$0xff] }
 0x10a   :  { %6562 = vmatpush3.msra.mxu0 %v8101_v30  ;;  %6589 = vmatpush3.msra.mxu1 %v8277_v54  ;;  %v8809_v30 = vld [vmem:[#allocation2 + $0x20] sm:$0xff]  ;;  %v8843_v54 = vld [vmem:[#allocation2 + $0x68] sm:$0xff] }
 0x10b   :  { %6563 = vmatprep.subr.mxu0 %v7810_v0  ;;  %6590 = vmatprep.subr.mxu1 %v7810_v0 }
 0x10c   :  { %6564 = vmatpush3.msra.mxu0 %v8115_v32  ;;  %6591 = vmatpush3.msra.mxu1 %v8286_v55  ;;  %v8817_v32 = vld [vmem:[#allocation2 + $0x10] sm:$0xff]  ;;  %v8847_v55 = vld [vmem:[#allocation2 + $0x60] sm:$0xff] }
 0x10d   :  { %6565 = vmatprep.subr.mxu0 %v7810_v0  ;;  %6592 = vmatprep.subr.mxu1 %v7810_v0 }
 0x10e   :  { %6566 = vmatpush3.msra.mxu0 %v8129_v34  ;;  %6593 = vmatpush3.msra.mxu1 %v8295_v56  ;;  %v8851_v56 = vld [vmem:[#allocation2 + $0x58] sm:$0xff] }
 0x10f   :  { %6567 = vmatprep.subr.mxu0 %v7810_v0  ;;  %6594 = vmatprep.subr.mxu1 %v7810_v0  ;;  %v414_v10 = vpop.f32.mrf.mxu0 }
 0x110   :  { %6568 = vmatpush3.msra.mxu0 %v8143_v36  ;;  %6595 = vmatpush3.msra.mxu1 %v8304_v57  ;;  %v418_v11 = vadd.f32 %v414_v10, %v344_v8  ;;  %v8855_v57 = vld [vmem:[#allocation2 + $0x50] sm:$0xff] }
 0x111   :  { %6569 = vmatprep.subr.mxu0 %v7810_v0  ;;  %6596 = vmatprep.subr.mxu1 %v7810_v0  ;;  %v488_v12 = vpop.f32.mrf.mxu1  ;;  %v6153_v13 = vpop.f32.mrf.mxu0 }
 0x112   :  { %6570 = vmatpush3.msra.mxu0 %v8157_v38  ;;  %6597 = vmatpush3.msra.mxu1 %v8313_v58  ;;  %v8757_v14 = vadd.f32 %v488_v12, %v418_v11  ;;  %v8859_v58 = vld [vmem:[#allocation2 + $0x48] sm:$0xff]  ;;  %v8870_v12 = vld [vmem:[#allocation2 + $0xb8] sm:$0xf] }
 0x113   :  { %6571 = vmatprep.subr.mxu0 %v7810_v0  ;;  %6598 = vmatprep.subr.mxu1 %v7810_v0  ;;  %v6180_v15 = vpop.f32.mrf.mxu1 }
 0x114   :  { %6572 = vmatpush3.msra.mxu0 %v8171_v40  ;;  %6599 = vmatpush3.msra.mxu1 %v8322_v59  ;;  %v8824_v40 = vld [vmem:[#allocation2 + $0x8] sm:$0xff]  ;;  %v8863_v59 = vld [vmem:[#allocation2 + $0x40] sm:$0xff] }
 0x115   :  { %6573 = vmatprep.subr.mxu0 %v7810_v0  ;;  %6600 = vmatprep.subr.mxu1 %v7810_v0 }
 0x116   :  { %6574 = vmatpush3.msra.mxu0 %v8185_v42  ;;  %6601 = vmatpush3.msra.mxu1 %v8331_v60 }
 0x117   :  { %6575 = vmatprep.subr.mxu0 %v7810_v0  ;;  %6602 = vmatprep.subr.mxu1 %v7810_v0 }
 0x118   :  { %6576 = vmatpush3.msra.mxu0 %v8199_v44  ;;  %6603 = vmatpush3.msra.mxu1 %v8340_v61  ;;  %v8829_v44 = vld [vmem:[#allocation2] sm:$0xff] }
 0x119   :  { %6577 = vmatprep.subr.mxu0 %v7810_v0  ;;  %6604 = vmatprep.subr.mxu1 %v7810_v0 }
 0x11a   :  { %6578 = vmatpush3.msra.mxu0 %v8213_v46  ;;  %6605 = vmatpush3.msra.mxu1 %v8349_v62 }
 0x11b   :  { %6579 = vmatprep.subr.mxu0 %v7810_v0  ;;  %6606 = vmatprep.subr.mxu1 %v7810_v0 }
 0x11c   :  { %6580 = vmatpush3.msra.mxu0 %v8227_v48  ;;  %6607 = vmatpush3.msra.mxu1 %v8358_v63 }
 0x11d   :  { %6581 = vmatprep.subr.mxu0 %v7810_v0  ;;  %6608 = vmatprep.subr.mxu1 %v7810_v0 }
 0x11e   :  { %6582 = vmatpush3.msra.mxu0 %v8243_v50  ;;  %6583 = vmatprep.mubr.msk.f32.mxu0 %vm7811_vm0, %v7810_v0  ;;  %v8835_v50 = vld [vmem:[#allocation2 + $0x78] sm:$0xf] }
 0x11f   :  { %6609 = vmatpush3.msra.mxu1 %v8370_v17  ;;  %6610 = vmatprep.mubr.msk.f32.mxu1 %vm7811_vm0, %v7810_v0 }
 0x120   :  { %6584 = vmatmul.mubr.msk.f32.vlgmr.msra.gmra.mxu0 %vm190_vm1, %v1209_v1  ;;  %6611 = vmatmul.mubr.msk.f32.vlgmr.msra.gmra.mxu1 %vm190_vm1, %v1567_v16  ;;  %v8882_v16 = vld [vmem:[#allocation2 + $0xa8] sm:$0xff] }
 0x121   :  { %6613 = vmatprep.subr.mxu0 %v7810_v0  ;;  %6629 = vmatprep.mubr.msk.f32.mxu0 %vm7811_vm0, %v7810_v0 }
 0x122   :  { %6632 = vmatprep.subr.mxu1 %v7810_v0  ;;  %6648 = vmatprep.mubr.msk.f32.mxu1 %vm7811_vm0, %v7810_v0 }
 0x123   :  { %6614 = vmatpush3.msk.msra.mxu0 %vm1657_vm2, %v8798_v27  ;;  %6633 = vmatpush3.msk.msra.mxu1 %vm1657_vm2, %v8835_v50 }
 0x124   :  { %6615 = vmatprep.subr.mxu0 %v7810_v0  ;;  %6634 = vmatprep.subr.mxu1 %v7810_v0 }
 0x125   :  { %6616 = vmatpush3.msra.mxu0 %v8800_v28  ;;  %6635 = vmatpush3.msra.mxu1 %v8839_v53 }
 0x126   :  { %6617 = vmatprep.subr.mxu0 %v7810_v0  ;;  %6636 = vmatprep.subr.mxu1 %v7810_v0 }
 0x127   :  { %6618 = vmatpush3.msra.mxu0 %v8805_v29  ;;  %6637 = vmatpush3.msra.mxu1 %v8843_v54 }
 0x128   :  { %6619 = vmatprep.subr.mxu0 %v7810_v0  ;;  %6638 = vmatprep.subr.mxu1 %v7810_v0 }
 0x129   :  { %v562_v17 = vpop.f32.mrf.mxu0  ;;  %6620 = vmatpush3.msra.mxu0 %v8809_v30  ;;  %6639 = vmatpush3.msra.mxu1 %v8847_v55 }
 0x12a   :  { %6621 = vmatprep.subr.mxu0 %v7810_v0  ;;  %v566_v41 = vadd.f32 %v562_v17, %v8757_v14  ;;  %6640 = vmatprep.subr.mxu1 %v7810_v0  ;;  %v8875_v14 = vld [vmem:[#allocation2 + $0xb0] sm:$0xff] }
 0x12b   :  { %v633_v18 = vpop.f32.mrf.mxu1  ;;  %v6207_v19 = vpop.f32.mrf.mxu0  ;;  %6622 = vmatpush3.msra.mxu0 %v8813_v31  ;;  %6641 = vmatpush3.msra.mxu1 %v8851_v56 }
 0x12c   :  { %6623 = vmatprep.subr.mxu0 %v7810_v0  ;;  %v637_v33 = vadd.f32 %v8690_v2, %v633_v18  ;;  %6642 = vmatprep.subr.mxu1 %v7810_v0  ;;  %v8890_v18 = vld [vmem:[#allocation2 + $0x98] sm:$0xff] }
 0x12d   :  { %v6234_v20 = vpop.f32.mrf.mxu1  ;;  %6624 = vmatpush3.msra.mxu0 %v8817_v32  ;;  %6643 = vmatpush3.msra.mxu1 %v8855_v57 }
 0x12e   :  { %6625 = vmatprep.subr.mxu0 %v7810_v0  ;;  %6644 = vmatprep.subr.mxu1 %v7810_v0 }
 0x12f   :  { %6626 = vmatpush3.msra.mxu0 %v8824_v40  ;;  %6645 = vmatpush3.msra.mxu1 %v8859_v58 }
 0x130   :  { %6627 = vmatprep.subr.mxu0 %v7810_v0  ;;  %6646 = vmatprep.subr.mxu1 %v7810_v0 }
 0x131   :  { %6628 = vmatpush3.msra.mxu0 %v8829_v44  ;;  %6647 = vmatpush3.msra.mxu1 %v8863_v59 }
 0x132   :  { %6651 = vmatprep.subr.mxu0 %v7810_v0  ;;  %6670 = vmatprep.subr.mxu1 %v7810_v0 }
 0x143   :  { %v704_v21 = vpop.f32.mrf.mxu0 }
 0x144   :  { %v708_v34 = vadd.f32 %v704_v21, %v637_v33 }
 0x145   :  { %v775_v22 = vpop.f32.mrf.mxu1  ;;  %v6261_v23 = vpop.f32.mrf.mxu0 }
 0x146   :  { %v779_v35 = vadd.f32 %v775_v22, %v708_v34  ;;  %v8894_v22 = vld [vmem:[#allocation2 + $0x90] sm:$0xff] }
 0x147   :  { %v6288_v24 = vpop.f32.mrf.mxu1 }
 0x15d   :  { %v846_v36 = vpop.f32.mrf.mxu0 }
 0x15e   :  { %v850_v37 = vadd.f32 %v846_v36, %v779_v35  ;;  %v8898_v35 = vld [vmem:[#allocation2 + $0x88] sm:$0xff] }
 0x15f   :  { %v920_v38 = vpop.f32.mrf.mxu1  ;;  %v6315_v39 = vpop.f32.mrf.mxu0 }
 0x160   :  { %v924_v42 = vadd.f32 %v920_v38, %v850_v37  ;;  %v8904_v37 = vld [vmem:[#allocation2 + $0x80] sm:$0xff]  ;;  %v8911_v39 = vld [vmem:[#allocation2 + $0x138] sm:$0xf] }
 0x161   :  { %v6342_v43 = vpop.f32.mrf.mxu1 }
 0x162   :  { %v1641_v45 = vmax.f32 %v566_v41, %v924_v42  ;;  %v8916_v41 = vld [vmem:[#allocation2 + $0x130] sm:$0xff]  ;;  %v8923_v42 = vld [vmem:[#allocation2 + $0x128] sm:$0xff]  ;;  %v8927_v43 = vld [vmem:[#allocation2 + $0x120] sm:$0xff] }
 0x164   :  { %1644 = vrot.lane.b32.xlu0 %v1641_v45, %s7812_s17 }
 0x177   :  { %v991_v46 = vpop.f32.mrf.mxu0 }
 0x178   :  { %v995_v47 = vadd.f32 %v8690_v2, %v991_v46  ;;  %v8935_v46 = vld [vmem:[#allocation2 + $0x110] sm:$0xff] }
 0x179   :  { %v1062_v48 = vpop.f32.mrf.mxu1  ;;  %v6369_v49 = vpop.f32.mrf.mxu0 }
 0x17a   :  { %v1066_v51 = vadd.f32 %v1062_v48, %v995_v47  ;;  %v8939_v47 = vld [vmem:[#allocation2 + $0x108] sm:$0xff]  ;;  %v8943_v48 = vld [vmem:[#allocation2 + $0x100] sm:$0xff] }
 0x17b   :  { %v6396_v52 = vpop.f32.mrf.mxu1 }
 0x17c   :  { %v8980_v52 = vld [vmem:[#allocation2 + $0xe8] sm:$0xff] }
 0x191   :  { %v1133_v60 = vpop.f32.mrf.mxu0 }
 0x192   :  { %v1137_v61 = vadd.f32 %v1133_v60, %v1066_v51  ;;  %v8973_v51 = vld [vmem:[#allocation2 + $0xf0] sm:$0xff]  ;;  %v9026_v60 = vld [vmem:[%s10733_s1 + $0x48] sm:$0xff] }
 0x193   :  { %v1204_v62 = vpop.f32.mrf.mxu1  ;;  %v6423_v63 = vpop.f32.mrf.mxu0 }
 0x194   :  { %v1208_v25 = vadd.f32 %v1204_v62, %v1137_v61  ;;  %v9033_v61 = vld [vmem:[%s10733_s1 + $0x40] sm:$0xff]  ;;  %v9040_v62 = vld [vmem:[%s10733_s1 + $0x38] sm:$0xff]  ;;  %v9047_v63 = vld [vmem:[%s10733_s1 + $0x30] sm:$0xff] }
 0x195   :  { %v6450_v26 = vpop.f32.mrf.mxu1 }
 0x196   :  { %v9061_v26 = vld [vmem:[%s10733_s1 + $0x20] sm:$0xff] }
 0x1ab   :  { %v1278_v1 = vpop.f32.mrf.mxu0 }
 0x1ac   :  { %v1282_v33 = vadd.f32 %v1278_v1, %v1208_v25  ;;  %v9054_v25 = vld [vmem:[%s10733_s1 + $0x28] sm:$0xff]  ;;  %v9068_v1 = vld [vmem:[%s10733_s1 + $0x18] sm:$0xff] }
 0x1ad   :  { %v1349_v3 = vpop.f32.mrf.mxu1  ;;  %v6477_v4 = vpop.f32.mrf.mxu0 }
 0x1ae   :  { %v1353_v13 = vadd.f32 %v8690_v2, %v1349_v3  ;;  %v8886_v2 = vld [vmem:[#allocation2 + $0xa0] sm:$0xff]  ;;  %v9075_v3 = vld [vmem:[%s10733_s1 + $0x10] sm:$0xff]  ;;  %v9082_v4 = vld [vmem:[%s10733_s1 + $0x8] sm:$0xff] }
 0x1af   :  { %v6504_v5 = vpop.f32.mrf.mxu1 }
 0x1b0   :  { %v9088_v5 = vld [vmem:[%s10732_s0 + $0x20] sm:$0xff] }
 0x1c5   :  { %v1420_v6 = vpop.f32.mrf.mxu0 }
 0x1c6   :  { %v1424_v15 = vadd.f32 %v1420_v6, %v1353_v13  ;;  %v9094_v6 = vld [vmem:[%s10733_s1] sm:$0xff]  ;;  %v9140_v13 = vld [vmem:[%s10733_s1 + $0xf0] sm:$0xff] }
 0x1c7   :  { %v1491_v7 = vpop.f32.mrf.mxu1  ;;  %v6531_v8 = vpop.f32.mrf.mxu0 }
 0x1c8   :  { %v1495_v17 = vadd.f32 %v1491_v7, %v1424_v15  ;;  %v9103_v7 = vld [vmem:[%s10733_s1 + $0x118] sm:$0xff]  ;;  %v9112_v8 = vld [vmem:[%s10733_s1 + $0x110] sm:$0xff]  ;;  %v9147_v15 = vld [vmem:[%s10733_s1 + $0xe8] sm:$0xff] }
 0x1c9   :  { %v6558_v9 = vpop.f32.mrf.mxu1 }
 0x1ca   :  { %v9119_v9 = vld [vmem:[%s10733_s1 + $0x108] sm:$0xff] }
 0x1d6   :  { %v1645_v10 = vpop.permute.xlu0 %1644 }
 0x1d7   :  { %v8868_v11 = vmax.f32 %v1641_v45, %v1645_v10  ;;  %v8931_v45 = vld [vmem:[#allocation2 + $0x118] sm:$0xff]  ;;  %v9126_v10 = vld [vmem:[%s10733_s1 + $0x100] sm:$0xff] }
 0x1d9   :  { %6630 = vmatmul.mubr.msk.f32.vlgmr.msra.gmra.mxu0 %vm1653_vm3, %v8868_v11  ;;  %v1815_v38 = vrot.slane %v8868_v11, 1  ;;  %v1969_v49 = vrot.slane %v8868_v11, 2  ;;  %v9133_v11 = vld [vmem:[%s10733_s1 + $0xf8] sm:$0xff] }
 0x1da   :  { %6652 = vmatpush3.msk.msra.mxu0 %vm1657_vm2, %v8870_v12  ;;  %6667 = vmatprep.mubr.msk.f32.mxu0 %vm7811_vm0, %v7810_v0 }
 0x1db   :  { %6653 = vmatprep.subr.mxu0 %v7810_v0 }
 0x1dc   :  { %6654 = vmatpush3.msra.mxu0 %v8875_v14 }
 0x1dd   :  { %6655 = vmatprep.subr.mxu0 %v7810_v0 }
 0x1de   :  { %6656 = vmatpush3.msra.mxu0 %v8882_v16 }
 0x1df   :  { %6657 = vmatprep.subr.mxu0 %v7810_v0 }
 0x1e0   :  { %v1562_v19 = vpop.f32.mrf.mxu0  ;;  %v1636_v20 = vpop.f32.mrf.mxu1  ;;  %6658 = vmatpush3.msra.mxu0 %v8886_v2 }
 0x1e1   :  { %v1566_v21 = vadd.f32 %v1562_v19, %v1495_v17  ;;  %6659 = vmatprep.subr.mxu0 %v7810_v0  ;;  %v9154_v17 = vld [vmem:[%s10733_s1 + $0xe0] sm:$0xff]  ;;  %v9161_v19 = vld [vmem:[%s10733_s1 + $0xd8] sm:$0xff] }
 0x1e2   :  { %v6585_v23 = vpop.f32.mrf.mxu0  ;;  %v6612_v24 = vpop.f32.mrf.mxu1  ;;  %6660 = vmatpush3.msra.mxu0 %v8890_v18 }
 0x1e3   :  { %v1640_v34 = vadd.f32 %v1636_v20, %v1566_v21  ;;  %6661 = vmatprep.subr.mxu0 %v7810_v0  ;;  %v9168_v20 = vld [vmem:[%s10733_s1 + $0xd0] sm:$0xff]  ;;  %v9175_v21 = vld [vmem:[%s10733_s1 + $0xc8] sm:$0xff]  ;;  %v9187_v24 = vld [vmem:[%s10733_s1 + $0xc0] sm:$0xff] }
 0x1e4   :  { %6662 = vmatpush3.msra.mxu0 %v8894_v22  ;;  %v9181_v23 = vld [vmem:[%s10732_s0 + $0x30] sm:$0xff]  ;;  %10773 = vst [vmem:[#allocation12_spill] sm:$0xff] %v9187_v24 }
 0x1e5   :  { %v8901_v36 = vmax.f32 %v1282_v33, %v1640_v34  ;;  %6663 = vmatprep.subr.mxu0 %v7810_v0  ;;  %v9196_v33 = vld [vmem:[%s10733_s1 + $0x1d8] sm:$0xff]  ;;  %v9205_v34 = vld [vmem:[%s10733_s1 + $0x1d0] sm:$0xff] }
 0x1e6   :  { %6664 = vmatpush3.msra.mxu0 %v8898_v35  ;;  %10774 = vst [vmem:[#allocation13_spill] sm:$0xff] %v9196_v33  ;;  %10775 = vst [vmem:[#allocation11_spill] sm:$0xff] %v9205_v34 }
 0x1e7   :  { %1649 = vrot.lane.b32.xlu0 %v8901_v36, %s7812_s17  ;;  %6665 = vmatprep.subr.mxu0 %v7810_v0 }
 0x1e8   :  { %6666 = vmatpush3.msra.mxu0 %v8904_v37 }
 0x1e9   :  { %6668 = vmatmul.mubr.msk.f32.vlgmr.msra.gmra.mxu0 %vm1653_vm3, %v1815_v38  ;;  %6689 = vmatprep.subr.mxu0 %v7810_v0 }
 0x1ea   :  { %6690 = vmatpush3.msk.msra.mxu0 %vm1657_vm2, %v8911_v39  ;;  %6705 = vmatprep.mubr.msk.f32.mxu0 %vm7811_vm0, %v7810_v0 }
 0x1eb   :  { %6691 = vmatprep.subr.mxu0 %v7810_v0 }
 0x1ec   :  { %6692 = vmatpush3.msra.mxu0 %v8916_v41 }
 0x1ed   :  { %6693 = vmatprep.subr.mxu0 %v7810_v0 }
 0x1ee   :  { %6694 = vmatpush3.msra.mxu0 %v8923_v42 }
 0x1ef   :  { %6695 = vmatprep.subr.mxu0 %v7810_v0 }
 0x1f0   :  { %6696 = vmatpush3.msra.mxu0 %v8927_v43 }
 0x1f1   :  { %6697 = vmatprep.subr.mxu0 %v7810_v0 }
 0x1f2   :  { %6698 = vmatpush3.msra.mxu0 %v8931_v45 }
 0x1f3   :  { %6699 = vmatprep.subr.mxu0 %v7810_v0 }
 0x1f4   :  { %6700 = vmatpush3.msra.mxu0 %v8935_v46 }
 0x1f5   :  { %6701 = vmatprep.subr.mxu0 %v7810_v0 }
 0x1f6   :  { %6702 = vmatpush3.msra.mxu0 %v8939_v47 }
 0x1f7   :  { %6703 = vmatprep.subr.mxu0 %v7810_v0 }
 0x1f8   :  { %6704 = vmatpush3.msra.mxu0 %v8943_v48 }
 0x1f9   :  { %6706 = vmatmul.mubr.msk.f32.vlgmr.msra.gmra.mxu0 %vm1653_vm3, %v1969_v49  ;;  %6727 = vmatprep.subr.mxu0 %v7810_v0 }
 0x1fa   :  { %6728 = vmatpush3.msk.msra.mxu0 %vm1657_vm2, %v8835_v50  ;;  %6743 = vmatprep.mubr.msk.f32.mxu0 %vm7811_vm0, %v7810_v0  ;;  %v8968_v50 = vld [vmem:[#allocation2 + $0xf8] sm:$0xf] }
 0x1fb   :  { %6729 = vmatprep.subr.mxu0 %v7810_v0 }
 0x1fc   :  { %6730 = vmatpush3.msra.mxu0 %v8839_v53  ;;  %v8984_v53 = vld [vmem:[#allocation2 + $0xe0] sm:$0xff] }
 0x1fd   :  { %6731 = vmatprep.subr.mxu0 %v7810_v0 }
 0x1fe   :  { %6732 = vmatpush3.msra.mxu0 %v8843_v54  ;;  %v8988_v54 = vld [vmem:[#allocation2 + $0xd8] sm:$0xff] }
 0x1ff   :  { %6733 = vmatprep.subr.mxu0 %v7810_v0 }
 0x200   :  { %6734 = vmatpush3.msra.mxu0 %v8847_v55  ;;  %v8992_v55 = vld [vmem:[#allocation2 + $0xd0] sm:$0xff] }
 0x201   :  { %6735 = vmatprep.subr.mxu0 %v7810_v0 }
 0x202   :  { %6736 = vmatpush3.msra.mxu0 %v8851_v56  ;;  %v8996_v56 = vld [vmem:[#allocation2 + $0xc8] sm:$0xff] }
 0x203   :  { %6737 = vmatprep.subr.mxu0 %v7810_v0 }
 0x204   :  { %6738 = vmatpush3.msra.mxu0 %v8855_v57  ;;  %v9000_v57 = vld [vmem:[#allocation2 + $0xc0] sm:$0xff] }
 0x205   :  { %6739 = vmatprep.subr.mxu0 %v7810_v0 }
 0x206   :  { %6740 = vmatpush3.msra.mxu0 %v8859_v58  ;;  %v9010_v58 = vld [vmem:[%s10733_s1 + $0x58] sm:$0xff] }
 0x207   :  { %6741 = vmatprep.subr.mxu0 %v7810_v0 }
 0x208   :  { %6742 = vmatpush3.msra.mxu0 %v8863_v59  ;;  %v9019_v59 = vld [vmem:[%s10733_s1 + $0x50] sm:$0xff] }
 0x209   :  { %6744 = vmatmul.mubr.msk.f32.vlgmr.msra.gmra.mxu0 %vm1653_vm3, %v1815_v38  ;;  %6765 = vmatprep.subr.mxu0 %v7810_v0  ;;  %v9212_v38 = vld [vmem:[%s10733_s1 + $0x1c8] sm:$0xff] }
 0x20a   :  { %6766 = vmatpush3.msk.msra.mxu0 %vm1657_vm2, %v8968_v50  ;;  %6781 = vmatprep.mubr.msk.f32.mxu0 %vm7811_vm0, %v7810_v0  ;;  %10776 = vst [vmem:[#allocation14_spill] sm:$0xff] %v9212_v38 }
 0x20b   :  { %6767 = vmatprep.subr.mxu0 %v7810_v0 }
 0x20c   :  { %6768 = vmatpush3.msra.mxu0 %v8973_v51 }
 0x20d   :  { %6769 = vmatprep.subr.mxu0 %v7810_v0 }
 0x20e   :  { %6770 = vmatpush3.msra.mxu0 %v8980_v52 }
 0x20f   :  { %6771 = vmatprep.subr.mxu0 %v7810_v0 }
 0x210   :  { %6772 = vmatpush3.msra.mxu0 %v8984_v53 }
 0x211   :  { %6773 = vmatprep.subr.mxu0 %v7810_v0 }
 0x212   :  { %6774 = vmatpush3.msra.mxu0 %v8988_v54 }
 0x213   :  { %6775 = vmatprep.subr.mxu0 %v7810_v0 }
 0x214   :  { %6776 = vmatpush3.msra.mxu0 %v8992_v55 }
 0x215   :  { %6777 = vmatprep.subr.mxu0 %v7810_v0 }
 0x216   :  { %6778 = vmatpush3.msra.mxu0 %v8996_v56 }
 0x217   :  { %6779 = vmatprep.subr.mxu0 %v7810_v0 }
 0x218   :  { %6780 = vmatpush3.msra.mxu0 %v9000_v57 }
 0x219   :  { %6782 = vmatmul.mubr.msk.f32.vlgmr.msra.gmra.mxu0 %vm1653_vm3, %v1969_v49  ;;  %6803 = vmatprep.subr.mxu0 %v7810_v0  ;;  %v9219_v49 = vld [vmem:[%s10733_s1 + $0x1c0] sm:$0xff] }
 0x21a   :  { %6804 = vmatpush3.msra.mxu0 %v9010_v58  ;;  %6827 = vmatprep.mubr.msk.f32.mxu0 %vm7811_vm0, %v7810_v0  ;;  %10777 = vst [vmem:[#allocation15_spill] sm:$0xff] %v9219_v49 }
 0x21b   :  { %6805 = vmatprep.subr.mxu0 %v7810_v0 }
 0x21c   :  { %6806 = vmatpush3.msra.mxu0 %v9019_v59 }
 0x21d   :  { %6807 = vmatprep.subr.mxu0 %v7810_v0 }
 0x21e   :  { %6808 = vmatpush3.msra.mxu0 %v9026_v60 }
 0x21f   :  { %6809 = vmatprep.subr.mxu0 %v7810_v0 }
 0x220   :  { %6810 = vmatpush3.msra.mxu0 %v9033_v61 }
 0x221   :  { %6811 = vmatprep.subr.mxu0 %v7810_v0 }
 0x222   :  { %6812 = vmatpush3.msra.mxu0 %v9040_v62 }
 0x223   :  { %6813 = vmatprep.subr.mxu0 %v7810_v0 }
 0x224   :  { %6814 = vmatpush3.msra.mxu0 %v9047_v63 }
 0x225   :  { %6815 = vmatprep.subr.mxu0 %v7810_v0 }
 0x226   :  { %6816 = vmatpush3.msra.mxu0 %v9054_v25 }
 0x227   :  { %6817 = vmatprep.subr.mxu0 %v7810_v0 }
 0x228   :  { %6818 = vmatpush3.msra.mxu0 %v9061_v26 }
 0x229   :  { %6819 = vmatprep.subr.mxu0 %v7810_v0 }
 0x22a   :  { %6820 = vmatpush3.msra.mxu0 %v9068_v1 }
 0x22b   :  { %6821 = vmatprep.subr.mxu0 %v7810_v0 }
 0x22c   :  { %6822 = vmatpush3.msra.mxu0 %v9075_v3 }
 0x22d   :  { %6823 = vmatprep.subr.mxu0 %v7810_v0 }
 0x22e   :  { %6824 = vmatpush3.msra.mxu0 %v9082_v4 }
 0x22f   :  { %6825 = vmatprep.subr.mxu0 %v7810_v0 }
 0x230   :  { %6826 = vmatpush3.msra.mxu0 %v9094_v6 }
 0x231   :  { %6857 = vmatprep.subr.mxu0 %v7810_v0  ;;  %6828 = vmatmul.mubr.msk.f32.vlgmr.msra.gmra.mxu0 %vm190_vm1, %v9088_v5 }
 0x232   :  { %6858 = vmatpush3.msra.mxu0 %v9103_v7  ;;  %6881 = vmatprep.mubr.msk.f32.mxu0 %vm7811_vm0, %v7810_v0 }
 0x233   :  { %6859 = vmatprep.subr.mxu0 %v7810_v0 }
 0x234   :  { %6860 = vmatpush3.msra.mxu0 %v9112_v8 }
 0x235   :  { %6861 = vmatprep.subr.mxu0 %v7810_v0 }
 0x236   :  { %6862 = vmatpush3.msra.mxu0 %v9119_v9 }
 0x237   :  { %6863 = vmatprep.subr.mxu0 %v7810_v0 }
 0x238   :  { %6864 = vmatpush3.msra.mxu0 %v9126_v10 }
 0x239   :  { %6865 = vmatprep.subr.mxu0 %v7810_v0 }
 0x23a   :  { %6866 = vmatpush3.msra.mxu0 %v9133_v11 }
 0x23b   :  { %6867 = vmatprep.subr.mxu0 %v7810_v0 }
 0x23c   :  { %6868 = vmatpush3.msra.mxu0 %v9140_v13 }
 0x23d   :  { %6869 = vmatprep.subr.mxu0 %v7810_v0 }
 0x23e   :  { %6870 = vmatpush3.msra.mxu0 %v9147_v15 }
 0x23f   :  { %6871 = vmatprep.subr.mxu0 %v7810_v0 }
 0x240   :  { %6872 = vmatpush3.msra.mxu0 %v9154_v17 }
 0x241   :  { %6873 = vmatprep.subr.mxu0 %v7810_v0 }
 0x242   :  { %6874 = vmatpush3.msra.mxu0 %v9161_v19 }
 0x243   :  { %6875 = vmatprep.subr.mxu0 %v7810_v0 }
 0x244   :  { %6876 = vmatpush3.msra.mxu0 %v9168_v20 }
 0x245   :  { %6877 = vmatprep.subr.mxu0 %v7810_v0 }
 0x246   :  { %6878 = vmatpush3.msra.mxu0 %v9175_v21 }
 0x247   :  { %6879 = vmatprep.subr.mxu0 %v7810_v0 }
 0x248   :  { %6880 = vmatpush3.msra.mxu0 %v9187_v24  ;;  %v9257_v24 = vld [vmem:[%s10733_s1 + $0x198] sm:$0xff] }
 0x249   :  { %6911 = vmatprep.subr.mxu0 %v7810_v0  ;;  %6882 = vmatmul.mubr.msk.f32.vlgmr.msra.gmra.mxu0 %vm190_vm1, %v9181_v23 }
 0x24a   :  { %6912 = vmatpush3.msra.mxu0 %v9196_v33  ;;  %6935 = vmatprep.mubr.msk.f32.mxu0 %vm7811_vm0, %v7810_v0 }
 0x24b   :  { %6913 = vmatprep.subr.mxu0 %v7810_v0 }
 0x24c   :  { %6914 = vmatpush3.msra.mxu0 %v9205_v34  ;;  %v9226_v34 = vld [vmem:[%s10733_s1 + $0x1b8] sm:$0xff] }
 0x24d   :  { %6915 = vmatprep.subr.mxu0 %v7810_v0  ;;  %10778 = vst [vmem:[#allocation16_spill] sm:$0xff] %v9226_v34 }
 0x24e   :  { %6916 = vmatpush3.msra.mxu0 %v9212_v38  ;;  %v9233_v38 = vld [vmem:[%s10733_s1 + $0x1b0] sm:$0xff] }
 0x24f   :  { %6917 = vmatprep.subr.mxu0 %v7810_v0  ;;  %10779 = vst [vmem:[#allocation17_spill] sm:$0xff] %v9233_v38 }
 0x250   :  { %6918 = vmatpush3.msra.mxu0 %v9219_v49  ;;  %v9240_v49 = vld [vmem:[%s10733_s1 + $0x1a8] sm:$0xff] }
 0x251   :  { %6919 = vmatprep.subr.mxu0 %v7810_v0 }
 0x252   :  { %6920 = vmatpush3.msra.mxu0 %v9226_v34  ;;  %v9247_v34 = vld [vmem:[%s10733_s1 + $0x1a0] sm:$0xff] }
 0x253   :  { %6921 = vmatprep.subr.mxu0 %v7810_v0  ;;  %10780 = vst [vmem:[#allocation18_spill] sm:$0xff] %v9247_v34 }
 0x254   :  { %6922 = vmatpush3.msra.mxu0 %v9233_v38 }
 0x255   :  { %6923 = vmatprep.subr.mxu0 %v7810_v0 }
 0x256   :  { %6924 = vmatpush3.msra.mxu0 %v9240_v49 }
 0x257   :  { %6925 = vmatprep.subr.mxu0 %v7810_v0 }
 0x258   :  { %6926 = vmatpush3.msra.mxu0 %v9247_v34  ;;  %v9266_v34 = vld [vmem:[%s10733_s1 + $0x190] sm:$0xff] }
 0x259   :  { %v1650_v33 = vpop.permute.xlu0 %1649  ;;  %6927 = vmatprep.subr.mxu0 %v7810_v0 }
 0x25a   :  { %v9252_v38 = vmax.f32 %v8901_v36, %v1650_v33  ;;  %6928 = vmatpush3.msra.mxu0 %v9257_v24  ;;  %v9275_v36 = vrot.slane %v9088_v5, 1  ;;  %v9282_v33 = vld [vmem:[%s10733_s1 + $0x188] sm:$0xff] }
 0x25b   :  { %6929 = vmatprep.subr.mxu0 %v7810_v0 }
 0x25c   :  { %6649 = vmatmul.mubr.msk.f32.vlgmr.msra.gmra.mxu1 %vm1653_vm3, %v9252_v38  ;;  %6930 = vmatpush3.msra.mxu0 %v9266_v34 }
 0x25d   :  { %6671 = vmatpush3.msk.msra.mxu1 %vm1657_vm2, %v8968_v50  ;;  %6686 = vmatprep.mubr.msk.f32.mxu1 %vm7811_vm0, %v7810_v0  ;;  %v9291_v50 = vld [vmem:[%s10733_s1 + $0x180] sm:$0xff] }
 0x25e   :  { %6672 = vmatprep.subr.mxu1 %v7810_v0  ;;  %6931 = vmatprep.subr.mxu0 %v7810_v0 }
 0x25f   :  { %6673 = vmatpush3.msra.mxu1 %v8973_v51  ;;  %6932 = vmatpush3.msra.mxu0 %v9282_v33  ;;  %v9303_v51 = vld [vmem:[%s10733_s1 + $0xb8] sm:$0xff] }
 0x260   :  { %6674 = vmatprep.subr.mxu1 %v7810_v0  ;;  %6933 = vmatprep.subr.mxu0 %v7810_v0 }
 0x261   :  { %6675 = vmatpush3.msra.mxu1 %v8980_v52  ;;  %6934 = vmatpush3.msra.mxu0 %v9291_v50  ;;  %v9312_v52 = vld [vmem:[%s10733_s1 + $0xb0] sm:$0xff] }
 0x262   :  { %6676 = vmatprep.subr.mxu1 %v7810_v0  ;;  %6936 = vmatmul.mubr.msk.f32.vlgmr.msra.gmra.mxu0 %vm190_vm1, %v9275_v36 }
 0x263   :  { %6677 = vmatpush3.msra.mxu1 %v8984_v53  ;;  %6965 = vmatprep.subr.mxu0 %v7810_v0  ;;  %v9321_v53 = vld [vmem:[%s10733_s1 + $0xa8] sm:$0xff] }
 0x264   :  { %6678 = vmatprep.subr.mxu1 %v7810_v0  ;;  %6966 = vmatpush3.msra.mxu0 %v9303_v51 }
 0x265   :  { %6679 = vmatpush3.msra.mxu1 %v8988_v54  ;;  %6967 = vmatprep.subr.mxu0 %v7810_v0  ;;  %v1892_v54 = vrot.slane %v9252_v38, 1 }
 0x266   :  { %6680 = vmatprep.subr.mxu1 %v7810_v0  ;;  %6968 = vmatpush3.msra.mxu0 %v9312_v52 }
 0x267   :  { %6681 = vmatpush3.msra.mxu1 %v8992_v55  ;;  %6969 = vmatprep.subr.mxu0 %v7810_v0  ;;  %v9331_v55 = vld [vmem:[%s10733_s1 + $0xa0] sm:$0xff] }
 0x268   :  { %6682 = vmatprep.subr.mxu1 %v7810_v0  ;;  %6970 = vmatpush3.msra.mxu0 %v9321_v53 }
 0x269   :  { %6683 = vmatpush3.msra.mxu1 %v8996_v56  ;;  %6971 = vmatprep.subr.mxu0 %v7810_v0  ;;  %v9348_v56 = vld [vmem:[%s10733_s1 + $0x98] sm:$0xff] }
 0x26a   :  { %6684 = vmatprep.subr.mxu1 %v7810_v0  ;;  %6972 = vmatpush3.msra.mxu0 %v9331_v55 }
 0x26b   :  { %6685 = vmatpush3.msra.mxu1 %v9000_v57  ;;  %6973 = vmatprep.subr.mxu0 %v7810_v0  ;;  %v9599_v57 = vld [vmem:[%s10732_s0 + $0x28] sm:$0xff] }
 0x26c   :  { %6687 = vmatmul.mubr.msk.f32.vlgmr.msra.gmra.mxu1 %vm1653_vm3, %v1892_v54  ;;  %6708 = vmatprep.subr.mxu1 %v7810_v0 }
 0x26d   :  { %6709 = vmatpush3.msk.msra.mxu1 %vm1657_vm2, %v8798_v27  ;;  %6724 = vmatprep.mubr.msk.f32.mxu1 %vm7811_vm0, %v7810_v0  ;;  %v9357_v27 = vld [vmem:[%s10733_s1 + $0x90] sm:$0xff] }
 0x26e   :  { %6710 = vmatprep.subr.mxu1 %v7810_v0  ;;  %6974 = vmatpush3.msra.mxu0 %v9348_v56 }
 0x26f   :  { %6711 = vmatpush3.msra.mxu1 %v8800_v28  ;;  %6975 = vmatprep.subr.mxu0 %v7810_v0  ;;  %v9366_v28 = vld [vmem:[%s10733_s1 + $0x88] sm:$0xff] }
 0x270   :  { %6712 = vmatprep.subr.mxu1 %v7810_v0  ;;  %6976 = vmatpush3.msra.mxu0 %v9357_v27 }
 0x271   :  { %6713 = vmatpush3.msra.mxu1 %v8805_v29  ;;  %6977 = vmatprep.subr.mxu0 %v7810_v0  ;;  %v9375_v29 = vld [vmem:[%s10733_s1 + $0x80] sm:$0xff] }
 0x272   :  { %6714 = vmatprep.subr.mxu1 %v7810_v0  ;;  %6978 = vmatpush3.msra.mxu0 %v9366_v28 }
 0x273   :  { %6715 = vmatpush3.msra.mxu1 %v8809_v30  ;;  %6979 = vmatprep.subr.mxu0 %v7810_v0  ;;  %v9384_v30 = vld [vmem:[%s10733_s1 + $0x78] sm:$0xff] }
 0x274   :  { %6716 = vmatprep.subr.mxu1 %v7810_v0  ;;  %6980 = vmatpush3.msra.mxu0 %v9375_v29 }
 0x275   :  { %6717 = vmatpush3.msra.mxu1 %v8813_v31  ;;  %6981 = vmatprep.subr.mxu0 %v7810_v0  ;;  %v9393_v31 = vld [vmem:[%s10733_s1 + $0x70] sm:$0xff] }
 0x276   :  { %6718 = vmatprep.subr.mxu1 %v7810_v0  ;;  %6982 = vmatpush3.msra.mxu0 %v9384_v30 }
 0x277   :  { %6719 = vmatpush3.msra.mxu1 %v8817_v32  ;;  %6983 = vmatprep.subr.mxu0 %v7810_v0  ;;  %v9402_v32 = vld [vmem:[%s10733_s1 + $0x68] sm:$0xff] }
 0x278   :  { %6720 = vmatprep.subr.mxu1 %v7810_v0  ;;  %6984 = vmatpush3.msra.mxu0 %v9393_v31 }
 0x279   :  { %6721 = vmatpush3.msra.mxu1 %v8824_v40  ;;  %6985 = vmatprep.subr.mxu0 %v7810_v0  ;;  %v9418_v40 = vld [vmem:[%s10733_s1 + $0x60] sm:$0xff] }
 0x27a   :  { %6722 = vmatprep.subr.mxu1 %v7810_v0  ;;  %6986 = vmatpush3.msra.mxu0 %v9402_v32 }
 0x27b   :  { %6723 = vmatpush3.msra.mxu1 %v8829_v44  ;;  %6987 = vmatprep.subr.mxu0 %v7810_v0  ;;  %v9433_v44 = vld [vmem:[%s10733_s1 + $0x178] sm:$0xff] }
 0x27c   :  { %6725 = vmatmul.mubr.msk.f32.vlgmr.msra.gmra.mxu1 %vm1653_vm3, %v9252_v38  ;;  %6746 = vmatprep.subr.mxu1 %v7810_v0 }
 0x27d   :  { %6747 = vmatpush3.msk.msra.mxu1 %vm1657_vm2, %v8870_v12  ;;  %6762 = vmatprep.mubr.msk.f32.mxu1 %vm7811_vm0, %v7810_v0  ;;  %v9442_v12 = vld [vmem:[%s10733_s1 + $0x170] sm:$0xff] }
 0x27e   :  { %6748 = vmatprep.subr.mxu1 %v7810_v0  ;;  %6988 = vmatpush3.msra.mxu0 %v9418_v40 }
 0x27f   :  { %6749 = vmatpush3.msra.mxu1 %v8875_v14  ;;  %6989 = vmatprep.mubr.msk.f32.mxu0 %vm7811_vm0, %v7810_v0  ;;  %v9451_v14 = vld [vmem:[%s10733_s1 + $0x168] sm:$0xff] }
 0x280   :  { %6750 = vmatprep.subr.mxu1 %v7810_v0  ;;  %7019 = vmatprep.subr.mxu0 %v7810_v0 }
 0x281   :  { %6751 = vmatpush3.msra.mxu1 %v8882_v16  ;;  %6990 = vmatmul.mubr.msk.f32.vlgmr.msra.gmra.mxu0 %vm190_vm1, %v9181_v23  ;;  %v9460_v16 = vld [vmem:[%s10733_s1 + $0x160] sm:$0xff] }
 0x282   :  { %6752 = vmatprep.subr.mxu1 %v7810_v0  ;;  %7020 = vmatpush3.msra.mxu0 %v9433_v44 }
 0x283   :  { %6753 = vmatpush3.msra.mxu1 %v8886_v2  ;;  %7021 = vmatprep.subr.mxu0 %v7810_v0  ;;  %v9469_v2 = vld [vmem:[%s10733_s1 + $0x158] sm:$0xff] }
 0x284   :  { %6754 = vmatprep.subr.mxu1 %v7810_v0  ;;  %7022 = vmatpush3.msra.mxu0 %v9442_v12 }
 0x285   :  { %6755 = vmatpush3.msra.mxu1 %v8890_v18  ;;  %7023 = vmatprep.subr.mxu0 %v7810_v0  ;;  %v9486_v18 = vld [vmem:[%s10733_s1 + $0x150] sm:$0xff] }
 0x286   :  { %6756 = vmatprep.subr.mxu1 %v7810_v0  ;;  %7024 = vmatpush3.msra.mxu0 %v9451_v14 }
 0x287   :  { %6757 = vmatpush3.msra.mxu1 %v8894_v22  ;;  %7025 = vmatprep.subr.mxu0 %v7810_v0  ;;  %v9495_v22 = vld [vmem:[%s10733_s1 + $0x148] sm:$0xff] }
 0x288   :  { %6758 = vmatprep.subr.mxu1 %v7810_v0  ;;  %7026 = vmatpush3.msra.mxu0 %v9460_v16 }
 0x289   :  { %6759 = vmatpush3.msra.mxu1 %v8898_v35  ;;  %7027 = vmatprep.subr.mxu0 %v7810_v0  ;;  %v9504_v35 = vld [vmem:[%s10733_s1 + $0x140] sm:$0xff] }
 0x28a   :  { %6760 = vmatprep.subr.mxu1 %v7810_v0  ;;  %7028 = vmatpush3.msra.mxu0 %v9469_v2 }
 0x28b   :  { %6761 = vmatpush3.msra.mxu1 %v8904_v37  ;;  %7029 = vmatprep.subr.mxu0 %v7810_v0  ;;  %v9513_v37 = vld [vmem:[%s10733_s1 + $0x138] sm:$0xff] }
 0x28c   :  { %6763 = vmatmul.mubr.msk.f32.vlgmr.msra.gmra.mxu1 %vm1653_vm3, %v1892_v54  ;;  %6784 = vmatprep.subr.mxu1 %v7810_v0  ;;  %v9658_v54 = vld [vmem:[%s10732_s0 + $0x38] sm:$0xff] }
 0x28d   :  { %6785 = vmatpush3.msk.msra.mxu1 %vm1657_vm2, %v8911_v39  ;;  %6800 = vmatprep.mubr.msk.f32.mxu1 %vm7811_vm0, %v7810_v0  ;;  %v9522_v39 = vld [vmem:[%s10733_s1 + $0x130] sm:$0xff] }
 0x28e   :  { %6786 = vmatprep.subr.mxu1 %v7810_v0  ;;  %7030 = vmatpush3.msra.mxu0 %v9486_v18 }
 0x28f   :  { %6787 = vmatpush3.msra.mxu1 %v8916_v41  ;;  %7031 = vmatprep.subr.mxu0 %v7810_v0  ;;  %v9531_v41 = vld [vmem:[%s10733_s1 + $0x128] sm:$0xff] }
 0x290   :  { %6788 = vmatprep.subr.mxu1 %v7810_v0  ;;  %7032 = vmatpush3.msra.mxu0 %v9495_v22 }
 0x291   :  { %6789 = vmatpush3.msra.mxu1 %v8923_v42  ;;  %7033 = vmatprep.subr.mxu0 %v7810_v0 }
 0x292   :  { %6790 = vmatprep.subr.mxu1 %v7810_v0  ;;  %7034 = vmatpush3.msra.mxu0 %v9504_v35 }
 0x293   :  { %6791 = vmatpush3.msra.mxu1 %v8927_v43  ;;  %7035 = vmatprep.subr.mxu0 %v7810_v0  ;;  %v2330_v43 = vrot.slane %v9252_v38, 2 }
 0x294   :  { %6792 = vmatprep.subr.mxu1 %v7810_v0  ;;  %7036 = vmatpush3.msra.mxu0 %v9513_v37 }
 0x295   :  { %6793 = vmatpush3.msra.mxu1 %v8931_v45  ;;  %7037 = vmatprep.subr.mxu0 %v7810_v0  ;;  %v9543_v45 = vld [vmem:[%s10733_s1 + $0x120] sm:$0xff] }
 0x296   :  { %6794 = vmatprep.subr.mxu1 %v7810_v0  ;;  %7038 = vmatpush3.msra.mxu0 %v9522_v39 }
 0x297   :  { %6795 = vmatpush3.msra.mxu1 %v8935_v46  ;;  %7039 = vmatprep.subr.mxu0 %v7810_v0 }
 0x298   :  { %6796 = vmatprep.subr.mxu1 %v7810_v0  ;;  %7040 = vmatpush3.msra.mxu0 %v9531_v41 }
 0x299   :  { %6797 = vmatpush3.msra.mxu1 %v8939_v47  ;;  %v9535_v42 = vpop.f32.mrf.mxu0  ;;  %7041 = vmatprep.subr.mxu0 %v7810_v0 }
 0x29a   :  { %6798 = vmatprep.subr.mxu1 %v7810_v0  ;;  %7042 = vmatpush3.msra.mxu0 %v9543_v45 }
 0x29b   :  { %6799 = vmatpush3.msra.mxu1 %v8943_v48  ;;  %v6631_v46 = vpop.f32.mrf.mxu0  ;;  %7043 = vmatprep.mubr.msk.f32.mxu0 %vm7811_vm0, %v7810_v0 }
 0x29c   :  { %6801 = vmatmul.mubr.msk.f32.vlgmr.msra.gmra.mxu1 %vm1653_vm3, %v2330_v43  ;;  %6830 = vmatprep.subr.mxu1 %v7810_v0 }
 0x29d   :  { %6831 = vmatpush3.msra.mxu1 %v9303_v51  ;;  %6854 = vmatprep.mubr.msk.f32.mxu1 %vm7811_vm0, %v7810_v0 }
 0x29e   :  { %6832 = vmatprep.subr.mxu1 %v7810_v0  ;;  %7044 = vmatmul.mubr.msk.f32.vlgmr.msra.gmra.mxu0 %vm190_vm1, %v9275_v36 }
 0x29f   :  { %6833 = vmatpush3.msra.mxu1 %v9312_v52  ;;  %7073 = vmatprep.subr.mxu0 %v7810_v0 }
 0x2a0   :  { %6834 = vmatprep.subr.mxu1 %v7810_v0  ;;  %7074 = vmatpush3.msra.mxu0 %v9010_v58 }
 0x2a1   :  { %6835 = vmatpush3.msra.mxu1 %v9321_v53  ;;  %7075 = vmatprep.subr.mxu0 %v7810_v0 }
 0x2a2   :  { %6836 = vmatprep.subr.mxu1 %v7810_v0  ;;  %7076 = vmatpush3.msra.mxu0 %v9019_v59 }
 0x2a3   :  { %6837 = vmatpush3.msra.mxu1 %v9331_v55  ;;  %7077 = vmatprep.subr.mxu0 %v7810_v0 }
 0x2a4   :  { %6838 = vmatprep.subr.mxu1 %v7810_v0  ;;  %7078 = vmatpush3.msra.mxu0 %v9026_v60 }
 0x2a5   :  { %6839 = vmatpush3.msra.mxu1 %v9348_v56  ;;  %7079 = vmatprep.subr.mxu0 %v7810_v0 }
 0x2a6   :  { %6840 = vmatprep.subr.mxu1 %v7810_v0  ;;  %7080 = vmatpush3.msra.mxu0 %v9033_v61 }
 0x2a7   :  { %6841 = vmatpush3.msra.mxu1 %v9357_v27  ;;  %7081 = vmatprep.subr.mxu0 %v7810_v0 }
 0x2a8   :  { %6842 = vmatprep.subr.mxu1 %v7810_v0  ;;  %7082 = vmatpush3.msra.mxu0 %v9040_v62 }
 0x2a9   :  { %6843 = vmatpush3.msra.mxu1 %v9366_v28  ;;  %v9578_v47 = vpop.f32.mrf.mxu0  ;;  %7083 = vmatprep.subr.mxu0 %v7810_v0 }
 0x2aa   :  { %6844 = vmatprep.subr.mxu1 %v7810_v0  ;;  %7084 = vmatpush3.msra.mxu0 %v9047_v63 }
 0x2ab   :  { %6845 = vmatpush3.msra.mxu1 %v9375_v29  ;;  %v6669_v48 = vpop.f32.mrf.mxu0  ;;  %7085 = vmatprep.subr.mxu0 %v7810_v0 }
 0x2ac   :  { %6846 = vmatprep.subr.mxu1 %v7810_v0  ;;  %7086 = vmatpush3.msra.mxu0 %v9054_v25 }
 0x2ad   :  { %6847 = vmatpush3.msra.mxu1 %v9384_v30  ;;  %7087 = vmatprep.subr.mxu0 %v7810_v0 }
 0x2ae   :  { %6848 = vmatprep.subr.mxu1 %v7810_v0  ;;  %7088 = vmatpush3.msra.mxu0 %v9061_v26 }
 0x2af   :  { %6849 = vmatpush3.msra.mxu1 %v9393_v31  ;;  %7089 = vmatprep.subr.mxu0 %v7810_v0 }
 0x2b0   :  { %6850 = vmatprep.subr.mxu1 %v7810_v0  ;;  %7090 = vmatpush3.msra.mxu0 %v9068_v1 }
 0x2b1   :  { %6851 = vmatpush3.msra.mxu1 %v9402_v32  ;;  %7091 = vmatprep.subr.mxu0 %v7810_v0 }
 0x2b2   :  { %6852 = vmatprep.subr.mxu1 %v7810_v0  ;;  %7092 = vmatpush3.msra.mxu0 %v9075_v3 }
 0x2b3   :  { %6853 = vmatpush3.msra.mxu1 %v9418_v40  ;;  %7093 = vmatprep.subr.mxu0 %v7810_v0 }
 0x2b4   :  { %6855 = vmatmul.mubr.msk.f32.vlgmr.msra.gmra.mxu1 %vm190_vm1, %v9599_v57  ;;  %6884 = vmatprep.subr.mxu1 %v7810_v0 }
 0x2b5   :  { %6885 = vmatpush3.msra.mxu1 %v9433_v44  ;;  %6908 = vmatprep.mubr.msk.f32.mxu1 %vm7811_vm0, %v7810_v0 }
 0x2b6   :  { %6886 = vmatprep.subr.mxu1 %v7810_v0  ;;  %7094 = vmatpush3.msra.mxu0 %v9082_v4 }
 0x2b7   :  { %6887 = vmatpush3.msra.mxu1 %v9442_v12  ;;  %7095 = vmatprep.subr.mxu0 %v7810_v0 }
 0x2b8   :  { %6888 = vmatprep.subr.mxu1 %v7810_v0  ;;  %7096 = vmatpush3.msra.mxu0 %v9094_v6 }
 0x2b9   :  { %6889 = vmatpush3.msra.mxu1 %v9451_v14  ;;  %v9619_v5 = vpop.f32.mrf.mxu0  ;;  %7097 = vmatprep.mubr.msk.f32.mxu0 %vm7811_vm0, %v7810_v0 }
 0x2ba   :  { %6890 = vmatprep.subr.mxu1 %v7810_v0  ;;  %7127 = vmatprep.subr.mxu0 %v7810_v0 }
 0x2bb   :  { %6891 = vmatpush3.msra.mxu1 %v9460_v16  ;;  %v6707_v38 = vpop.f32.mrf.mxu0  ;;  %7098 = vmatmul.mubr.msk.f32.vlgmr.msra.gmra.mxu0 %vm190_vm1, %v9181_v23 }
 0x2bc   :  { %6892 = vmatprep.subr.mxu1 %v7810_v0  ;;  %7128 = vmatpush3.msra.mxu0 %v9103_v7 }
 0x2bd   :  { %6893 = vmatpush3.msra.mxu1 %v9469_v2  ;;  %7129 = vmatprep.subr.mxu0 %v7810_v0 }
 0x2be   :  { %6894 = vmatprep.subr.mxu1 %v7810_v0  ;;  %7130 = vmatpush3.msra.mxu0 %v9112_v8 }
 0x2bf   :  { %6895 = vmatpush3.msra.mxu1 %v9486_v18  ;;  %7131 = vmatprep.subr.mxu0 %v7810_v0 }
 0x2c0   :  { %6896 = vmatprep.subr.mxu1 %v7810_v0  ;;  %7132 = vmatpush3.msra.mxu0 %v9119_v9 }
 0x2c1   :  { %6897 = vmatpush3.msra.mxu1 %v9495_v22  ;;  %7133 = vmatprep.subr.mxu0 %v7810_v0 }
 0x2c2   :  { %6898 = vmatprep.subr.mxu1 %v7810_v0  ;;  %7134 = vmatpush3.msra.mxu0 %v9126_v10 }
 0x2c3   :  { %6899 = vmatpush3.msra.mxu1 %v9504_v35  ;;  %7135 = vmatprep.subr.mxu0 %v7810_v0 }
 0x2c4   :  { %6900 = vmatprep.subr.mxu1 %v7810_v0  ;;  %7136 = vmatpush3.msra.mxu0 %v9133_v11 }
 0x2c5   :  { %6901 = vmatpush3.msra.mxu1 %v9513_v37  ;;  %7137 = vmatprep.subr.mxu0 %v7810_v0 }
 0x2c6   :  { %6902 = vmatprep.subr.mxu1 %v7810_v0  ;;  %7138 = vmatpush3.msra.mxu0 %v9140_v13 }
 0x2c7   :  { %6903 = vmatpush3.msra.mxu1 %v9522_v39  ;;  %7139 = vmatprep.subr.mxu0 %v7810_v0 }
 0x2c8   :  { %6904 = vmatprep.subr.mxu1 %v7810_v0  ;;  %7140 = vmatpush3.msra.mxu0 %v9147_v15 }
 0x2c9   :  { %6905 = vmatpush3.msra.mxu1 %v9531_v41  ;;  %v9660_v43 = vpop.f32.mrf.mxu0  ;;  %7141 = vmatprep.subr.mxu0 %v7810_v0 }
 0x2ca   :  { %6906 = vmatprep.subr.mxu1 %v7810_v0  ;;  %7142 = vmatpush3.msra.mxu0 %v9154_v17 }
 0x2cb   :  { %6907 = vmatpush3.msra.mxu1 %v9543_v45  ;;  %v6745_v46 = vpop.f32.mrf.mxu0  ;;  %7143 = vmatprep.subr.mxu0 %v7810_v0 }
 0x2cc   :  { %6909 = vmatmul.mubr.msk.f32.vlgmr.msra.gmra.mxu1 %vm190_vm1, %v9658_v54  ;;  %6938 = vmatprep.subr.mxu1 %v7810_v0  ;;  %v7683_v46 = vld [vmem:[%s10733_s1 + $0x118] sm:$0xff] }
 0x2cd   :  { %6939 = vmatpush3.msra.mxu1 %v9010_v58  ;;  %6962 = vmatprep.mubr.msk.f32.mxu1 %vm7811_vm0, %v7810_v0  ;;  %v10781_v58 = vld [vmem:[#allocation12_spill] sm:$0xff] }
 0x2ce   :  { %6940 = vmatprep.subr.mxu1 %v7810_v0  ;;  %7144 = vmatpush3.msra.mxu0 %v9161_v19 }
 0x2cf   :  { %6941 = vmatpush3.msra.mxu1 %v9019_v59  ;;  %7145 = vmatprep.subr.mxu0 %v7810_v0  ;;  %v10782_v59 = vld [vmem:[#allocation13_spill] sm:$0xff] }
 0x2d0   :  { %6942 = vmatprep.subr.mxu1 %v7810_v0  ;;  %7146 = vmatpush3.msra.mxu0 %v9168_v20 }
 0x2d1   :  { %6943 = vmatpush3.msra.mxu1 %v9026_v60  ;;  %7147 = vmatprep.subr.mxu0 %v7810_v0 }
 0x2d2   :  { %6944 = vmatprep.subr.mxu1 %v7810_v0  ;;  %7148 = vmatpush3.msra.mxu0 %v9175_v21 }
 0x2d3   :  { %6945 = vmatpush3.msra.mxu1 %v9033_v61  ;;  %7149 = vmatprep.subr.mxu0 %v7810_v0  ;;  %v10783_v61 = vld [vmem:[#allocation11_spill] sm:$0xff] }
 0x2d4   :  { %6946 = vmatprep.subr.mxu1 %v7810_v0  ;;  %7150 = vmatpush3.msra.mxu0 %v10781_v58 }
 0x2d5   :  { %6947 = vmatpush3.msra.mxu1 %v9040_v62  ;;  %7151 = vmatprep.mubr.msk.f32.mxu0 %vm7811_vm0, %v7810_v0 }
 0x2d6   :  { %6948 = vmatprep.subr.mxu1 %v7810_v0  ;;  %7181 = vmatprep.subr.mxu0 %v7810_v0 }
 0x2d7   :  { %6949 = vmatpush3.msra.mxu1 %v9047_v63  ;;  %7152 = vmatmul.mubr.msk.f32.vlgmr.msra.gmra.mxu0 %vm190_vm1, %v9275_v36  ;;  %v10784_v63 = vld [vmem:[#allocation14_spill] sm:$0xff] }
 0x2d8   :  { %6950 = vmatprep.subr.mxu1 %v7810_v0  ;;  %7182 = vmatpush3.msra.mxu0 %v10782_v59 }
 0x2d9   :  { %6951 = vmatpush3.msra.mxu1 %v9054_v25  ;;  %v9698_v60 = vpop.f32.mrf.mxu0  ;;  %7183 = vmatprep.subr.mxu0 %v7810_v0  ;;  %v10785_v25 = vld [vmem:[#allocation15_spill] sm:$0xff] }
 0x2da   :  { %6952 = vmatprep.subr.mxu1 %v7810_v0  ;;  %7184 = vmatpush3.msra.mxu0 %v10783_v61 }
 0x2db   :  { %6953 = vmatpush3.msra.mxu1 %v9061_v26  ;;  %v6783_v62 = vpop.f32.mrf.mxu0  ;;  %7185 = vmatprep.subr.mxu0 %v7810_v0  ;;  %v10786_v26 = vld [vmem:[#allocation16_spill] sm:$0xff] }
 0x2dc   :  { %6954 = vmatprep.subr.mxu1 %v7810_v0  ;;  %7186 = vmatpush3.msra.mxu0 %v10784_v63  ;;  %v7685_v62 = vld [vmem:[%s10733_s1 + $0x108] sm:$0xff] }
 0x2dd   :  { %6955 = vmatpush3.msra.mxu1 %v9068_v1  ;;  %7187 = vmatprep.subr.mxu0 %v7810_v0  ;;  %v10787_v1 = vld [vmem:[#allocation17_spill] sm:$0xff] }
 0x2de   :  { %6956 = vmatprep.subr.mxu1 %v7810_v0  ;;  %7188 = vmatpush3.msra.mxu0 %v10785_v25 }
 0x2df   :  { %6957 = vmatpush3.msra.mxu1 %v9075_v3  ;;  %7189 = vmatprep.subr.mxu0 %v7810_v0  ;;  %v10788_v3 = vld [vmem:[#allocation18_spill] sm:$0xff] }
 0x2e0   :  { %6958 = vmatprep.subr.mxu1 %v7810_v0  ;;  %7190 = vmatpush3.msra.mxu0 %v10786_v26 }
 0x2e1   :  { %6959 = vmatpush3.msra.mxu1 %v9082_v4  ;;  %7191 = vmatprep.subr.mxu0 %v7810_v0  ;;  %v3455_v4 = vrot.slane %v9181_v23, 1 }
 0x2e2   :  { %6960 = vmatprep.subr.mxu1 %v7810_v0  ;;  %7192 = vmatpush3.msra.mxu0 %v10787_v1 }
 0x2e3   :  { %6961 = vmatpush3.msra.mxu1 %v9094_v6  ;;  %7193 = vmatprep.subr.mxu0 %v7810_v0 }
 0x2e4   :  { %6963 = vmatmul.mubr.msk.f32.vlgmr.msra.gmra.mxu1 %vm190_vm1, %v9599_v57  ;;  %6992 = vmatprep.subr.mxu1 %v7810_v0 }
 0x2e5   :  { %6993 = vmatpush3.msra.mxu1 %v9103_v7  ;;  %7016 = vmatprep.mubr.msk.f32.mxu1 %vm7811_vm0, %v7810_v0 }
 0x2e6   :  { %6994 = vmatprep.subr.mxu1 %v7810_v0  ;;  %7194 = vmatpush3.msra.mxu0 %v9240_v49 }
 0x2e7   :  { %6995 = vmatpush3.msra.mxu1 %v9112_v8  ;;  %7195 = vmatprep.subr.mxu0 %v7810_v0 }
 0x2e8   :  { %6996 = vmatprep.subr.mxu1 %v7810_v0  ;;  %7196 = vmatpush3.msra.mxu0 %v10788_v3 }
 0x2e9   :  { %6997 = vmatpush3.msra.mxu1 %v9119_v9  ;;  %7197 = vmatprep.subr.mxu0 %v7810_v0 }
 0x2ea   :  { %6998 = vmatprep.subr.mxu1 %v7810_v0  ;;  %7198 = vmatpush3.msra.mxu0 %v9257_v24 }
 0x2eb   :  { %6999 = vmatpush3.msra.mxu1 %v9126_v10  ;;  %7199 = vmatprep.subr.mxu0 %v7810_v0  ;;  %v9824_v10 = vrot.slane %v9599_v57, 1 }
 0x2ec   :  { %7000 = vmatprep.subr.mxu1 %v7810_v0  ;;  %7200 = vmatpush3.msra.mxu0 %v9266_v34 }
 0x2ed   :  { %7001 = vmatpush3.msra.mxu1 %v9133_v11  ;;  %7201 = vmatprep.subr.mxu0 %v7810_v0  ;;  %v9847_v11 = vld [vmem:[%s10736_s4] ss:$0 sm:$0xff] }
 0x2ee   :  { %7002 = vmatprep.subr.mxu1 %v7810_v0  ;;  %7202 = vmatpush3.msra.mxu0 %v9282_v33 }
 0x2ef   :  { %7003 = vmatpush3.msra.mxu1 %v9140_v13  ;;  %7203 = vmatprep.subr.mxu0 %v7810_v0  ;;  %v1737_v13 = vadd.f32 %v9847_v11, %v9535_v42  ;;  %v7680_v42 = vld [vmem:[%s10733_s1 + $0x10] sm:$0xff] }
 0x2f0   :  { %7004 = vmatprep.subr.mxu1 %v7810_v0  ;;  %7204 = vmatpush3.msra.mxu0 %v9291_v50 }
 0x2f1   :  { %7005 = vmatpush3.msra.mxu1 %v9147_v15  ;;  %7205 = vmatprep.mubr.msk.f32.mxu0 %vm7811_vm0, %v7810_v0  ;;  %v9753_v6 = vpop.f32.mrf.mxu0 }
 0x2f2   :  { %7006 = vmatprep.subr.mxu1 %v7810_v0  ;;  %7206 = vmatmul.mubr.msk.f32.vlgmr.msra.gmra.mxu0 %vm190_vm1, %v3455_v4 }
 0x2f3   :  { %7007 = vmatpush3.msra.mxu1 %v9154_v17  ;;  %7235 = vmatprep.subr.mxu0 %v7810_v0  ;;  %v6829_v7 = vpop.f32.mrf.mxu0 }
 0x2f4   :  { %7008 = vmatprep.subr.mxu1 %v7810_v0  ;;  %7236 = vmatpush3.msra.mxu0 %v9303_v51  ;;  %v7692_v7 = vld [vmem:[%s10733_s1 + $0xd0] sm:$0xff] }
 0x2f5   :  { %7009 = vmatpush3.msra.mxu1 %v9161_v19  ;;  %7237 = vmatprep.subr.mxu0 %v7810_v0 }
 0x2f6   :  { %7010 = vmatprep.subr.mxu1 %v7810_v0  ;;  %7238 = vmatpush3.msra.mxu0 %v9312_v52 }
 0x2f7   :  { %7011 = vmatpush3.msra.mxu1 %v9168_v20  ;;  %7239 = vmatprep.subr.mxu0 %v7810_v0 }
 0x2f8   :  { %7012 = vmatprep.subr.mxu1 %v7810_v0  ;;  %7240 = vmatpush3.msra.mxu0 %v9321_v53 }
 0x2f9   :  { %7013 = vmatpush3.msra.mxu1 %v9175_v21  ;;  %7241 = vmatprep.subr.mxu0 %v7810_v0 }
 0x2fa   :  { %7014 = vmatprep.subr.mxu1 %v7810_v0  ;;  %7242 = vmatpush3.msra.mxu0 %v9331_v55 }
 0x2fb   :  { %7015 = vmatpush3.msra.mxu1 %v10781_v58  ;;  %7243 = vmatprep.subr.mxu0 %v7810_v0 }
 0x2fc   :  { %7017 = vmatmul.mubr.msk.f32.vlgmr.msra.gmra.mxu1 %vm190_vm1, %v9658_v54  ;;  %7046 = vmatprep.subr.mxu1 %v7810_v0 }
 0x2fd   :  { %7047 = vmatpush3.msra.mxu1 %v10782_v59  ;;  %7070 = vmatprep.mubr.msk.f32.mxu1 %vm7811_vm0, %v7810_v0 }
 0x2fe   :  { %7048 = vmatprep.subr.mxu1 %v7810_v0  ;;  %7244 = vmatpush3.msra.mxu0 %v9348_v56 }
 0x2ff   :  { %7049 = vmatpush3.msra.mxu1 %v10783_v61  ;;  %7245 = vmatprep.subr.mxu0 %v7810_v0 }
 0x300   :  { %7050 = vmatprep.subr.mxu1 %v7810_v0  ;;  %7246 = vmatpush3.msra.mxu0 %v9357_v27 }
 0x301   :  { %7051 = vmatpush3.msra.mxu1 %v10784_v63  ;;  %7247 = vmatprep.subr.mxu0 %v7810_v0  ;;  %v7686_v63 = vld [vmem:[%s10733_s1 + $0x100] sm:$0xff] }
 0x302   :  { %7052 = vmatprep.subr.mxu1 %v7810_v0  ;;  %7248 = vmatpush3.msra.mxu0 %v9366_v28 }
 0x303   :  { %7053 = vmatpush3.msra.mxu1 %v10785_v25  ;;  %7249 = vmatprep.subr.mxu0 %v7810_v0  ;;  %v7687_v25 = vld [vmem:[%s10733_s1 + $0xf8] sm:$0xff] }
 0x304   :  { %7054 = vmatprep.subr.mxu1 %v7810_v0  ;;  %7250 = vmatpush3.msra.mxu0 %v9375_v29 }
 0x305   :  { %7055 = vmatpush3.msra.mxu1 %v10786_v26  ;;  %7251 = vmatprep.subr.mxu0 %v7810_v0  ;;  %v7688_v26 = vld [vmem:[%s10733_s1 + $0xf0] sm:$0xff] }
 0x306   :  { %7056 = vmatprep.subr.mxu1 %v7810_v0  ;;  %7252 = vmatpush3.msra.mxu0 %v9384_v30 }
 0x307   :  { %7057 = vmatpush3.msra.mxu1 %v10787_v1  ;;  %7253 = vmatprep.subr.mxu0 %v7810_v0  ;;  %v7689_v1 = vld [vmem:[%s10733_s1 + $0xe8] sm:$0xff] }
 0x308   :  { %7058 = vmatprep.subr.mxu1 %v7810_v0  ;;  %7254 = vmatpush3.msra.mxu0 %v9393_v31 }
 0x309   :  { %7059 = vmatpush3.msra.mxu1 %v9240_v49  ;;  %7255 = vmatprep.subr.mxu0 %v7810_v0  ;;  %v9807_v8 = vpop.f32.mrf.mxu0 }
 0x30a   :  { %7060 = vmatprep.subr.mxu1 %v7810_v0  ;;  %7256 = vmatpush3.msra.mxu0 %v9402_v32 }
 0x30b   :  { %7061 = vmatpush3.msra.mxu1 %v10788_v3  ;;  %7257 = vmatprep.subr.mxu0 %v7810_v0  ;;  %v6883_v9 = vpop.f32.mrf.mxu0  ;;  %v7690_v3 = vld [vmem:[%s10733_s1 + $0xe0] sm:$0xff] }
 0x30c   :  { %7062 = vmatprep.subr.mxu1 %v7810_v0  ;;  %7258 = vmatpush3.msra.mxu0 %v9418_v40  ;;  %v10073_v9 = vld [vmem:[%s10734_s2] ss:$0 sm:$0xff] }
 0x30d   :  { %7063 = vmatpush3.msra.mxu1 %v9257_v24  ;;  %7259 = vmatprep.mubr.msk.f32.mxu0 %vm7811_vm0, %v7810_v0 }
 0x30e   :  { %7064 = vmatprep.subr.mxu1 %v7810_v0  ;;  %7289 = vmatprep.subr.mxu0 %v7810_v0 }
 0x30f   :  { %7065 = vmatpush3.msra.mxu1 %v9266_v34  ;;  %7260 = vmatmul.mubr.msk.f32.vlgmr.msra.gmra.mxu0 %vm190_vm1, %v9275_v36  ;;  %v9906_v36 = vld [vmem:[#allocation2 + $0x38] sm:$0xf] }
 0x310   :  { %7066 = vmatprep.subr.mxu1 %v7810_v0  ;;  %7290 = vmatpush3.msra.mxu0 %v9433_v44 }
 0x311   :  { %7067 = vmatpush3.msra.mxu1 %v9282_v33  ;;  %7291 = vmatprep.subr.mxu0 %v7810_v0  ;;  %v9913_v33 = vld [vmem:[#allocation2 + $0x30] sm:$0xff] }
 0x312   :  { %7068 = vmatprep.subr.mxu1 %v7810_v0  ;;  %7292 = vmatpush3.msra.mxu0 %v9442_v12 }
 0x313   :  { %7069 = vmatpush3.msra.mxu1 %v9291_v50  ;;  %7293 = vmatprep.subr.mxu0 %v7810_v0  ;;  %v9919_v50 = vld [vmem:[#allocation2 + $0x28] sm:$0xff] }
 0x314   :  { %7071 = vmatmul.mubr.msk.f32.vlgmr.msra.gmra.mxu1 %vm190_vm1, %v9824_v10  ;;  %7100 = vmatprep.subr.mxu1 %v7810_v0 }
 0x315   :  { %7101 = vmatpush3.msra.mxu1 %v9303_v51  ;;  %7124 = vmatprep.mubr.msk.f32.mxu1 %vm7811_vm0, %v7810_v0  ;;  %v9925_v51 = vld [vmem:[#allocation2 + $0x20] sm:$0xff] }
 0x316   :  { %7102 = vmatprep.subr.mxu1 %v7810_v0  ;;  %7294 = vmatpush3.msra.mxu0 %v9451_v14 }
 0x317   :  { %7103 = vmatpush3.msra.mxu1 %v9312_v52  ;;  %7295 = vmatprep.subr.mxu0 %v7810_v0  ;;  %v9931_v52 = vld [vmem:[#allocation2 + $0x18] sm:$0xff] }
 0x318   :  { %7104 = vmatprep.subr.mxu1 %v7810_v0  ;;  %7296 = vmatpush3.msra.mxu0 %v9460_v16 }
 0x319   :  { %7105 = vmatpush3.msra.mxu1 %v9321_v53  ;;  %7297 = vmatprep.subr.mxu0 %v7810_v0  ;;  %v9937_v53 = vld [vmem:[#allocation2 + $0x10] sm:$0xff] }
 0x31a   :  { %7106 = vmatprep.subr.mxu1 %v7810_v0  ;;  %7298 = vmatpush3.msra.mxu0 %v9469_v2 }
 0x31b   :  { %7107 = vmatpush3.msra.mxu1 %v9331_v55  ;;  %7299 = vmatprep.subr.mxu0 %v7810_v0  ;;  %v9943_v55 = vld [vmem:[#allocation2 + $0x8] sm:$0xff] }
 0x31c   :  { %7108 = vmatprep.subr.mxu1 %v7810_v0  ;;  %v1810_v15 = vpop.f32.mrf.mxu1  ;;  %7300 = vmatpush3.msra.mxu0 %v9486_v18 }
 0x31d   :  { %v1814_v17 = vadd.f32 %v1810_v15, %v1737_v13  ;;  %7109 = vmatpush3.msra.mxu1 %v9348_v56  ;;  %7301 = vmatprep.subr.mxu0 %v7810_v0  ;;  %v2516_v13 = vadd.f32 %v10073_v9, %v9753_v6  ;;  %v7694_v15 = vld [vmem:[%s10733_s1 + $0xc8] sm:$0xff]  ;;  %v7696_v6 = vld [vmem:[%s10733_s1 + $0x1d8] sm:$0xff] }
 0x31e   :  { %7110 = vmatprep.subr.mxu1 %v7810_v0  ;;  %v6650_v19 = vpop.f32.mrf.mxu1  ;;  %7302 = vmatpush3.msra.mxu0 %v9495_v22 }
 0x31f   :  { %7111 = vmatpush3.msra.mxu1 %v9357_v27  ;;  %7303 = vmatprep.subr.mxu0 %v7810_v0  ;;  %v1891_v24 = vadd.f32 %v9578_v47, %v1814_v17  ;;  %v9949_v27 = vld [vmem:[#allocation2] sm:$0xff] }
 0x320   :  { %7112 = vmatprep.subr.mxu1 %v7810_v0  ;;  %7304 = vmatpush3.msra.mxu0 %v9504_v35  ;;  %v7682_v47 = vld [vmem:[%s10733_s1] sm:$0xff] }
 0x321   :  { %7113 = vmatpush3.msra.mxu1 %v9366_v28  ;;  %7305 = vmatprep.subr.mxu0 %v7810_v0  ;;  %v7695_v17 = vld [vmem:[%s10733_s1 + $0xc0] sm:$0xff] }
 0x322   :  { %7114 = vmatprep.subr.mxu1 %v7810_v0  ;;  %7306 = vmatpush3.msra.mxu0 %v9513_v37  ;;  %v9873_v20 = vpop.f32.mrf.mxu0 }
 0x323   :  { %7115 = vmatpush3.msra.mxu1 %v9375_v29  ;;  %7307 = vmatprep.subr.mxu0 %v7810_v0 }
 0x324   :  { %7116 = vmatprep.subr.mxu1 %v7810_v0  ;;  %7308 = vmatpush3.msra.mxu0 %v9522_v39  ;;  %v6937_v21 = vpop.f32.mrf.mxu0 }
 0x325   :  { %7117 = vmatpush3.msra.mxu1 %v9384_v30  ;;  %7309 = vmatprep.subr.mxu0 %v7810_v0 }
 0x326   :  { %7118 = vmatprep.subr.mxu1 %v7810_v0  ;;  %7310 = vmatpush3.msra.mxu0 %v9531_v41 }
 0x327   :  { %7119 = vmatpush3.msra.mxu1 %v9393_v31  ;;  %7311 = vmatprep.subr.mxu0 %v7810_v0  ;;  %v7671_v31 = vld [vmem:[%s10733_s1 + $0x58] sm:$0xff] }
 0x328   :  { %7120 = vmatprep.subr.mxu1 %v7810_v0  ;;  %7312 = vmatpush3.msra.mxu0 %v9543_v45 }
 0x329   :  { %7121 = vmatpush3.msra.mxu1 %v9402_v32  ;;  %7313 = vmatprep.mubr.msk.f32.mxu0 %vm7811_vm0, %v7810_v0 }
 0x32a   :  { %7122 = vmatprep.subr.mxu1 %v7810_v0  ;;  %7314 = vmatmul.mubr.msk.f32.vlgmr.msra.gmra.mxu0 %vm190_vm1, %v3455_v4  ;;  %v7691_v4 = vld [vmem:[%s10733_s1 + $0xd8] sm:$0xff] }
 0x32b   :  { %7123 = vmatpush3.msra.mxu1 %v9418_v40  ;;  %7343 = vmatprep.subr.mxu0 %v7810_v0  ;;  %v7672_v40 = vld [vmem:[%s10733_s1 + $0x50] sm:$0xff] }
 0x32c   :  { %v1964_v34 = vpop.f32.mrf.mxu1  ;;  %7125 = vmatmul.mubr.msk.f32.vlgmr.msra.gmra.mxu1 %vm190_vm1, %v9658_v54  ;;  %7154 = vmatprep.subr.mxu1 %v7810_v0 }
 0x32d   :  { %v9900_v49 = vadd.f32 %v1964_v34, %v1891_v24  ;;  %7155 = vmatpush3.msra.mxu1 %v9433_v44  ;;  %7178 = vmatprep.mubr.msk.f32.mxu1 %vm7811_vm0, %v7810_v0  ;;  %v7673_v44 = vld [vmem:[%s10733_s1 + $0x48] sm:$0xff]  ;;  %v7697_v34 = vld [vmem:[%s10733_s1 + $0x1d0] sm:$0xff] }
 0x32e   :  { %v6688_v23 = vpop.f32.mrf.mxu1  ;;  %7156 = vmatprep.subr.mxu1 %v7810_v0  ;;  %7344 = vmatpush3.msk.msra.mxu0 %vm1657_vm2, %v9906_v36 }
 0x32f   :  { %7157 = vmatpush3.msra.mxu1 %v9442_v12  ;;  %7345 = vmatprep.subr.mxu0 %v7810_v0  ;;  %v7674_v12 = vld [vmem:[%s10733_s1 + $0x40] sm:$0xff]  ;;  %v2045_v38 = vadd.f32 %v9619_v5, %v9900_v49  ;;  %v7684_v5 = vld [vmem:[%s10733_s1 + $0x110] sm:$0xff] }
 0x330   :  { %7158 = vmatprep.subr.mxu1 %v7810_v0  ;;  %7346 = vmatpush3.msra.mxu0 %v9913_v33  ;;  %v7699_v49 = vld [vmem:[%s10733_s1 + $0x1c0] sm:$0xff] }
 0x331   :  { %7159 = vmatpush3.msra.mxu1 %v9451_v14  ;;  %7347 = vmatprep.subr.mxu0 %v7810_v0 }
 0x332   :  { %7160 = vmatprep.subr.mxu1 %v7810_v0  ;;  %7348 = vmatpush3.msra.mxu0 %v9919_v50 }
 0x333   :  { %7161 = vmatpush3.msra.mxu1 %v9460_v16  ;;  %7349 = vmatprep.subr.mxu0 %v7810_v0 }
 0x334   :  { %7162 = vmatprep.subr.mxu1 %v7810_v0  ;;  %7350 = vmatpush3.msra.mxu0 %v9925_v51 }
 0x335   :  { %7163 = vmatpush3.msra.mxu1 %v9469_v2  ;;  %7351 = vmatprep.subr.mxu0 %v7810_v0 }
 0x336   :  { %7164 = vmatprep.subr.mxu1 %v7810_v0  ;;  %7352 = vmatpush3.msra.mxu0 %v9931_v52 }
 0x337   :  { %7165 = vmatpush3.msra.mxu1 %v9486_v18  ;;  %7353 = vmatprep.subr.mxu0 %v7810_v0  ;;  %v7675_v18 = vld [vmem:[%s10733_s1 + $0x38] sm:$0xff] }
 0x338   :  { %7166 = vmatprep.subr.mxu1 %v7810_v0  ;;  %7354 = vmatpush3.msra.mxu0 %v9937_v53 }
 0x339   :  { %7167 = vmatpush3.msra.mxu1 %v9495_v22  ;;  %7355 = vmatprep.subr.mxu0 %v7810_v0 }
 0x33a   :  { %7168 = vmatprep.subr.mxu1 %v7810_v0  ;;  %7356 = vmatpush3.msra.mxu0 %v9943_v55 }
 0x33b   :  { %7169 = vmatpush3.msra.mxu1 %v9504_v35  ;;  %7357 = vmatprep.subr.mxu0 %v7810_v0  ;;  %v7676_v35 = vld [vmem:[%s10733_s1 + $0x30] sm:$0xff] }
 0x33c   :  { %v2112_v56 = vpop.f32.mrf.mxu1  ;;  %7170 = vmatprep.subr.mxu1 %v7810_v0  ;;  %7358 = vmatpush3.msra.mxu0 %v9949_v27 }
 0x33d   :  { %7171 = vmatpush3.msra.mxu1 %v9513_v37  ;;  %7359 = vmatprep.mubr.msk.f32.mxu0 %vm7811_vm0, %v7810_v0  ;;  %v2116_v32 = vadd.f32 %v9847_v11, %v2112_v56  ;;  %v7677_v37 = vld [vmem:[%s10733_s1 + $0x28] sm:$0xff]  ;;  %v7700_v56 = vld [vmem:[%s10733_s1 + $0x1b8] sm:$0xff] }
 0x33e   :  { %v6726_v28 = vpop.f32.mrf.mxu1  ;;  %7172 = vmatprep.subr.mxu1 %v7810_v0  ;;  %7381 = vmatprep.subr.mxu0 %v7810_v0 }
 0x33f   :  { %7173 = vmatpush3.msra.mxu1 %v9522_v39  ;;  %v2187_v14 = vadd.f32 %v9660_v43, %v2116_v32  ;;  %v7678_v39 = vld [vmem:[%s10733_s1 + $0x20] sm:$0xff] }
 0x340   :  { %7174 = vmatprep.subr.mxu1 %v7810_v0  ;;  %v7703_v32 = vld [vmem:[%s10733_s1 + $0x1a0] sm:$0xff] }
 0x341   :  { %7175 = vmatpush3.msra.mxu1 %v9531_v41  ;;  %v9960_v29 = vpop.f32.mrf.mxu0  ;;  %v7679_v41 = vld [vmem:[%s10733_s1 + $0x18] sm:$0xff] }
 0x342   :  { %7176 = vmatprep.subr.mxu1 %v7810_v0 }
 0x343   :  { %7177 = vmatpush3.msra.mxu1 %v9543_v45  ;;  %v6991_v30 = vpop.f32.mrf.mxu0  ;;  %v7681_v45 = vld [vmem:[%s10733_s1 + $0x8] sm:$0xff] }
 0x344   :  { %7179 = vmatmul.mubr.msk.f32.vlgmr.msra.gmra.mxu1 %vm190_vm1, %v9824_v10  ;;  %7208 = vmatprep.subr.mxu1 %v7810_v0  ;;  %v7701_v30 = vld [vmem:[%s10733_s1 + $0x1b0] sm:$0xff] }
 0x345   :  { %7209 = vmatpush3.msra.mxu1 %v7671_v31  ;;  %7232 = vmatprep.mubr.msk.f32.mxu1 %vm7811_vm0, %v7810_v0  ;;  %v7702_v31 = vld [vmem:[%s10733_s1 + $0x1a8] sm:$0xff] }
 0x346   :  { %7210 = vmatprep.subr.mxu1 %v7810_v0 }
 0x347   :  { %7211 = vmatpush3.msra.mxu1 %v7672_v40  ;;  %v7704_v40 = vld [vmem:[%s10733_s1 + $0x198] sm:$0xff] }
 0x348   :  { %7212 = vmatprep.subr.mxu1 %v7810_v0 }
 0x349   :  { %7213 = vmatpush3.msra.mxu1 %v7673_v44  ;;  %v7705_v44 = vld [vmem:[%s10733_s1 + $0x190] sm:$0xff] }
 0x34a   :  { %7214 = vmatprep.subr.mxu1 %v7810_v0 }
 0x34b   :  { %7215 = vmatpush3.msra.mxu1 %v7674_v12  ;;  %v3813_v12 = vrot.slane %v9658_v54, 1 }
 0x34c   :  { %v2254_v16 = vpop.f32.mrf.mxu1  ;;  %7216 = vmatprep.subr.mxu1 %v7810_v0 }
 0x34d   :  { %v2258_v2 = vadd.f32 %v2254_v16, %v2187_v14  ;;  %7217 = vmatpush3.msra.mxu1 %v7675_v18  ;;  %v7706_v14 = vld [vmem:[%s10733_s1 + $0x188] sm:$0xff] }
 0x34e   :  { %v6764_v22 = vpop.f32.mrf.mxu1  ;;  %7218 = vmatprep.subr.mxu1 %v7810_v0 }
 0x34f   :  { %7219 = vmatpush3.msra.mxu1 %v7676_v35  ;;  %v2329_v48 = vadd.f32 %v9698_v60, %v2258_v2  ;;  %v7707_v2 = vld [vmem:[%s10733_s1 + $0x180] sm:$0xff]  ;;  %v10142_v22 = vld [vmem:[#allocation2 + $0x78] sm:$0xf]  ;;  %v10149_v35 = vld [vmem:[#allocation2 + $0x70] sm:$0xff] }
 0x350   :  { %7220 = vmatprep.subr.mxu1 %v7810_v0 }
 0x351   :  { %7221 = vmatpush3.msra.mxu1 %v7677_v37  ;;  %v10153_v37 = vld [vmem:[#allocation2 + $0x68] sm:$0xff] }
 0x352   :  { %7222 = vmatprep.subr.mxu1 %v7810_v0 }
 0x353   :  { %7223 = vmatpush3.msra.mxu1 %v7678_v39  ;;  %v10157_v39 = vld [vmem:[#allocation2 + $0x60] sm:$0xff] }
 0x354   :  { %7224 = vmatprep.subr.mxu1 %v7810_v0 }
 0x355   :  { %7225 = vmatpush3.msra.mxu1 %v7679_v41  ;;  %v10161_v41 = vld [vmem:[#allocation2 + $0x58] sm:$0xff] }
 0x356   :  { %7226 = vmatprep.subr.mxu1 %v7810_v0 }
 0x357   :  { %7227 = vmatpush3.msra.mxu1 %v7680_v42 }
 0x358   :  { %7228 = vmatprep.subr.mxu1 %v7810_v0 }
 0x359   :  { %7229 = vmatpush3.msra.mxu1 %v7681_v45  ;;  %v10165_v45 = vld [vmem:[#allocation2 + $0x50] sm:$0xff] }
 0x35a   :  { %7230 = vmatprep.subr.mxu1 %v7810_v0 }
 0x35b   :  { %7231 = vmatpush3.msra.mxu1 %v7682_v47 }
 0x35c   :  { %v2399_v57 = vpop.f32.mrf.mxu1  ;;  %7233 = vmatmul.mubr.msk.f32.vlgmr.msra.gmra.mxu1 %vm190_vm1, %v9658_v54  ;;  %7262 = vmatprep.subr.mxu1 %v7810_v0 }
 0x35d   :  { %v2403_v43 = vadd.f32 %v2399_v57, %v2329_v48  ;;  %7263 = vmatpush3.msra.mxu1 %v7683_v46  ;;  %7286 = vmatprep.mubr.msk.f32.mxu1 %vm7811_vm0, %v7810_v0  ;;  %v10169_v48 = vld [vmem:[#allocation2 + $0x48] sm:$0xff]  ;;  %v10173_v57 = vld [vmem:[#allocation2 + $0x40] sm:$0xff] }
 0x35e   :  { %v6802_v58 = vpop.f32.mrf.mxu1  ;;  %7264 = vmatprep.subr.mxu1 %v7810_v0  ;;  %v10030_v59 = vpop.f32.mrf.mxu0 }
 0x35f   :  { %v10032_v60 = vmax.f32 %v2045_v38, %v2403_v43  ;;  %7265 = vmatpush3.msra.mxu1 %v7684_v5 }
 0x360   :  { %7266 = vmatprep.subr.mxu1 %v7810_v0  ;;  %v7045_v61 = vpop.f32.mrf.mxu0 }
 0x361   :  { %7267 = vmatpush3.msra.mxu1 %v7685_v62 }
 0x362   :  { %7268 = vmatprep.subr.mxu1 %v7810_v0 }
 0x363   :  { %7269 = vmatpush3.msra.mxu1 %v7686_v63 }
 0x364   :  { %7270 = vmatprep.subr.mxu1 %v7810_v0 }
 0x365   :  { %7271 = vmatpush3.msra.mxu1 %v7687_v25 }
 0x366   :  { %7272 = vmatprep.subr.mxu1 %v7810_v0 }
 0x367   :  { %7273 = vmatpush3.msra.mxu1 %v7688_v26 }
 0x368   :  { %7274 = vmatprep.subr.mxu1 %v7810_v0 }
 0x369   :  { %7275 = vmatpush3.msra.mxu1 %v7689_v1 }
 0x36a   :  { %7276 = vmatprep.subr.mxu1 %v7810_v0 }
 0x36b   :  { %7277 = vmatpush3.msra.mxu1 %v7690_v3 }
 0x36c   :  { %7278 = vmatprep.subr.mxu1 %v7810_v0 }
 0x36d   :  { %7279 = vmatpush3.msra.mxu1 %v7691_v4 }
 0x36e   :  { %7280 = vmatprep.subr.mxu1 %v7810_v0 }
 0x36f   :  { %7281 = vmatpush3.msra.mxu1 %v7692_v7 }
 0x370   :  { %7282 = vmatprep.subr.mxu1 %v7810_v0 }
 0x371   :  { %7283 = vmatpush3.msra.mxu1 %v7694_v15 }
 0x372   :  { %7284 = vmatprep.subr.mxu1 %v7810_v0 }
 0x373   :  { %7285 = vmatpush3.msra.mxu1 %v7695_v17 }
 0x374   :  { %v2586_v19 = vpop.f32.mrf.mxu1  ;;  %7287 = vmatmul.mubr.msk.f32.vlgmr.msra.gmra.mxu1 %vm190_vm1, %v9824_v10  ;;  %7316 = vmatprep.subr.mxu1 %v7810_v0  ;;  %v7698_v10 = vld [vmem:[%s10733_s1 + $0x1c8] sm:$0xff]  ;;  %s7813_s1 = smov 74  }
 0x375   :  { %v2590_v21 = vadd.f32 %v2586_v19, %v2516_v13  ;;  %7317 = vmatpush3.msra.mxu1 %v7696_v6  ;;  %7340 = vmatprep.mubr.msk.f32.mxu1 %vm7811_vm0, %v7810_v0 }
 0x376   :  { %v6856_v24 = vpop.f32.mrf.mxu1  ;;  %7318 = vmatprep.subr.mxu1 %v7810_v0 }
 0x377   :  { %7319 = vmatpush3.msra.mxu1 %v7697_v34  ;;  %v2664_v16 = vadd.f32 %v9807_v8, %v2590_v21 }
 0x378   :  { %7320 = vmatprep.subr.mxu1 %v7810_v0 }
 0x379   :  { %7321 = vmatpush3.msra.mxu1 %v7698_v10 }
 0x37a   :  { %7322 = vmatprep.subr.mxu1 %v7810_v0 }
 0x37b   :  { %7323 = vmatpush3.msra.mxu1 %v7699_v49  ;;  %v10104_v23 = vpop.f32.mrf.mxu0 }
 0x37c   :  { %7324 = vmatprep.subr.mxu1 %v7810_v0  ;;  %v3241_v19 = vadd.f32 %v10073_v9, %v10104_v23 }
 0x37d   :  { %7325 = vmatpush3.msra.mxu1 %v7700_v56  ;;  %v7099_v28 = vpop.f32.mrf.mxu0 }
 0x37e   :  { %7326 = vmatprep.subr.mxu1 %v7810_v0 }
 0x37f   :  { %7327 = vmatpush3.msra.mxu1 %v7701_v30 }
 0x380   :  { %7328 = vmatprep.subr.mxu1 %v7810_v0 }
 0x381   :  { %7329 = vmatpush3.msra.mxu1 %v7702_v31 }
 0x382   :  { %7330 = vmatprep.subr.mxu1 %v7810_v0 }
 0x383   :  { %7331 = vmatpush3.msra.mxu1 %v7703_v32 }
 0x384   :  { %7332 = vmatprep.subr.mxu1 %v7810_v0 }
 0x385   :  { %7333 = vmatpush3.msra.mxu1 %v7704_v40 }
 0x386   :  { %7334 = vmatprep.subr.mxu1 %v7810_v0 }
 0x387   :  { %7335 = vmatpush3.msra.mxu1 %v7705_v44 }
 0x388   :  { %7336 = vmatprep.subr.mxu1 %v7810_v0 }
 0x389   :  { %7337 = vmatpush3.msra.mxu1 %v7706_v14 }
 0x38a   :  { %7338 = vmatprep.subr.mxu1 %v7810_v0 }
 0x38b   :  { %7339 = vmatpush3.msra.mxu1 %v7707_v2 }
 0x38c   :  { %v2734_v18 = vpop.f32.mrf.mxu1  ;;  %7341 = vmatmul.mubr.msk.f32.vlgmr.msra.gmra.mxu1 %vm190_vm1, %v3813_v12  ;;  %7362 = vmatprep.subr.mxu1 %v7810_v0 }
 0x38d   :  { %v2738_v54 = vadd.f32 %v2734_v18, %v2664_v16  ;;  %7363 = vmatpush3.msk.msra.mxu1 %vm1657_vm2, %v10142_v22  ;;  %7378 = vmatprep.mubr.msk.f32.mxu1 %vm7811_vm0, %v7810_v0 }
 0x38e   :  { %v6910_v8 = vpop.f32.mrf.mxu1  ;;  %7364 = vmatprep.subr.mxu1 %v7810_v0 }
 0x38f   :  { %7365 = vmatpush3.msra.mxu1 %v10149_v35  ;;  %v2812_v7 = vadd.f32 %v9873_v20, %v2738_v54 }
 0x390   :  { %7366 = vmatprep.subr.mxu1 %v7810_v0 }
 0x391   :  { %7367 = vmatpush3.msra.mxu1 %v10153_v37 }
 0x392   :  { %7368 = vmatprep.subr.mxu1 %v7810_v0 }
 0x393   :  { %7369 = vmatpush3.msra.mxu1 %v10157_v39 }
 0x394   :  { %7370 = vmatprep.subr.mxu1 %v7810_v0 }
 0x395   :  { %7371 = vmatpush3.msra.mxu1 %v10161_v41 }
 0x396   :  { %7372 = vmatprep.subr.mxu1 %v7810_v0 }
 0x397   :  { %v3379_v42 = vpop.f32.mrf.mxu0  ;;  %7373 = vmatpush3.msra.mxu1 %v10165_v45 }
 0x398   :  { %7374 = vmatprep.subr.mxu1 %v7810_v0 }
 0x399   :  { %v7153_v47 = vpop.f32.mrf.mxu0  ;;  %7375 = vmatpush3.msra.mxu1 %v10169_v48 }
 0x39a   :  { %7376 = vmatprep.subr.mxu1 %v7810_v0  ;;  %v10204_v47 = vld [vmem:[#allocation2 + $0xa8] sm:$0xff] }
 0x39b   :  { %7377 = vmatpush3.msra.mxu1 %v10173_v57 }
 0x39c   :  { %7400 = vmatprep.subr.mxu1 %v7810_v0 }
 0x3a4   :  { %v2879_v38 = vpop.f32.mrf.mxu1 }
 0x3a5   :  { %v2883_v62 = vadd.f32 %v10073_v9, %v2879_v38  ;;  %v10208_v38 = vld [vmem:[#allocation2 + $0xa0] sm:$0xff] }
 0x3a6   :  { %v6964_v43 = vpop.f32.mrf.mxu1 }
 0x3a7   :  { %v2954_v63 = vadd.f32 %v9960_v29, %v2883_v62  ;;  %v10214_v43 = vld [vmem:[#allocation2 + $0x98] sm:$0xff] }
 0x3a8   :  { %v10232_v62 = vld [vmem:[#allocation2 + $0x138] sm:$0xf] }
 0x3b2   :  { %v3524_v46 = vpop.f32.mrf.mxu0 }
 0x3b4   :  { %v7207_v58 = vpop.f32.mrf.mxu0 }
 0x3b5   :  { %v10222_v58 = vld [vmem:[#allocation2 + $0x88] sm:$0xff] }
 0x3bc   :  { %v3021_v5 = vpop.f32.mrf.mxu1 }
 0x3bd   :  { %v3025_v25 = vadd.f32 %v3021_v5, %v2954_v63  ;;  %v10239_v63 = vld [vmem:[#allocation2 + $0x130] sm:$0xff] }
 0x3be   :  { %v7018_v61 = vpop.f32.mrf.mxu1 }
 0x3bf   :  { %v3096_v3 = vadd.f32 %v10030_v59, %v3025_v25  ;;  %v10227_v61 = vld [vmem:[#allocation2 + $0x80] sm:$0xff]  ;;  %v10243_v25 = vld [vmem:[#allocation2 + $0x128] sm:$0xff] }
 0x3cf   :  { %v3666_v26 = vpop.f32.mrf.mxu0 }
 0x3d1   :  { %v7261_v1 = vpop.f32.mrf.mxu0 }
 0x3d2   :  { %v10251_v1 = vld [vmem:[#allocation2 + $0x118] sm:$0xff] }
 0x3d4   :  { %v3166_v4 = vpop.f32.mrf.mxu1 }
 0x3d5   :  { %v3170_v13 = vadd.f32 %v3166_v4, %v3096_v3  ;;  %v10255_v3 = vld [vmem:[#allocation2 + $0x110] sm:$0xff]  ;;  %v10259_v4 = vld [vmem:[#allocation2 + $0x108] sm:$0xff] }
 0x3d6   :  { %v7072_v15 = vpop.f32.mrf.mxu1 }
 0x3d7   :  { %v3887_v17 = vmax.f32 %v2812_v7, %v3170_v13  ;;  %v10264_v13 = vld [vmem:[#allocation2 + $0x100] sm:$0xff] }
 0x3d9   :  { %3890 = vrot.lane.b32.xlu1 %v3887_v17, %s7812_s17 }
 0x3ea   :  { %v3808_v21 = vpop.f32.mrf.mxu0 }
 0x3ec   :  { %v3308_v6 = vpop.f32.mrf.mxu1  ;;  %v7315_v24 = vpop.f32.mrf.mxu0 }
 0x3ed   :  { %v3312_v29 = vadd.f32 %v3308_v6, %v3241_v19 }
 0x3ee   :  { %v7126_v34 = vpop.f32.mrf.mxu1 }
 0x3ef   :  { %v3383_v10 = vadd.f32 %v3379_v42, %v3312_v29  ;;  %v10191_v42 = vld [vmem:[#allocation2 + $0xb8] sm:$0xf] }
 0x404   :  { %v3450_v49 = vpop.f32.mrf.mxu1 }
 0x405   :  { %v3454_v56 = vadd.f32 %v3450_v49, %v3383_v10 }
 0x406   :  { %v7180_v59 = vpop.f32.mrf.mxu1 }
 0x407   :  { %v3528_v2 = vadd.f32 %v3524_v46, %v3454_v56  ;;  %v10218_v46 = vld [vmem:[#allocation2 + $0x90] sm:$0xff] }
 0x41c   :  { %v3595_v28 = vpop.f32.mrf.mxu1 }
 0x41d   :  { %v3599_v32 = vadd.f32 %v10073_v9, %v3595_v28  ;;  %v10198_v9 = vld [vmem:[#allocation2 + $0xb0] sm:$0xff] }
 0x41e   :  { %v7234_v30 = vpop.f32.mrf.mxu1 }
 0x41f   :  { %v3670_v40 = vadd.f32 %v3666_v26, %v3599_v32  ;;  %v10247_v26 = vld [vmem:[#allocation2 + $0x120] sm:$0xff] }
 0x434   :  { %v3737_v20 = vpop.f32.mrf.mxu1 }
 0x435   :  { %v3741_v44 = vadd.f32 %v3737_v20, %v3670_v40 }
 0x436   :  { %v7288_v31 = vpop.f32.mrf.mxu1 }
 0x437   :  { %v3812_v12 = vadd.f32 %v3808_v21, %v3741_v44 }
 0x44b   :  { %v3891_v14 = vpop.permute.xlu1 %3890 }
 0x44c   :  { %v10185_v23 = vmax.f32 %v3887_v17, %v3891_v14  ;;  %v3882_v16 = vpop.f32.mrf.mxu1 }
 0x44d   :  { %v3886_v18 = vadd.f32 %v3882_v16, %v3812_v12 }
 0x44e   :  { %v7342_v54 = vpop.f32.mrf.mxu1  ;;  %7360 = vmatmul.mubr.msk.f32.vlgmr.msra.gmra.mxu0 %vm1653_vm3, %v10185_v23  ;;  %v4047_v5 = vrot.slane %v10185_v23, 1  ;;  %v4195_v7 = vrot.slane %v10185_v23, 2 }
 0x44f   :  { %v10189_v8 = vmax.f32 %v3528_v2, %v3886_v18  ;;  %7382 = vmatpush3.msk.msra.mxu0 %vm1657_vm2, %v10191_v42  ;;  %7397 = vmatprep.mubr.msk.f32.mxu0 %vm7811_vm0, %v7810_v0 }
 0x450   :  { %7383 = vmatprep.subr.mxu0 %v7810_v0 }
 0x451   :  { %7384 = vmatpush3.msra.mxu0 %v10198_v9  ;;  %3895 = vrot.lane.b32.xlu1 %v10189_v8, %s7812_s17 }
 0x452   :  { %7385 = vmatprep.subr.mxu0 %v7810_v0 }
 0x453   :  { %7386 = vmatpush3.msra.mxu0 %v10204_v47 }
 0x454   :  { %7387 = vmatprep.subr.mxu0 %v7810_v0 }
 0x455   :  { %7388 = vmatpush3.msra.mxu0 %v10208_v38  ;;  %2406 = vrot.lane.b32.xlu1 %v10032_v60, %s7813_s1 }
 0x456   :  { %7389 = vmatprep.subr.mxu0 %v7810_v0 }
 0x457   :  { %7390 = vmatpush3.msra.mxu0 %v10214_v43 }
 0x458   :  { %7391 = vmatprep.subr.mxu0 %v7810_v0 }
 0x459   :  { %7392 = vmatpush3.msra.mxu0 %v10218_v46 }
 0x45a   :  { %7393 = vmatprep.subr.mxu0 %v7810_v0 }
 0x45b   :  { %7394 = vmatpush3.msra.mxu0 %v10222_v58 }
 0x45c   :  { %7395 = vmatprep.subr.mxu0 %v7810_v0 }
 0x45d   :  { %7396 = vmatpush3.msra.mxu0 %v10227_v61 }
 0x45e   :  { %7398 = vmatmul.mubr.msk.f32.vlgmr.msra.gmra.mxu0 %vm1653_vm3, %v4047_v5  ;;  %7419 = vmatprep.subr.mxu0 %v7810_v0 }
 0x45f   :  { %7420 = vmatpush3.msk.msra.mxu0 %vm1657_vm2, %v10232_v62  ;;  %7435 = vmatprep.mubr.msk.f32.mxu0 %vm7811_vm0, %v7810_v0 }
 0x460   :  { %7421 = vmatprep.subr.mxu0 %v7810_v0 }
 0x461   :  { %7422 = vmatpush3.msra.mxu0 %v10239_v63 }
 0x462   :  { %7423 = vmatprep.subr.mxu0 %v7810_v0 }
 0x463   :  { %7424 = vmatpush3.msra.mxu0 %v10243_v25 }
 0x464   :  { %7425 = vmatprep.subr.mxu0 %v7810_v0 }
 0x465   :  { %7426 = vmatpush3.msra.mxu0 %v10247_v26 }
 0x466   :  { %7427 = vmatprep.subr.mxu0 %v7810_v0 }
 0x467   :  { %7428 = vmatpush3.msra.mxu0 %v10251_v1 }
 0x468   :  { %7429 = vmatprep.subr.mxu0 %v7810_v0 }
 0x469   :  { %7430 = vmatpush3.msra.mxu0 %v10255_v3 }
 0x46a   :  { %7431 = vmatprep.subr.mxu0 %v7810_v0 }
 0x46b   :  { %7432 = vmatpush3.msra.mxu0 %v10259_v4 }
 0x46c   :  { %7433 = vmatprep.subr.mxu0 %v7810_v0 }
 0x46d   :  { %7434 = vmatpush3.msra.mxu0 %v10264_v13 }
 0x46e   :  { %7436 = vmatmul.mubr.msk.f32.vlgmr.msra.gmra.mxu0 %vm1653_vm3, %v4195_v7  ;;  %7457 = vmatprep.subr.mxu0 %v7810_v0 }
 0x46f   :  { %7458 = vmatpush3.msk.msra.mxu0 %vm1657_vm2, %v10142_v22  ;;  %7473 = vmatprep.mubr.msk.f32.mxu0 %vm7811_vm0, %v7810_v0  ;;  %v7732_v22 = vld [vmem:[#allocation2 + $0xf8] sm:$0xf] }
 0x470   :  { %7459 = vmatprep.subr.mxu0 %v7810_v0 }
 0x471   :  { %7460 = vmatpush3.msra.mxu0 %v10149_v35  ;;  %v7733_v35 = vld [vmem:[#allocation2 + $0xf0] sm:$0xff] }
 0x472   :  { %7461 = vmatprep.subr.mxu0 %v7810_v0 }
 0x473   :  { %7462 = vmatpush3.msra.mxu0 %v10153_v37  ;;  %v7734_v37 = vld [vmem:[#allocation2 + $0xe8] sm:$0xff] }
 0x474   :  { %7463 = vmatprep.subr.mxu0 %v7810_v0 }
 0x475   :  { %7464 = vmatpush3.msra.mxu0 %v10157_v39  ;;  %v7735_v39 = vld [vmem:[#allocation2 + $0xe0] sm:$0xff] }
 0x476   :  { %7465 = vmatprep.subr.mxu0 %v7810_v0 }
 0x477   :  { %7466 = vmatpush3.msra.mxu0 %v10161_v41  ;;  %v7736_v41 = vld [vmem:[#allocation2 + $0xd8] sm:$0xff] }
 0x478   :  { %7467 = vmatprep.subr.mxu0 %v7810_v0 }
 0x479   :  { %7468 = vmatpush3.msra.mxu0 %v10165_v45  ;;  %v7737_v45 = vld [vmem:[#allocation2 + $0xd0] sm:$0xff] }
 0x47a   :  { %7469 = vmatprep.subr.mxu0 %v7810_v0 }
 0x47b   :  { %7470 = vmatpush3.msra.mxu0 %v10169_v48  ;;  %v7738_v48 = vld [vmem:[#allocation2 + $0xc8] sm:$0xff] }
 0x47c   :  { %7471 = vmatprep.subr.mxu0 %v7810_v0 }
 0x47d   :  { %7472 = vmatpush3.msra.mxu0 %v10173_v57  ;;  %v7739_v57 = vld [vmem:[#allocation2 + $0xc0] sm:$0xff] }
 0x47e   :  { %7474 = vmatmul.mubr.msk.f32.vlgmr.msra.gmra.mxu0 %vm1653_vm3, %v4047_v5  ;;  %7495 = vmatprep.subr.mxu0 %v7810_v0  ;;  %v4689_v5 = vld [vmem:[%s10737_s5 + $0xb8] sm:$0xff] }
 0x47f   :  { %7496 = vmatpush3.msk.msra.mxu0 %vm1657_vm2, %v7732_v22  ;;  %7511 = vmatprep.mubr.msk.f32.mxu0 %vm7811_vm0, %v7810_v0 }
 0x480   :  { %7497 = vmatprep.subr.mxu0 %v7810_v0 }
 0x481   :  { %7498 = vmatpush3.msra.mxu0 %v7733_v35 }
 0x482   :  { %7499 = vmatprep.subr.mxu0 %v7810_v0 }
 0x483   :  { %7500 = vmatpush3.msra.mxu0 %v7734_v37 }
 0x484   :  { %7501 = vmatprep.subr.mxu0 %v7810_v0 }
 0x485   :  { %7502 = vmatpush3.msra.mxu0 %v7735_v39 }
 0x486   :  { %7503 = vmatprep.subr.mxu0 %v7810_v0 }
 0x487   :  { %7504 = vmatpush3.msra.mxu0 %v7736_v41 }
 0x488   :  { %7505 = vmatprep.subr.mxu0 %v7810_v0 }
 0x489   :  { %7506 = vmatpush3.msra.mxu0 %v7737_v45 }
 0x48a   :  { %7507 = vmatprep.subr.mxu0 %v7810_v0 }
 0x48b   :  { %7508 = vmatpush3.msra.mxu0 %v7738_v48 }
 0x48c   :  { %7509 = vmatprep.subr.mxu0 %v7810_v0 }
 0x48d   :  { %7510 = vmatpush3.msra.mxu0 %v7739_v57 }
 0x48e   :  { %7512 = vmatmul.mubr.msk.f32.vlgmr.msra.gmra.mxu0 %vm1653_vm3, %v4195_v7  ;;  %v4680_v7 = vld [vmem:[%s10737_s5 + $0x70] sm:$0xff] }
 0x4c3   :  { %v3896_v15 = vpop.permute.xlu1 %3895 }
 0x4c4   :  { %v10301_v17 = vmax.f32 %v10189_v8, %v3896_v15  ;;  %v4670_v15 = vld [vmem:[%s10737_s5 + $0x20] sm:$0xff] }
 0x4c6   :  { %7379 = vmatmul.mubr.msk.f32.vlgmr.msra.gmra.mxu1 %vm1653_vm3, %v10301_v17  ;;  %v4121_v19 = vrot.slane %v10301_v17, 1 }
 0x4c7   :  { %7401 = vmatpush3.msk.msra.mxu1 %vm1657_vm2, %v7732_v22  ;;  %7416 = vmatprep.mubr.msk.f32.mxu1 %vm7811_vm0, %v7810_v0  ;;  %v4678_v22 = vld [vmem:[%s10737_s5 + $0x60] sm:$0xff] }
 0x4c8   :  { %7402 = vmatprep.subr.mxu1 %v7810_v0 }
 0x4c9   :  { %7403 = vmatpush3.msra.mxu1 %v7733_v35  ;;  %v4677_v35 = vld [vmem:[%s10737_s5 + $0x58] sm:$0xff] }
 0x4ca   :  { %7404 = vmatprep.subr.mxu1 %v7810_v0 }
 0x4cb   :  { %7405 = vmatpush3.msra.mxu1 %v7734_v37  ;;  %v4676_v37 = vld [vmem:[%s10737_s5 + $0x50] sm:$0xff] }
 0x4cc   :  { %7406 = vmatprep.subr.mxu1 %v7810_v0 }
 0x4cd   :  { %7407 = vmatpush3.msra.mxu1 %v7735_v39  ;;  %v4675_v39 = vld [vmem:[%s10737_s5 + $0x48] sm:$0xff] }
 0x4ce   :  { %7408 = vmatprep.subr.mxu1 %v7810_v0 }
 0x4cf   :  { %7409 = vmatpush3.msra.mxu1 %v7736_v41  ;;  %v4674_v41 = vld [vmem:[%s10737_s5 + $0x40] sm:$0xff] }
 0x4d0   :  { %7410 = vmatprep.subr.mxu1 %v7810_v0 }
 0x4d1   :  { %7411 = vmatpush3.msra.mxu1 %v7737_v45  ;;  %v4673_v45 = vld [vmem:[%s10737_s5 + $0x38] sm:$0xff] }
 0x4d2   :  { %7412 = vmatprep.subr.mxu1 %v7810_v0 }
 0x4d3   :  { %7413 = vmatpush3.msra.mxu1 %v7738_v48  ;;  %v4672_v48 = vld [vmem:[%s10737_s5 + $0x30] sm:$0xff] }
 0x4d4   :  { %7414 = vmatprep.subr.mxu1 %v7810_v0 }
 0x4d5   :  { %7415 = vmatpush3.msra.mxu1 %v7739_v57  ;;  %v4671_v57 = vld [vmem:[%s10737_s5 + $0x28] sm:$0xff] }
 0x4d6   :  { %7417 = vmatmul.mubr.msk.f32.vlgmr.msra.gmra.mxu1 %vm1653_vm3, %v4121_v19  ;;  %7438 = vmatprep.subr.mxu1 %v7810_v0 }
 0x4d7   :  { %7439 = vmatpush3.msk.msra.mxu1 %vm1657_vm2, %v9906_v36  ;;  %7454 = vmatprep.mubr.msk.f32.mxu1 %vm7811_vm0, %v7810_v0  ;;  %v4553_v36 = vrot.slane %v10301_v17, 2 }
 0x4d8   :  { %7440 = vmatprep.subr.mxu1 %v7810_v0 }
 0x4d9   :  { %7441 = vmatpush3.msra.mxu1 %v9913_v33 }
 0x4da   :  { %7442 = vmatprep.subr.mxu1 %v7810_v0 }
 0x4db   :  { %7443 = vmatpush3.msra.mxu1 %v9919_v50 }
 0x4dc   :  { %7444 = vmatprep.subr.mxu1 %v7810_v0 }
 0x4dd   :  { %7445 = vmatpush3.msra.mxu1 %v9925_v51 }
 0x4de   :  { %7446 = vmatprep.subr.mxu1 %v7810_v0 }
 0x4df   :  { %7447 = vmatpush3.msra.mxu1 %v9931_v52 }
 0x4e0   :  { %7448 = vmatprep.subr.mxu1 %v7810_v0 }
 0x4e1   :  { %7449 = vmatpush3.msra.mxu1 %v9937_v53 }
 0x4e2   :  { %7450 = vmatprep.subr.mxu1 %v7810_v0 }
 0x4e3   :  { %7451 = vmatpush3.msra.mxu1 %v9943_v55 }
 0x4e4   :  { %7452 = vmatprep.subr.mxu1 %v7810_v0 }
 0x4e5   :  { %7453 = vmatpush3.msra.mxu1 %v9949_v27 }
 0x4e6   :  { %7455 = vmatmul.mubr.msk.f32.vlgmr.msra.gmra.mxu1 %vm1653_vm3, %v10301_v17  ;;  %7476 = vmatprep.subr.mxu1 %v7810_v0  ;;  %v4669_v17 = vld [vmem:[%s10737_s5 + $0x18] sm:$0xff] }
 0x4e7   :  { %7477 = vmatpush3.msk.msra.mxu1 %vm1657_vm2, %v10191_v42  ;;  %7492 = vmatprep.mubr.msk.f32.mxu1 %vm7811_vm0, %v7810_v0  ;;  %v4697_v42 = vld [vmem:[%s10737_s5 + $0xf8] sm:$0xff] }
 0x4e8   :  { %7478 = vmatprep.subr.mxu1 %v7810_v0  ;;  %4757 = vmatprep.subr.mxu0 %v4697_v42  ;;  %v4702_v42 = vld [vmem:[%s10737_s5 + $0x120] sm:$0xff] }
 0x4e9   :  { %7479 = vmatpush3.msra.mxu1 %v10198_v9  ;;  %v4695_v9 = vld [vmem:[%s10737_s5 + $0xe8] sm:$0xff] }
 0x4ea   :  { %7480 = vmatprep.subr.mxu1 %v7810_v0 }
 0x4eb   :  { %7481 = vmatpush3.msra.mxu1 %v10204_v47  ;;  %v4694_v47 = vld [vmem:[%s10737_s5 + $0xe0] sm:$0xff] }
 0x4ec   :  { %7482 = vmatprep.subr.mxu1 %v7810_v0 }
 0x4ed   :  { %7483 = vmatpush3.msra.mxu1 %v10208_v38  ;;  %v4693_v38 = vld [vmem:[%s10737_s5 + $0xd8] sm:$0xff] }
 0x4ee   :  { %7484 = vmatprep.subr.mxu1 %v7810_v0 }
 0x4ef   :  { %7485 = vmatpush3.msra.mxu1 %v10214_v43  ;;  %v4692_v43 = vld [vmem:[%s10737_s5 + $0xd0] sm:$0xff] }
 0x4f0   :  { %7486 = vmatprep.subr.mxu1 %v7810_v0 }
 0x4f1   :  { %7487 = vmatpush3.msra.mxu1 %v10218_v46  ;;  %v4691_v46 = vld [vmem:[%s10737_s5 + $0xc8] sm:$0xff] }
 0x4f2   :  { %7488 = vmatprep.subr.mxu1 %v7810_v0 }
 0x4f3   :  { %7489 = vmatpush3.msra.mxu1 %v10222_v58  ;;  %v4690_v58 = vld [vmem:[%s10737_s5 + $0xc0] sm:$0xff] }
 0x4f4   :  { %7490 = vmatprep.subr.mxu1 %v7810_v0 }
 0x4f5   :  { %7491 = vmatpush3.msra.mxu1 %v10227_v61  ;;  %v4688_v61 = vld [vmem:[%s10737_s5 + $0xb0] sm:$0xff] }
 0x4f6   :  { %7493 = vmatmul.mubr.msk.f32.vlgmr.msra.gmra.mxu1 %vm1653_vm3, %v4121_v19  ;;  %7514 = vmatprep.subr.mxu1 %v7810_v0  ;;  %v4668_v19 = vld [vmem:[%s10737_s5 + $0x10] sm:$0xff] }
 0x4f7   :  { %7515 = vmatpush3.msk.msra.mxu1 %vm1657_vm2, %v10232_v62  ;;  %7530 = vmatprep.mubr.msk.f32.mxu1 %vm7811_vm0, %v7810_v0  ;;  %v4687_v62 = vld [vmem:[%s10737_s5 + $0xa8] sm:$0xff] }
 0x4f8   :  { %7516 = vmatprep.subr.mxu1 %v7810_v0 }
 0x4f9   :  { %7517 = vmatpush3.msra.mxu1 %v10239_v63  ;;  %v4686_v63 = vld [vmem:[%s10737_s5 + $0xa0] sm:$0xff] }
 0x4fa   :  { %7518 = vmatprep.subr.mxu1 %v7810_v0 }
 0x4fb   :  { %7519 = vmatpush3.msra.mxu1 %v10243_v25  ;;  %v4685_v25 = vld [vmem:[%s10737_s5 + $0x98] sm:$0xff] }
 0x4fc   :  { %7520 = vmatprep.subr.mxu1 %v7810_v0 }
 0x4fd   :  { %7521 = vmatpush3.msra.mxu1 %v10247_v26  ;;  %v4684_v26 = vld [vmem:[%s10737_s5 + $0x90] sm:$0xff] }
 0x4fe   :  { %7522 = vmatprep.subr.mxu1 %v7810_v0 }
 0x4ff   :  { %7523 = vmatpush3.msra.mxu1 %v10251_v1  ;;  %v4683_v1 = vld [vmem:[%s10737_s5 + $0x88] sm:$0xff] }
 0x500   :  { %7524 = vmatprep.subr.mxu1 %v7810_v0 }
 0x501   :  { %7525 = vmatpush3.msra.mxu1 %v10255_v3  ;;  %v4682_v3 = vld [vmem:[%s10737_s5 + $0x80] sm:$0xff] }
 0x502   :  { %7526 = vmatprep.subr.mxu1 %v7810_v0 }
 0x503   :  { %7527 = vmatpush3.msra.mxu1 %v10259_v4  ;;  %v4681_v4 = vld [vmem:[%s10737_s5 + $0x78] sm:$0xff] }
 0x504   :  { %7528 = vmatprep.subr.mxu1 %v7810_v0 }
 0x505   :  { %7529 = vmatpush3.msra.mxu1 %v10264_v13  ;;  %v4679_v13 = vld [vmem:[%s10737_s5 + $0x68] sm:$0xff] }
 0x506   :  { %7531 = vmatmul.mubr.msk.f32.vlgmr.msra.gmra.mxu1 %vm1653_vm3, %v4553_v36  ;;  %4935 = vmatprep.subr.mxu1 %v7810_v0  ;;  %v4667_v36 = vld [vmem:[%s10737_s5 + $0x8] sm:$0xff] }
 0x50e   :  { %v3968_v33 = vpop.f32.mrf.mxu0 }
 0x50f   :  { %v3972_v20 = vadd.f32 %v9847_v11, %v3968_v33  ;;  %v4666_v33 = vld [vmem:[%s10737_s5] sm:$0xff] }
 0x510   :  { %v7361_v50 = vpop.f32.mrf.mxu0 }
 0x511   :  { %v4729_v50 = vld [vmem:[%s10737_s5 + $0x1f8] sm:$0xff] }
 0x51e   :  { %v4116_v51 = vpop.f32.mrf.mxu0 }
 0x520   :  { %v7399_v52 = vpop.f32.mrf.mxu0 }
 0x521   :  { %v4727_v52 = vld [vmem:[%s10737_s5 + $0x1e8] sm:$0xff] }
 0x52e   :  { %v4264_v53 = vpop.f32.mrf.mxu0 }
 0x530   :  { %v7437_v55 = vpop.f32.mrf.mxu0 }
 0x531   :  { %v4725_v55 = vld [vmem:[%s10737_s5 + $0x1d8] sm:$0xff] }
 0x53e   :  { %v4406_v27 = vpop.f32.mrf.mxu0 }
 0x540   :  { %v7475_v21 = vpop.f32.mrf.mxu0 }
 0x541   :  { %v4723_v21 = vld [vmem:[%s10737_s5 + $0x1c8] sm:$0xff] }
 0x54e   :  { %v4548_v6 = vpop.f32.mrf.mxu0 }
 0x550   :  { %v7513_v24 = vpop.f32.mrf.mxu0 }
 0x551   :  { %v4721_v24 = vld [vmem:[%s10737_s5 + $0x1b8] sm:$0xff] }
 0x586   :  { %v4042_v29 = vpop.f32.mrf.mxu1 }
 0x587   :  { %v4046_v32 = vadd.f32 %v4042_v29, %v3972_v20  ;;  %v4720_v29 = vld [vmem:[%s10737_s5 + $0x1b0] sm:$0xff] }
 0x588   :  { %v7380_v34 = vpop.f32.mrf.mxu1  ;;  %v4712_v20 = vld [vmem:[%s10737_s5 + $0x170] sm:$0xff] }
 0x589   :  { %v4120_v44 = vadd.f32 %v4116_v51, %v4046_v32  ;;  %v4728_v51 = vld [vmem:[%s10737_s5 + $0x1f0] sm:$0xff]  ;;  %v4719_v34 = vld [vmem:[%s10737_s5 + $0x1a8] sm:$0xff]  ;;  %v4710_v32 = vld [vmem:[%s10737_s5 + $0x160] sm:$0xff] }
 0x596   :  { %v4190_v10 = vpop.f32.mrf.mxu1 }
 0x597   :  { %v4194_v14 = vadd.f32 %v4190_v10, %v4120_v44  ;;  %v4718_v10 = vld [vmem:[%s10737_s5 + $0x1a0] sm:$0xff]  ;;  %v4708_v44 = vld [vmem:[%s10737_s5 + $0x150] sm:$0xff] }
 0x598   :  { %v7418_v49 = vpop.f32.mrf.mxu1 }
 0x599   :  { %v4268_v2 = vadd.f32 %v4264_v53, %v4194_v14  ;;  %v4726_v53 = vld [vmem:[%s10737_s5 + $0x1e0] sm:$0xff]  ;;  %v4717_v49 = vld [vmem:[%s10737_s5 + $0x198] sm:$0xff] }
 0x59a   :  { %v4706_v14 = vld [vmem:[%s10737_s5 + $0x140] sm:$0xff] }
 0x5a6   :  { %v4335_v56 = vpop.f32.mrf.mxu1 }
 0x5a7   :  { %v4339_v31 = vadd.f32 %v9847_v11, %v4335_v56  ;;  %v4696_v11 = vld [vmem:[%s10737_s5 + $0xf0] sm:$0xff] }
 0x5a8   :  { %v7456_v59 = vpop.f32.mrf.mxu1  ;;  %4758 = vmatpush1.msra.mxu0 %v4696_v11  ;;  %v4716_v56 = vld [vmem:[%s10737_s5 + $0x190] sm:$0xff] }
 0x5a9   :  { %v4410_v40 = vadd.f32 %v4406_v27, %v4339_v31  ;;  %4759 = vmatprep.subr.mxu0 %v4695_v9  ;;  %v4724_v27 = vld [vmem:[%s10737_s5 + $0x1d0] sm:$0xff]  ;;  %v4715_v59 = vld [vmem:[%s10737_s5 + $0x188] sm:$0xff]  ;;  %v4701_v9 = vld [vmem:[%s10737_s5 + $0x118] sm:$0xff] }
 0x5aa   :  { %4760 = vmatpush1.msra.mxu0 %v4694_v47  ;;  %v4711_v31 = vld [vmem:[%s10737_s5 + $0x168] sm:$0xff]  ;;  %v4700_v47 = vld [vmem:[%s10737_s5 + $0x110] sm:$0xff] }
 0x5ab   :  { %4761 = vmatprep.subr.mxu0 %v4693_v38 }
 0x5ac   :  { %4762 = vmatpush1.msra.mxu0 %v4692_v43  ;;  %v4698_v43 = vld [vmem:[%s10737_s5 + $0x100] sm:$0xff] }
 0x5ad   :  { %4763 = vmatprep.subr.mxu0 %v4691_v46 }
 0x5ae   :  { %4764 = vmatpush1.msra.mxu0 %v4690_v58 }
 0x5af   :  { %4765 = vmatprep.subr.mxu0 %v4689_v5 }
 0x5b0   :  { %4766 = vmatpush1.msra.mxu0 %v4688_v61 }
 0x5b1   :  { %4767 = vmatprep.subr.mxu0 %v4687_v62 }
 0x5b2   :  { %4768 = vmatpush1.msra.mxu0 %v4686_v63 }
 0x5b3   :  { %4769 = vmatprep.subr.mxu0 %v4685_v25 }
 0x5b4   :  { %4770 = vmatpush1.msra.mxu0 %v4684_v26 }
 0x5b5   :  { %4771 = vmatprep.subr.mxu0 %v4683_v1 }
 0x5b6   :  { %v4477_v28 = vpop.f32.mrf.mxu1  ;;  %4772 = vmatpush1.msra.mxu0 %v4682_v3 }
 0x5b7   :  { %v4481_v12 = vadd.f32 %v4477_v28, %v4410_v40  ;;  %4773 = vmatprep.subr.mxu0 %v4681_v4  ;;  %v4714_v28 = vld [vmem:[%s10737_s5 + $0x180] sm:$0xff]  ;;  %v4709_v40 = vld [vmem:[%s10737_s5 + $0x158] sm:$0xff] }
 0x5b8   :  { %v7494_v30 = vpop.f32.mrf.mxu1  ;;  %4774 = vmatpush1.msra.mxu0 %v4680_v7  ;;  %v4914_v4 = vld [vmem:[#allocation5 + $0x78] sm:$0xff]  ;;  %v4913_v7 = vld [vmem:[#allocation5 + $0x70] sm:$0xff] }
 0x5b9   :  { %v4552_v23 = vadd.f32 %v4548_v6, %v4481_v12  ;;  %4775 = vmatprep.subr.mxu0 %v4679_v13  ;;  %v4722_v6 = vld [vmem:[%s10737_s5 + $0x1c0] sm:$0xff]  ;;  %v4713_v30 = vld [vmem:[%s10737_s5 + $0x178] sm:$0xff]  ;;  %v4707_v12 = vld [vmem:[%s10737_s5 + $0x148] sm:$0xff]  ;;  %4936 = vmatpush1.msra.mxu1 %v4914_v4 }
 0x5ba   :  { %4776 = vmatpush1.msra.mxu0 %v4678_v22  ;;  %4937 = vmatprep.subr.mxu1 %v7810_v0  ;;  %v4912_v13 = vld [vmem:[#allocation5 + $0x68] sm:$0xff] }
 0x5bb   :  { %4777 = vmatprep.subr.mxu0 %v4677_v35  ;;  %4938 = vmatpush1.msra.mxu1 %v4913_v7  ;;  %v4911_v35 = vld [vmem:[#allocation5 + $0x60] sm:$0xff] }
 0x5bc   :  { %4778 = vmatpush1.msra.mxu0 %v4676_v37  ;;  %4939 = vmatprep.subr.mxu1 %v7810_v0  ;;  %v4910_v37 = vld [vmem:[#allocation5 + $0x58] sm:$0xff] }
 0x5bd   :  { %4779 = vmatprep.subr.mxu0 %v4675_v39  ;;  %4940 = vmatpush1.msra.mxu1 %v4912_v13  ;;  %v4909_v39 = vld [vmem:[#allocation5 + $0x50] sm:$0xff] }
 0x5be   :  { %4780 = vmatpush1.msra.mxu0 %v4674_v41  ;;  %4941 = vmatprep.subr.mxu1 %v7810_v0  ;;  %v4908_v41 = vld [vmem:[#allocation5 + $0x48] sm:$0xff] }
 0x5bf   :  { %4781 = vmatprep.subr.mxu0 %v4673_v45  ;;  %4942 = vmatpush1.msra.mxu1 %v4911_v35  ;;  %v4907_v45 = vld [vmem:[#allocation5 + $0x40] sm:$0xff] }
 0x5c0   :  { %4782 = vmatpush1.msra.mxu0 %v4672_v48  ;;  %4943 = vmatprep.subr.mxu1 %v7810_v0  ;;  %v4906_v48 = vld [vmem:[#allocation5 + $0x38] sm:$0xff] }
 0x5c1   :  { %4783 = vmatprep.subr.mxu0 %v4671_v57  ;;  %4944 = vmatpush1.msra.mxu1 %v4910_v37  ;;  %v4905_v57 = vld [vmem:[#allocation5 + $0x30] sm:$0xff] }
 0x5c2   :  { %4784 = vmatpush1.msra.mxu0 %v4670_v15  ;;  %4945 = vmatprep.subr.mxu1 %v7810_v0  ;;  %v4904_v15 = vld [vmem:[#allocation5 + $0x28] sm:$0xff] }
 0x5c3   :  { %4785 = vmatprep.subr.mxu0 %v4669_v17  ;;  %4946 = vmatpush1.msra.mxu1 %v4909_v39  ;;  %v4903_v17 = vld [vmem:[#allocation5 + $0x20] sm:$0xff] }
 0x5c4   :  { %4786 = vmatpush1.msra.mxu0 %v4668_v19  ;;  %4947 = vmatprep.subr.mxu1 %v7810_v0  ;;  %v4902_v19 = vld [vmem:[#allocation5 + $0x18] sm:$0xff]  ;;  %v5017_v39 = vld [vmem:[%s10741_s9 + $0x60] sm:$0xf] }
 0x5c5   :  { %4787 = vmatprep.subr.mxu0 %v4667_v36  ;;  %4948 = vmatpush1.msra.mxu1 %v4908_v41  ;;  %v4901_v36 = vld [vmem:[#allocation5 + $0x10] sm:$0xff]  ;;  %v5016_v41 = vld [vmem:[%s10741_s9 + $0x58] sm:$0xff] }
 0x5c6   :  { %v4622_v16 = vpop.f32.mrf.mxu1  ;;  %4788 = vmatpush1.msra.mxu0 %v4666_v33  ;;  %4949 = vmatprep.subr.mxu1 %v7810_v0  ;;  %v4900_v33 = vld [vmem:[#allocation5 + $0x8] sm:$0xff] }
 0x5c7   :  { %v4626_v18 = vadd.f32 %v4622_v16, %v4552_v23  ;;  %4789 = vmatprep.subr.mxu0 %v4729_v50  ;;  %v4705_v23 = vld [vmem:[%s10737_s5 + $0x138] sm:$0xff]  ;;  %v4704_v16 = vld [vmem:[%s10737_s5 + $0x130] sm:$0xff]  ;;  %4950 = vmatpush1.msra.mxu1 %v4907_v45  ;;  %v4899_v50 = vld [vmem:[#allocation5] sm:$0xff] }
 0x5c8   :  { %v7532_v54 = vpop.f32.mrf.mxu1  ;;  %4790 = vmatpush2.msra.mxu0 %v4728_v51  ;;  %4951 = vmatprep.subr.mxu1 %v7810_v0  ;;  %v4923_v51 = vld [vmem:[#allocation5 + $0xc0] sm:$0xff]  ;;  %v5015_v45 = vld [vmem:[%s10741_s9 + $0x50] sm:$0xff] }
 0x5c9   :  { %v10382_v8 = vmax.f32 %v4268_v2, %v4626_v18  ;;  %4791 = vmatprep.subr.mxu0 %v4727_v52  ;;  %v2407_v2 = vpop.permute.xlu1 %2406  ;;  %v4703_v18 = vld [vmem:[%s10737_s5 + $0x128] sm:$0xff]  ;;  %4952 = vmatpush1.msra.mxu1 %v4906_v48  ;;  %v4922_v52 = vld [vmem:[#allocation5 + $0xb8] sm:$0xff] }
 0x5ca   :  { %4792 = vmatpush2.msra.mxu0 %v4726_v53  ;;  %v10564_v54 = vmax.f32 %v10032_v60, %v2407_v2  ;;  %v4699_v60 = vld [vmem:[%s10737_s5 + $0x108] sm:$0xff]  ;;  %4953 = vmatprep.subr.mxu1 %v7810_v0  ;;  %v4921_v53 = vld [vmem:[#allocation5 + $0xb0] sm:$0xff] }
 0x5cb   :  { %4629 = vrot.lane.b32.xlu0 %v10382_v8, %s7813_s1  ;;  %4793 = vmatprep.subr.mxu0 %v4725_v55  ;;  %v4920_v55 = vld [vmem:[#allocation5 + $0xa8] sm:$0xff] }
 0x5cc   :  { %4794 = vmatpush2.msra.mxu0 %v4724_v27  ;;  %v2419_v46 = vrot.slane %v10564_v54, 3  ;;  %v2415_v5 = vrot.slane %v10564_v54, 2  ;;  %v2411_v26 = vrot.slane %v10564_v54, 1  ;;  %v2423_v22 = vrot.slane %v10564_v54, 4  ;;  %4954 = vmatpush1.msra.mxu1 %v4905_v57  ;;  %v5014_v48 = vld [vmem:[%s10741_s9 + $0x48] sm:$0xff]  ;;  %v5013_v57 = vld [vmem:[%s10741_s9 + $0x40] sm:$0xff] }
 0x5cd   :  { %4795 = vmatprep.subr.mxu0 %v4723_v21  ;;  %4955 = vmatprep.subr.mxu1 %v7810_v0 }
 0x5ce   :  { %4796 = vmatpush2.msra.mxu0 %v4722_v6  ;;  %4956 = vmatpush1.msra.mxu1 %v4904_v15  ;;  %v5012_v15 = vld [vmem:[%s10741_s9 + $0x38] sm:$0xff] }
 0x5cf   :  { %4797 = vmatprep.subr.mxu0 %v4721_v24  ;;  %4957 = vmatprep.subr.mxu1 %v7810_v0 }
 0x5d0   :  { %4798 = vmatpush2.msra.mxu0 %v4720_v29  ;;  %4958 = vmatpush1.msra.mxu1 %v4903_v17  ;;  %v5011_v17 = vld [vmem:[%s10741_s9 + $0x30] sm:$0xff] }
 0x5d1   :  { %4799 = vmatprep.subr.mxu0 %v4719_v34  ;;  %4959 = vmatprep.subr.mxu1 %v7810_v0 }
 0x5d2   :  { %4800 = vmatpush2.msra.mxu0 %v4718_v10  ;;  %4960 = vmatpush1.msra.mxu1 %v4902_v19  ;;  %v5010_v19 = vld [vmem:[%s10741_s9 + $0x28] sm:$0xff] }
 0x5d3   :  { %4801 = vmatprep.subr.mxu0 %v4717_v49  ;;  %4961 = vmatprep.subr.mxu1 %v7810_v0 }
 0x5d4   :  { %4802 = vmatpush2.msra.mxu0 %v4716_v56  ;;  %4962 = vmatpush1.msra.mxu1 %v4901_v36  ;;  %v5009_v36 = vld [vmem:[%s10741_s9 + $0x20] sm:$0xff] }
 0x5d5   :  { %4803 = vmatprep.subr.mxu0 %v4715_v59  ;;  %4963 = vmatprep.subr.mxu1 %v7810_v0 }
 0x5d6   :  { %4804 = vmatpush2.msra.mxu0 %v4714_v28  ;;  %4964 = vmatpush1.msra.mxu1 %v4900_v33  ;;  %v5008_v33 = vld [vmem:[%s10741_s9 + $0x18] sm:$0xff] }
 0x5d7   :  { %4805 = vmatprep.subr.mxu0 %v4713_v30  ;;  %4965 = vmatprep.subr.mxu1 %v7810_v0 }
 0x5d8   :  { %4806 = vmatpush2.msra.mxu0 %v4712_v20  ;;  %4966 = vmatpush1.msra.mxu1 %v4899_v50  ;;  %v5007_v50 = vld [vmem:[%s10741_s9 + $0x10] sm:$0xff] }
 0x5d9   :  { %4807 = vmatprep.subr.mxu0 %v4711_v31  ;;  %4981 = vmatprep.subr.mxu1 %v7810_v0 }
 0x5da   :  { %4808 = vmatpush2.msra.mxu0 %v4710_v32  ;;  %4982 = vmatpush2.msra.mxu1 %v4923_v51  ;;  %v5006_v51 = vld [vmem:[%s10741_s9 + $0x8] sm:$0xff] }
 0x5db   :  { %4809 = vmatprep.subr.mxu0 %v4709_v40  ;;  %4983 = vmatprep.subr.mxu1 %v7810_v0 }
 0x5dc   :  { %4810 = vmatpush2.msra.mxu0 %v4708_v44  ;;  %4984 = vmatpush2.msra.mxu1 %v4922_v52  ;;  %v5005_v52 = vld [vmem:[%s10741_s9] sm:$0xff] }
 0x5dd   :  { %4811 = vmatprep.subr.mxu0 %v4707_v12  ;;  %4985 = vmatprep.subr.mxu1 %v7810_v0 }
 0x5de   :  { %4812 = vmatpush2.msra.mxu0 %v4706_v14  ;;  %4986 = vmatpush2.msra.mxu1 %v4921_v53  ;;  %v5106_v53 = vld [vmem:[%s10743_s11 + $0x20] sm:$0xff] }
 0x5df   :  { %4813 = vmatprep.subr.mxu0 %v4705_v23  ;;  %4987 = vmatprep.subr.mxu1 %v7810_v0 }
 0x5e0   :  { %4814 = vmatpush2.msra.mxu0 %v4704_v16  ;;  %4988 = vmatpush2.msra.mxu1 %v4920_v55  ;;  %v5105_v55 = vld [vmem:[%s10743_s11 + $0x18] sm:$0xff] }
 0x5e1   :  { %4815 = vmatprep.subr.mxu0 %v4703_v18  ;;  %4989 = vmatprep.subr.mxu1 %v7810_v0  ;;  %v4732_v18 = vld [vmem:[%s10737_s5 + $0x210] sm:$0x3f] }
 0x5e2   :  { %4816 = vmatpush2.msra.mxu0 %v4702_v42  ;;  %v4731_v42 = vld [vmem:[%s10737_s5 + $0x208] sm:$0xff] }
 0x5e3   :  { %4817 = vmatprep.subr.mxu0 %v4701_v9 }
 0x5e4   :  { %4818 = vmatpush2.msra.mxu0 %v4700_v47 }
 0x5e5   :  { %4819 = vmatprep.subr.mxu0 %v4699_v60  ;;  %v4918_v60 = vld [vmem:[#allocation5 + $0x98] sm:$0xff] }
 0x5e6   :  { %4820 = vmatpush2.msra.mxu0 %v4698_v43  ;;  %v4917_v43 = vld [vmem:[#allocation5 + $0x90] sm:$0xff] }
 0x63d   :  { %v4630_v11 = vpop.permute.xlu0 %4629 }
 0x63e   :  { %v10576_v38 = vmax.f32 %v10382_v8, %v4630_v11  ;;  %v4733_v8 = vld [vmem:[%s10737_s5 + $0x218] sm:$0x3f]  ;;  %v4730_v11 = vld [vmem:[%s10737_s5 + $0x200] sm:$0xff] }
 0x63f   :  { %5343 = vmatprep.subr.msk.mxu0 %vm4750_vm4, %v4733_v8 }
 0x640   :  { %v4642_v58 = vrot.slane %v10576_v38, 3  ;;  %v4638_v61 = vrot.slane %v10576_v38, 2  ;;  %v4634_v25 = vrot.slane %v10576_v38, 1  ;;  %v4646_v1 = vrot.slane %v10576_v38, 4 }
 0x642   :  { %v7593_v62 = vpack.i.bf16 %v2419_v46, %v4642_v58  ;;  %v7588_v63 = vpack.i.bf16 %v2415_v5, %v4638_v61  ;;  %v7598_v3 = vpack.i.bf16 %v2411_v26, %v4634_v25  ;;  %v4916_v46 = vld [vmem:[#allocation5 + $0x88] sm:$0xff]  ;;  %v4915_v58 = vld [vmem:[#allocation5 + $0x80] sm:$0xff]  ;;  %v4736_v5 = vlaneseq }
 0x644   :  { %7594 = vrot.lane.b32.xlu1 %v7593_v62, %s7814_s24  ;;  %7589 = vrot.lane.b32.xlu0 %v7588_v63, %s7815_s25  ;;  %v4737_v61 = vshrl.u32 %v4736_v5, 7  ;;  %v4734_v63 = vld [vmem:[%s10738_s6] sm:$0x3] }
 0x646   :  { %v4742_v8 = vsub.s32 1, %v4737_v61  ;;  %v4738_v62 = vsub.s32 0, %v4737_v61 }
 0x648   :  { %4647 = vrot.lane.b32.xlu1 %v4646_v1, %s7816_s26  ;;  %7599 = vrot.lane.b32.xlu0 %v7598_v3, %s7817_s27  ;;  %v4743_v26 = vrot.slane %v4734_v63, %v4742_v8  ;;  %v4739_v1 = vrot.slane %v4734_v63, %v4738_v62 }
 0x64c   :  { %2424 = vrot.lane.b32.xlu0 %v2423_v22, %s7816_s26  ;;  %s7818_s26 = smov [#allocation7]  }
 0x64d   :  { %s5196_s27 = sshll.u32 %s7818_s26, 4  ;;  %s5197_s27 = int_to_ptr.vmem [resolvable:$true] %s5196_s27 }
 0x64e   :  { %p7785_p11 = scmp.lt.s32.totalorder %s5197_s27, %s5197_s27 }
 0x6b6   :  { %v7595_v27 = vpop.permute.xlu1 %7594  ;;  %v7590_v21 = vpop.permute.xlu0 %7589 }
 0x6b7   :  { %v7596_v6 = vunpack.i.l.bf16 %v7595_v27  ;;  %v7591_v24 = vunpack.i.l.bf16 %v7590_v21  ;;  %v7597_v34 = vunpack.i.h.bf16 %v7595_v27  ;;  %v7592_v10 = vunpack.i.h.bf16 %v7590_v21  ;;  %v5104_v27 = vld [vmem:[%s10743_s11 + $0x10] sm:$0xff]  ;;  %v5346_v21 = vld [vmem:[%s10740_s8] ss:$0 sm:$0xff] }
 0x6b9   :  { %v4652_v29 = vsel %vm2431_vm5, %v7591_v24, %v7596_v6  ;;  %v2432_v40 = vsel %vm2431_vm5, %v7592_v10, %v7597_v34  ;;  %v5103_v34 = vld [vmem:[%s10743_s11 + $0x8] sm:$0xff] }
 0x6ba   :  { %v4648_v49 = vpop.permute.xlu1 %4647  ;;  %v7600_v56 = vpop.permute.xlu0 %7599 }
 0x6bb   :  { %v4653_v59 = vsel %vm2433_vm6, %v4652_v29, %v4648_v49  ;;  %v7602_v28 = vunpack.i.h.bf16 %v7600_v56  ;;  %v7601_v30 = vunpack.i.l.bf16 %v7600_v56  ;;  %v4658_v9 = vrot.slane %v4648_v49, 7  ;;  %v5348_v49 = vld [vmem:[%s10742_s10] ss:$0 sm:$0xff] }
 0x6bc   :  { %v4657_v32 = vrot.slane %v4653_v59, 7 }
 0x6bd   :  { %v2428_v20 = vsel %vm2427_vm7, %v10564_v54, %v7602_v28  ;;  %v4650_v31 = vsel %vm2427_vm7, %v10576_v38, %v7601_v30  ;;  %v4919_v38 = vld [vmem:[#allocation5 + $0xa0] sm:$0xff] }
 0x6be   :  { %v2425_v44 = vpop.permute.xlu0 %2424  ;;  %v4651_v12 = vsel %vm2429_vm8, %v4650_v31, %v7591_v24  ;;  %v2430_v2 = vsel %vm2429_vm8, %v2428_v20, %v7592_v10  ;;  %4990 = vmatpush2.msra.mxu1 %v4919_v38  ;;  %v5102_v10 = vld [vmem:[%s10743_s11] sm:$0xff]  ;;  %s7780_s11 = scalar_lea.vmem %s5197_s27, 32 }
 0x6bf   :  { %v2434_v14 = vsel %vm2433_vm6, %v2432_v40, %v2425_v44  ;;  %v4656_v23 = vrot.slane %v4651_v12, 7  ;;  %v4665_v47 = vsel %vm4662_vm9, %v2425_v44, %v4658_v9  ;;  %4991 = vmatprep.subr.mxu1 %v7810_v0  ;;  %v5351_v30 = vld [vmem:[%s10744_s12] ss:$0 sm:$0xff]  ;;  %p7781_p10 = scmp.ne.s32.totalorder %s5197_s27, %s7780_s11  ;;  %p7786_p12 = scmp.lt.s32.totalorder %s7780_s11, %s7780_s11 }
 0x6c0   :  { %v4664_v16 = vsel %vm4662_vm9, %v2434_v14, %v4657_v32  ;;  %4992 = vmatpush2.msra.mxu1 %v4918_v60 }
 0x6c1   :  { %4821 = vmatprep.mubr.f32.mxu0 %v4664_v16  ;;  %v4663_v54 = vsel %vm4662_vm9, %v2430_v2, %v4656_v23  ;;  %4993 = vmatprep.subr.mxu1 %v7810_v0  ;;  %p7787_p13 = por %p7786_p12, %p7785_p11 }
 0x6c2   :  { %4822 = vmatmul.mubr.f32.vlgmr.msra.gmra.mxu0 %v4663_v54  ;;  %4994 = vmatpush2.msra.mxu1 %v4917_v43 }
 0x6c3   :  { %5344 = vmatpush1.msk.msra.mxu0 %vm4750_vm4, %v4732_v18  ;;  %4892 = vmatprep.mubr.f32.mxu0 %v7810_v0  ;;  %p7788_p0 = pnand %p7787_p13, %p7781_p10 }
 0x6c4   :  { %4858 = vmatprep.subr.mxu0 %v4731_v42  ;;  %4995 = vmatprep.subr.mxu1 %v7810_v0 }
 0x6c5   :  { %4859 = vmatpush1.msra.mxu0 %v4730_v11  ;;  %4996 = vmatpush2.msra.mxu1 %v4916_v46 }
 0x6c6   :  { %5345 = vmatmul.mubr.msk.f32.vlgmr.msra.gmra.mxu0 %vm4746_vm10, %v4665_v47  ;;  %7562 = vmatprep.subr.mxu0 %v7810_v0 }
 0x6c7   :  { %7572 = vmatprep.mubr.msk.f32.mxu0 %vm7811_vm0, %v7810_v0  ;;  %4997 = vmatprep.subr.mxu1 %v7810_v0 }
 0x6c8   :  { %4998 = vmatpush2.msra.mxu1 %v4915_v58  ;;  %7563 = vmatpush3.msra.mxu0 %v5106_v53 }
 0x6c9   :  { %7533 = vmatprep.subr.mxu1 %v7810_v0  ;;  %7564 = vmatprep.subr.mxu0 %v7810_v0 }
 0x6ca   :  { %7565 = vmatpush3.msra.mxu0 %v5105_v55 }
 0x6cb   :  { %7566 = vmatprep.subr.mxu0 %v7810_v0 }
 0x6cc   :  { %7567 = vmatpush3.msra.mxu0 %v5104_v27 }
 0x6cd   :  { %7568 = vmatprep.subr.mxu0 %v7810_v0 }
 0x6ce   :  { %7569 = vmatpush3.msra.mxu0 %v5103_v34 }
 0x6cf   :  { %7570 = vmatprep.subr.mxu0 %v7810_v0 }
 0x6d0   :  { %7571 = vmatpush3.msra.mxu0 %v5102_v10 }
 0x782   :  { %v4823_v25 = vpop.f32.mrf.mxu0 }
 0x783   :  { %v4824_v13 = vadd.f32 %v4823_v25, %v4739_v1 }
 0x784   :  { %v4825_v3 = vpop.f32.mrf.mxu0 }
 0x785   :  { %v4826_v7 = vadd.f32 %v4825_v3, %v4743_v26 }
 0x786   :  { %v4894_v4 = vpop.f32.mrf.mxu0 }
 0x787   :  { %v4895_v37 = vadd.f32 %v4894_v4, %v4824_v13 }
 0x788   :  { %v4896_v22 = vpop.f32.mrf.mxu0 }
 0x789   :  { %v4897_v35 = vadd.f32 %v4896_v22, %v4826_v7 }
 0x78b   :  { %5347 = vmatprep.mubr.msk.f32.mxu1 %vm4931_vm11, %v4897_v35 }
 0x78c   :  { %5000 = vmatmul.mubr.f32.vlgmr.msra.gmra.mxu1 %v4895_v37 }
 0x78d   :  { %7534 = vmatpush3.msk.msra.mxu1 %vm1657_vm2, %v5017_v39  ;;  %7559 = vmatprep.mubr.msk.f32.mxu1 %vm7811_vm0, %v7810_v0 }
 0x78e   :  { %7535 = vmatprep.subr.mxu1 %v7810_v0 }
 0x78f   :  { %7536 = vmatpush3.msra.mxu1 %v5016_v41 }
 0x790   :  { %7537 = vmatprep.subr.mxu1 %v7810_v0 }
 0x791   :  { %7538 = vmatpush3.msra.mxu1 %v5015_v45 }
 0x792   :  { %7539 = vmatprep.subr.mxu1 %v7810_v0 }
 0x793   :  { %7540 = vmatpush3.msra.mxu1 %v5014_v48 }
 0x794   :  { %7541 = vmatprep.subr.mxu1 %v7810_v0 }
 0x795   :  { %7542 = vmatpush3.msra.mxu1 %v5013_v57 }
 0x796   :  { %7543 = vmatprep.subr.mxu1 %v7810_v0 }
 0x797   :  { %7544 = vmatpush3.msra.mxu1 %v5012_v15 }
 0x798   :  { %7545 = vmatprep.subr.mxu1 %v7810_v0 }
 0x799   :  { %7546 = vmatpush3.msra.mxu1 %v5011_v17 }
 0x79a   :  { %7547 = vmatprep.subr.mxu1 %v7810_v0 }
 0x79b   :  { %7548 = vmatpush3.msra.mxu1 %v5010_v19 }
 0x79c   :  { %7549 = vmatprep.subr.mxu1 %v7810_v0 }
 0x79d   :  { %7550 = vmatpush3.msra.mxu1 %v5009_v36 }
 0x79e   :  { %7551 = vmatprep.subr.mxu1 %v7810_v0 }
 0x79f   :  { %7552 = vmatpush3.msra.mxu1 %v5008_v33 }
 0x7a0   :  { %7553 = vmatprep.subr.mxu1 %v7810_v0 }
 0x7a1   :  { %7554 = vmatpush3.msra.mxu1 %v5007_v50 }
 0x7a2   :  { %7555 = vmatprep.subr.mxu1 %v7810_v0 }
 0x7a3   :  { %7556 = vmatpush3.msra.mxu1 %v5006_v51 }
 0x7a4   :  { %7557 = vmatprep.subr.mxu1 %v7810_v0 }
 0x7a5   :  { %7558 = vmatpush3.msra.mxu1 %v5005_v52 }
 0x84c   :  { %v5001_v6 = vpop.f32.mrf.mxu1 }
 0x84d   :  { %v5002_v24 = vadd.f32 %v5346_v21, %v5001_v6 }
 0x84e   :  { %v5003_v29 = vpop.f32.mrf.mxu1 }
 0x84f   :  { %7560 = vmatmul.mubr.msk.f32.vlgmr.msra.gmra.mxu1 %vm5025_vm12, %v5002_v24 }
 0x90f   :  { %v5098_v56 = vpop.f32.mrf.mxu1 }
 0x910   :  { %v5099_v59 = vadd.f32 %v5348_v49, %v5098_v56 }
 0x911   :  { %v7561_v28 = vpop.f32.mrf.mxu1 }
 0x912   :  { %7573 = vmatmul.mubr.msk.f32.vlgmr.msra.gmra.mxu0 %vm5114_vm13, %v5099_v59 }
 0x9d2   :  { %v5184_v0 = vpop.f32.mrf.mxu0 }
 0x9d3   :  { %v5185_v20 = vadd.f32 %v5351_v30, %v5184_v0 }
 0x9d4   :  { %v7574_v31 = vpop.f32.mrf.mxu0 }
 0x9d5   :  { %5189 = vst.msk [vmem:[#allocation7] sm:$0x3] %vm5188_vm14, %v5185_v20 }
 0x9d6   :  { %7791 = shalt.err (!%p7788_p0)
}
 0x9d7   :  { %5199 = dma.vmem_to_hbm [thread:$0]  %s5197_s27, 32, %s10745_s13, [#allocation4]  }
 0x9d8   :  { %7804 = dma.done.wait [#allocation4], 32  }
 0x9d9   :  { %7805 = vsyncadd [#allocation4], 4294967264 }
 0x9da   :  { %5203 = vsyncpa [#allocation3], 1 }
 0x9db   :  { %5204 = vsyncpa [#allocation6], 1 }
 0x9dc   :  { %5205 = vsyncpa [#allocation4], 1 }

</bundles_post_ra>
